<compile_context>
chip_gen: v7x
topology: tpu7x:2x2x1
jax: 0.10.0
libtpu: 0.0.40
codegen_flags: <defaults>
</compile_context>

<pallas_src>
import functools

import jax
import jax.numpy as jnp
import numpy as np
from jax import lax
from jax.experimental import pallas as pl
from jax.experimental.pallas import tpu as pltpu


def _fullnet_kernel(pred_ref, src_ref, dst_ref, pos_ref, planeT_ref, *,
                    inv_pred_h, inv_slic_h, hg, wg):
    """One (batch, n-tile) grid step.

    pred_ref   : (1, H, 2W)    f32  pred_corr[b] flattened over (W, 2); block index is
                                    constant over the n axis -> DMA'd once per batch.
    src_ref    : (1, 2, TN)    f32  tile of src_pixel_group[b], samples on lanes.
    dst_ref    : (1, 2, TN)    f32  gathered dst tile (already / slic_h), lane-dense.
    pos_ref    : (1, 2, H, W)  f32  pos_tar[b]; resident across n, written at n == 0.
    planeT_ref : (2*WG, HG)    f32  scratch: de-interleaved, transposed gather window
                                    (ch0 rows [0,WG), ch1 rows [WG,2WG)); persists over n.
    """
    n = pl.program_id(1)
    W = pos_ref.shape[3]
    W2 = 2 * W

    # ---- once per batch: de-interleave pred, emit pos_tar, cache gather plane ------
    @pl.when(n == 0)
    def _():
        pred2d = pred_ref[0]                                          # (H, 2W)
        # Constant selection matrix sel[k, j] = (k == tgt(j)) with
        #   tgt(j) = 2*j        for j <  W  (channel 0)
        #   tgt(j) = 2*(j-W)+1  for j >= W  (channel 1)
        # so plane = pred2d @ sel de-interleaves both channels with ONE MXU matmul:
        # plane[:, :W] = pred[..., 0], plane[:, W:] = pred[..., 1].  No CHW copy of
        # pred is ever materialized in HBM.
        k_iota = lax.broadcasted_iota(jnp.int32, (W2, W2), 0)
        j_iota = lax.broadcasted_iota(jnp.int32, (W2, W2), 1)
        tgt = jnp.where(j_iota < W, 2 * j_iota, 2 * (j_iota - W) + 1)
        sel = (k_iota == tgt).astype(jnp.float32)                     # (2W, 2W), 0/1
        plane = jnp.dot(pred2d, sel, preferred_element_type=jnp.float32)  # (H, 2W)

        # pos_tar = pred_corr.permute(0, 3, 1, 2) / pred_corr.shape[1]
        # (written straight from the matmul result -- no scratch re-read)
        pos_ref[0, 0] = plane[:, :W] * inv_pred_h
        pos_ref[0, 1] = plane[:, W:] * inv_pred_h

        # Gather window: indices are clamped to [0, hg) x [0, wg), so only that window
        # of each channel is ever read.  Transpose once per batch so the per-tile
        # gather matmul is canonical with samples on lanes.
        if W == wg:
            window = plane[:hg, :]                                    # (HG, 2*WG)
        else:
            window = jnp.concatenate(
                [plane[:hg, :wg], plane[:hg, W:W + wg]], axis=1)      # (HG, 2*WG)
        planeT_ref[...] = jnp.transpose(window)                       # (2*WG, HG)

    # ---- every n tile: data-dependent gather, samples on lanes ---------------------
    src = src_ref[0]                                                  # (2, TN)
    TN = src.shape[1]
    # Exact PyTorch semantics: torch.round(src * 256).long().clamp(0, 255)
    idx = jnp.clip(jnp.round(src * 256.0), 0.0, 255.0).astype(jnp.int32)
    y = idx[0:1, :]                                                   # (1, TN) row into H
    x = idx[1:2, :]                                                   # (1, TN) col into W

    # Row gather for BOTH channels with a single one-hot matmul on the MXU.
    # NOTE: kept in f32 -- the exact-select property needs full-precision pred values.
    oh_y = (lax.broadcasted_iota(jnp.int32, (hg, TN), 0) == y).astype(jnp.float32)  # (HG, TN)
    rows = jnp.dot(planeT_ref[...], oh_y,
                   preferred_element_type=jnp.float32)                # (2*WG, TN)

    # Column gather: one shared mask over sublanes + two half-width sublane reductions.
    mask = (lax.broadcasted_iota(jnp.int32, (wg, TN), 0) == x).astype(jnp.float32)  # (WG, TN)
    g0 = jnp.sum(rows[:wg] * mask, axis=0, keepdims=True)             # (1, TN) channel 0
    g1 = jnp.sum(rows[wg:] * mask, axis=0, keepdims=True)             # (1, TN) channel 1

    # dst_pixel_group /= slic.shape[1]; lane-dense (2, TN) store, no masked vst.
    dst_ref[0] = jnp.concatenate([g0, g1], axis=0) * inv_slic_h       # (2, TN)


def fullnet_forward_offline(pred_corr, slic, src_pixel_group):
    """FullNet.forward with offline_corr=True.

    pred_corr       : (B, H, W, 2) float
    slic            : (B, H, W)    (only its shape[1] is used, as in PyTorch)
    src_pixel_group : (B, SLIC, SAMPLE, 2) float
    """
    pred_corr = pred_corr.astype(jnp.float32)                 # pred_corr.float()
    B, H, W, C = pred_corr.shape
    assert C == 2
    # The module hard-codes round(src*256).clamp(0,255); PyTorch indexing is only
    # guaranteed valid when H >= 256 and W >= 256.
    assert H >= 256 and W >= 256, "FullNet hard-codes 256x256 pixel indexing"
    _, SLIC, SAMPLE, _ = src_pixel_group.shape
    N = SLIC * SAMPLE
    slic_h = slic.shape[1]
    HG, WG = 256, 256                      # clamp window of the hard-coded indexing

    # Sample-axis tile: lane-dense (multiple of 128), big enough to amortize the
    # ~0.35 us per grid step; intermediates stay a few MB at N = 6000 on all gens.
    TN = min(1024, -(-N // 128) * 128)
    NT = -(-N // TN)                       # cdiv
    N_pad = NT * TN

    # Layout plumbing (cheap): pred lane-dense over (W, 2); samples on lanes for src.
    pred_flat = pred_corr.reshape(B, H, 2 * W)
    src_t = jnp.transpose(src_pixel_group.astype(jnp.float32).reshape(B, N, 2),
                          (0, 2, 1))                                   # (B, 2, N)
    if N_pad != N:
        src_t = jnp.pad(src_t, ((0, 0), (0, 0), (0, N_pad - N)))
        # padded samples (zeros) gather pred[b, 0, 0, :]; sliced off below.

    kernel = functools.partial(
        _fullnet_kernel,
        inv_pred_h=float(1.0 / H),         # pos_tar divisor (pred_corr.shape[1])
        inv_slic_h=float(1.0 / slic_h),    # dst divisor     (slic.shape[1])
        hg=HG, wg=WG,
    )

    grid_spec = pltpu.PrefetchScalarGridSpec(
        num_scalar_prefetch=0,
        grid=(B, NT),
        in_specs=[
            pl.BlockSpec((1, H, 2 * W), lambda b, n: (b, 0, 0)),   # pred: once per batch
            pl.BlockSpec((1, 2, TN), lambda b, n: (b, 0, n)),      # src tile, lanes = samples
        ],
        out_specs=[
            pl.BlockSpec((1, 2, TN), lambda b, n: (b, 0, n)),      # dst tile, lane-dense
            pl.BlockSpec((1, 2, H, W), lambda b, n: (b, 0, 0, 0)),  # pos: resident across n
        ],
        scratch_shapes=[pltpu.VMEM((2 * WG, HG), jnp.float32)],    # transposed gather plane
    )

    dst_t, pos_tar = pl.pallas_call(
        kernel,
        grid_spec=grid_spec,
        out_shape=(
            jax.ShapeDtypeStruct((B, 2, N_pad), jnp.float32),
            jax.ShapeDtypeStruct((B, 2, H, W), jnp.float32),
        ),
        compiler_params=pltpu.CompilerParams(
            # n axis carries planeT scratch / pos block -> must be sequential.
            dimension_semantics=("parallel", "arbitrary"),
            vmem_limit_bytes=32 * 1024 * 1024,
        ),
    )(pred_flat, src_t)

    dst_pixel_group = jnp.transpose(dst_t[:, :, :N], (0, 2, 1)).reshape(
        B, SLIC, SAMPLE, 2)

    # TODO(synk): self.clusternet(...) / self.corrnet(...) are not defined in the
    # provided source; offline_corr=True path only.
    return {
        "img1_feature": None,
        "img2_feature": None,
        "tau": None,
        "pred_corr": pred_corr,
        "dst_pixel_group": dst_pixel_group,
        "pos_tar": pos_tar,
        "D": None, "A": None, "S": None, "pred_R": None, "pred_T": None,
    }


if __name__ == "__main__":
    # H = W = 256 keeps the module's hard-coded round(src * 256) / clamp(0, 255)
    # indexing exactly valid; SLIC/SAMPLE kept small (real model uses 50 x 120).
    B, H, W = 2, 256, 256
    SLIC, SAMPLE = 8, 16

    key = jax.random.PRNGKey(0)
    k1, k2, k3, k4, k5 = jax.random.split(key, 5)

    img_1 = jax.random.uniform(k1, (B, 3, H, W), jnp.float32)        # unused (offline path)
    img_2 = jax.random.uniform(k2, (B, 3, H, W), jnp.float32)        # unused (offline path)
    mask_1 = (jax.random.uniform(k3, (B, H, W)) > 0.5).astype(jnp.float32)
    slic = jax.random.randint(k3, (B, H, W), 0, 50, jnp.int32)
    img_grid = jax.random.uniform(k4, (B, 2, H, W), jnp.float32)     # unused (clusternet missing)
    src_pixel_group = jax.random.uniform(k5, (B, SLIC, SAMPLE, 2), jnp.float32)
    pred_corr = jax.random.uniform(k4, (B, H, W, 2), jnp.float32) * (H - 1)

    out = fullnet_forward_offline(pred_corr, slic, src_pixel_group)
    jax.block_until_ready(out["dst_pixel_group"])
    jax.block_until_ready(out["pos_tar"])

    # Pure-numpy reference of the gather / permute / scale for a sanity check.
    pc = np.asarray(pred_corr, dtype=np.float32)
    sp = np.asarray(src_pixel_group, dtype=np.float32)
    idx = np.clip(np.round(sp * 256.0), 0, 255).astype(np.int64)     # (B, SLIC, SAMPLE, 2)
    bidx = np.arange(B)[:, None, None]
    dst_ref = pc[bidx, idx[..., 0], idx[..., 1], :] / slic.shape[1]
    pos_ref = np.transpose(pc, (0, 3, 1, 2)) / pc.shape[1]

    np.testing.assert_allclose(np.asarray(out["dst_pixel_group"]), dst_ref,
                               rtol=1e-5, atol=1e-4)
    np.testing.assert_allclose(np.asarray(out["pos_tar"]), pos_ref,
                               rtol=1e-5, atol=1e-4)

    print("KERNEL_OK")
</pallas_src>

<mosaic_0001>
module attributes {stable_mosaic.version = 11 : i64} {
  func.func @_fullnet_kernel(%arg0: i32, %arg1: i32, %arg2: memref<1x256x512xf32, #tpu.memory_space<vmem>>, %arg3: memref<1x2x128xf32, #tpu.memory_space<vmem>>, %arg4: memref<1x2x128xf32, #tpu.memory_space<vmem>>, %arg5: memref<1x2x256x256xf32, #tpu.memory_space<vmem>>, %arg6: memref<512x256xf32, #tpu.memory_space<vmem>>) attributes {dimension_semantics = [#tpu.dimension_semantics<parallel>, #tpu.dimension_semantics<arbitrary>], iteration_bounds = array<i64: 2, 1>, scalar_prefetch = 0 : i64, scratch_operands = 1 : i64, tpu.core_type = #tpu.core_type<tc>, window_params = [{transform_indices = @transform_0, window_bounds = array<i64: 1, 256, 512>}, {transform_indices = @transform_1, window_bounds = array<i64: 1, 2, 128>}, {transform_indices = @transform_2, window_bounds = array<i64: 1, 2, 128>}, {transform_indices = @transform_3, window_bounds = array<i64: 1, 2, 256, 256>}]} {
    %c0_i32 = arith.constant 0 : i32
    %0 = arith.cmpi eq, %arg1, %c0_i32 : i32
    %1 = arith.extui %0 : i1 to i32
    %c0_i32_0 = arith.constant 0 : i32
    %2 = arith.cmpi ne, %1, %c0_i32_0 : i32
    scf.if %2 {
      %c0_14 = arith.constant 0 : index
      %c0_15 = arith.constant 0 : index
      %c0_16 = arith.constant 0 : index
      %41 = vector.load %arg2[%c0_14, %c0_15, %c0_16] : memref<1x256x512xf32, #tpu.memory_space<vmem>>, vector<1x256x512xf32>
      %42 = vector.shape_cast %41 : vector<1x256x512xf32> to vector<256x512xf32>
      %43 = tpu.iota {dimensions = array<i32: 0>} : vector<512x512xi32>
      %44 = tpu.iota {dimensions = array<i32: 1>} : vector<512x512xi32>
      %c256_i32 = arith.constant 256 : i32
      %45 = vector.broadcast %c256_i32 : i32 to vector<512x512xi32>
      %46 = arith.cmpi slt, %44, %45 : vector<512x512xi32>
      %c2_i32 = arith.constant 2 : i32
      %47 = vector.broadcast %c2_i32 : i32 to vector<512x512xi32>
      %48 = arith.muli %47, %44 : vector<512x512xi32>
      %c256_i32_17 = arith.constant 256 : i32
      %49 = vector.broadcast %c256_i32_17 : i32 to vector<512x512xi32>
      %50 = arith.subi %44, %49 : vector<512x512xi32>
      %c2_i32_18 = arith.constant 2 : i32
      %51 = vector.broadcast %c2_i32_18 : i32 to vector<512x512xi32>
      %52 = arith.muli %51, %50 : vector<512x512xi32>
      %c1_i32 = arith.constant 1 : i32
      %53 = vector.broadcast %c1_i32 : i32 to vector<512x512xi32>
      %54 = arith.addi %52, %53 : vector<512x512xi32>
      %55 = arith.select %46, %48, %54 : vector<512x512xi1>, vector<512x512xi32>
      %56 = arith.cmpi eq, %43, %55 : vector<512x512xi32>
      %57 = arith.extui %56 : vector<512x512xi1> to vector<512x512xi32>
      %58 = arith.sitofp %57 : vector<512x512xi32> to vector<512x512xf32>
      %cst_19 = arith.constant dense<0.000000e+00> : vector<256x512xf32>
      %59 = tpu.matmul %42, %58, %cst_19 {dimension_numbers = #tpu.dot_dimension_numbers<[1], [0], [0], [1], [0, 0, 1, 1], [], []>} : vector<256x512xf32>, vector<512x512xf32>, vector<256x512xf32> -> vector<256x512xf32>
      %60 = vector.extract_strided_slice %59 {offsets = [0, 0], sizes = [256, 256], strides = [1, 1]} : vector<256x512xf32> to vector<256x256xf32>
      %cst_20 = arith.constant 3.906250e-03 : f32
      %61 = vector.broadcast %cst_20 : f32 to vector<256x256xf32>
      %62 = arith.mulf %60, %61 : vector<256x256xf32>
      %c0_21 = arith.constant 0 : index
      %c0_22 = arith.constant 0 : index
      %c0_23 = arith.constant 0 : index
      %c0_24 = arith.constant 0 : index
      %63 = vector.load %arg5[%c0_21, %c0_22, %c0_23, %c0_24] : memref<1x2x256x256xf32, #tpu.memory_space<vmem>>, vector<1x1x256x256xf32>
      %64 = vector.shape_cast %63 : vector<1x1x256x256xf32> to vector<256x256xf32>
      %65 = vector.shape_cast %62 : vector<256x256xf32> to vector<1x1x256x256xf32>
      tpu.vector_store %arg5[%c0_21, %c0_22, %c0_23, %c0_24], %65 {strides = array<i32>} : memref<1x2x256x256xf32, #tpu.memory_space<vmem>>, vector<1x1x256x256xf32>,
      %66 = vector.extract_strided_slice %59 {offsets = [0, 256], sizes = [256, 256], strides = [1, 1]} : vector<256x512xf32> to vector<256x256xf32>
      %cst_25 = arith.constant 3.906250e-03 : f32
      %67 = vector.broadcast %cst_25 : f32 to vector<256x256xf32>
      %68 = arith.mulf %66, %67 : vector<256x256xf32>
      %c0_26 = arith.constant 0 : index
      %c1 = arith.constant 1 : index
      %c0_27 = arith.constant 0 : index
      %c0_28 = arith.constant 0 : index
      %69 = vector.load %arg5[%c0_26, %c1, %c0_27, %c0_28] : memref<1x2x256x256xf32, #tpu.memory_space<vmem>>, vector<1x1x256x256xf32>
      %70 = vector.shape_cast %69 : vector<1x1x256x256xf32> to vector<256x256xf32>
      %71 = vector.shape_cast %68 : vector<256x256xf32> to vector<1x1x256x256xf32>
      tpu.vector_store %arg5[%c0_26, %c1, %c0_27, %c0_28], %71 {strides = array<i32>} : memref<1x2x256x256xf32, #tpu.memory_space<vmem>>, vector<1x1x256x256xf32>,
      %72 = tpu.transpose %59, [1, 0] : vector<256x512xf32> -> vector<512x256xf32>
      %c0_29 = arith.constant 0 : index
      %c0_30 = arith.constant 0 : index
      %73 = vector.load %arg6[%c0_29, %c0_30] : memref<512x256xf32, #tpu.memory_space<vmem>>, vector<512x256xf32>
      tpu.vector_store %arg6[%c0_29, %c0_30], %72 {strides = array<i32>} : memref<512x256xf32, #tpu.memory_space<vmem>>, vector<512x256xf32>,
    } else {
    }
    %c0 = arith.constant 0 : index
    %c0_1 = arith.constant 0 : index
    %c0_2 = arith.constant 0 : index
    %3 = vector.load %arg3[%c0, %c0_1, %c0_2] : memref<1x2x128xf32, #tpu.memory_space<vmem>>, vector<1x2x128xf32>
    %4 = vector.shape_cast %3 : vector<1x2x128xf32> to vector<2x128xf32>
    %cst = arith.constant 2.560000e+02 : f32
    %5 = vector.broadcast %cst : f32 to vector<2x128xf32>
    %6 = arith.mulf %4, %5 : vector<2x128xf32>
    %7 = math.roundeven %6 : vector<2x128xf32>
    %cst_3 = arith.constant 0.000000e+00 : f32
    %cst_4 = arith.constant 2.550000e+02 : f32
    %8 = vector.broadcast %cst_3 : f32 to vector<2x128xf32>
    %9 = arith.maximumf %8, %7 : vector<2x128xf32>
    %10 = vector.broadcast %cst_4 : f32 to vector<2x128xf32>
    %11 = arith.minimumf %10, %9 : vector<2x128xf32>
    %12 = arith.fptosi %11 : vector<2x128xf32> to vector<2x128xi32>
    %13 = vector.extract_strided_slice %12 {offsets = [0, 0], sizes = [1, 128], strides = [1, 1]} : vector<2x128xi32> to vector<1x128xi32>
    %14 = vector.extract_strided_slice %12 {offsets = [1, 0], sizes = [1, 128], strides = [1, 1]} : vector<2x128xi32> to vector<1x128xi32>
    %15 = tpu.iota {dimensions = array<i32: 0>} : vector<256x128xi32>
    %16 = vector.broadcast %13 : vector<1x128xi32> to vector<256x128xi32>
    %17 = arith.cmpi eq, %15, %16 : vector<256x128xi32>
    %18 = arith.extui %17 : vector<256x128xi1> to vector<256x128xi32>
    %19 = arith.sitofp %18 : vector<256x128xi32> to vector<256x128xf32>
    %c0_5 = arith.constant 0 : index
    %c0_6 = arith.constant 0 : index
    %20 = vector.load %arg6[%c0_5, %c0_6] : memref<512x256xf32, #tpu.memory_space<vmem>>, vector<512x256xf32>
    %cst_7 = arith.constant dense<0.000000e+00> : vector<512x128xf32>
    %21 = tpu.matmul %20, %19, %cst_7 {dimension_numbers = #tpu.dot_dimension_numbers<[1], [0], [0], [1], [0, 0, 1, 1], [], []>} : vector<512x256xf32>, vector<256x128xf32>, vector<512x128xf32> -> vector<512x128xf32>
    %22 = tpu.iota {dimensions = array<i32: 0>} : vector<256x128xi32>
    %23 = vector.broadcast %14 : vector<1x128xi32> to vector<256x128xi32>
    %24 = arith.cmpi eq, %22, %23 : vector<256x128xi32>
    %25 = arith.extui %24 : vector<256x128xi1> to vector<256x128xi32>
    %26 = arith.sitofp %25 : vector<256x128xi32> to vector<256x128xf32>
    %27 = vector.extract_strided_slice %21 {offsets = [0, 0], sizes = [256, 128], strides = [1, 1]} : vector<512x128xf32> to vector<256x128xf32>
    %28 = arith.mulf %27, %26 : vector<256x128xf32>
    %cst_8 = arith.constant dense<0.000000e+00> : vector<128xf32>
    %29 = vector.multi_reduction <add>, %28, %cst_8 [0] : vector<256x128xf32> to vector<128xf32>
    %30 = vector.shape_cast %29 : vector<128xf32> to vector<1x128xf32>
    %31 = vector.extract_strided_slice %21 {offsets = [256, 0], sizes = [256, 128], strides = [1, 1]} : vector<512x128xf32> to vector<256x128xf32>
    %32 = arith.mulf %31, %26 : vector<256x128xf32>
    %cst_9 = arith.constant dense<0.000000e+00> : vector<128xf32>
    %33 = vector.multi_reduction <add>, %32, %cst_9 [0] : vector<256x128xf32> to vector<128xf32>
    %34 = vector.shape_cast %33 : vector<128xf32> to vector<1x128xf32>
    %35 = tpu.concatenate %30, %34 in 0 : vector<1x128xf32>, vector<1x128xf32> -> vector<2x128xf32>
    %cst_10 = arith.constant 3.906250e-03 : f32
    %36 = vector.broadcast %cst_10 : f32 to vector<2x128xf32>
    %37 = arith.mulf %35, %36 : vector<2x128xf32>
    %c0_11 = arith.constant 0 : index
    %c0_12 = arith.constant 0 : index
    %c0_13 = arith.constant 0 : index
    %38 = vector.load %arg4[%c0_11, %c0_12, %c0_13] : memref<1x2x128xf32, #tpu.memory_space<vmem>>, vector<1x2x128xf32>
    %39 = vector.shape_cast %38 : vector<1x2x128xf32> to vector<2x128xf32>
    %40 = vector.shape_cast %37 : vector<2x128xf32> to vector<1x2x128xf32>
    tpu.vector_store %arg4[%c0_11, %c0_12, %c0_13], %40 {strides = array<i32>} : memref<1x2x128xf32, #tpu.memory_space<vmem>>, vector<1x2x128xf32>,
    return
  }
  func.func @transform_0(%arg0: i32, %arg1: i32) -> (i32, i32, i32) {
    %c0_i32 = arith.constant 0 : i32
    %c0_i32_0 = arith.constant 0 : i32
    %c0_i32_1 = arith.constant 0 : i32
    return %arg0, %c0_i32, %c0_i32_0 : i32, i32, i32
  }
  func.func @transform_1(%arg0: i32, %arg1: i32) -> (i32, i32, i32) {
    %c0_i32 = arith.constant 0 : i32
    %c0_i32_0 = arith.constant 0 : i32
    return %arg0, %c0_i32, %arg1 : i32, i32, i32
  }
  func.func @transform_2(%arg0: i32, %arg1: i32) -> (i32, i32, i32) {
    %c0_i32 = arith.constant 0 : i32
    %c0_i32_0 = arith.constant 0 : i32
    return %arg0, %c0_i32, %arg1 : i32, i32, i32
  }
  func.func @transform_3(%arg0: i32, %arg1: i32) -> (i32, i32, i32, i32) {
    %c0_i32 = arith.constant 0 : i32
    %c0_i32_0 = arith.constant 0 : i32
    %c0_i32_1 = arith.constant 0 : i32
    %c0_i32_2 = arith.constant 0 : i32
    return %arg0, %c0_i32, %c0_i32_0, %c0_i32_1 : i32, i32, i32, i32
  }
}

</mosaic_0001>

<bundles_post_ra>
// kernel: tpu_custom_call.1
= control target key start
LH: loop header
LB: loop body
LE: loop exit
PB: predicated region body
PF: predicated region fallthrough
CT: control target
= control target key end

     0   :  { %9 = vsyncpa [#allocation4], 0  ;;  %s8567_s0 = inlined_call_operand.hbm [shape: f32[2,256,512], index: 0, kind: input, shape index: {}]   ;;  %s8568_s1 = inlined_call_operand.hbm [shape: f32[2,2,128], index: 1, kind: input, shape index: {}]   ;;  %s8569_s2 = inlined_call_operand.hbm [shape: f32[2,2,128], index: 2, kind: output, shape index: {0}]   ;;  %s8570_s3 = inlined_call_operand.hbm [shape: f32[2,2,256,256], index: 3, kind: output, shape index: {1}]  }
   0x1   :  { %11 = vsyncpa [#allocation4 + $0x1], 0 }
   0x2   :  { %12 = vsyncpa [#allocation7], 0 }
   0x3   :  { %14 = vsyncpa [#allocation7 + $0x1], 0 }
   0x4   :  { %15 = vsyncpa [#allocation5], 0 }
   0x5   :  { %17 = vsyncpa [#allocation5 + $0x1], 0 }
   0x6   :  { %18 = vsyncpa [#allocation10], 0 }
   0x7   :  { %20 = vsyncpa [#allocation10 + $0x1], 0  ;;  %s5919_s12 = smov 0   ;;  %s5921_s13 = smov 0  }
   0x8   :  { %s5923_s14 = smov 0   ;;  %s5925_s15 = smov 0  }
   0x9   :  { %s5927_s16 = smov 0   ;;  %s5929_s17 = smov 0  }
   0xa LB: > { %s3980_s18 = sadd.s32 4294967295, %s5886_s17   ;;  %s3981_s19 = sadd.s32 4294967294, %s5886_s17   ;;  %s5886_s17 = sphi %s5929_s17, %s26_s17   ;;  %s5882_s16 = sphi %s5927_s16, %s8905_s16   ;;  %s5878_s15 = sphi %s5925_s15, %s8904_s15   ;;  %s5874_s14 = sphi %s5923_s14, %s8903_s14   ;;  %s5870_s13 = sphi %s5921_s13, %s8902_s13   ;;  %s5866_s12 = sphi %s5919_s12, %s8901_s12  }
   0xb   : > { %s38_s20 = sadd.s32 1, %s5882_s16  ;;  %s45_s21 = sadd.s32 1, %s5874_s14 }
   0xc   : > { %p40_p0 = scmp.ge.s32.totalorder %s38_s20, 2  ;;  %p52_p1 = scmp.ne.s32.totalorder %s5874_s14, %s5870_s13 }
   0xd   : > { %p53_p2 = scmp.eq.s32.totalorder %s5886_s17, 0  ;;  %p58_p3 = scmp.ne.s32.totalorder %s5870_s13, %s5866_s12 }
   0xe   : > { %s8907_s20 = smov (%p40_p0, %s38_s20), 0  ;;  %p59_p5 = scmp.eq.s32.totalorder %s3980_s18, 0 }
   0xf   : > { %p5960_p4 = por %p53_p2, %p52_p1  ;;  %s42_s23 = ssub.s32 %s5882_s16, %s8907_s20 }
  0x10   : > { %p112_p6 = scmp.eq.s32.totalorder %s3980_s18, 1  ;;  %p43_p7 = scmp.eq.s32.totalorder %s42_s23, 0 }
  0x11   : > { %p5966_p8 = por %p59_p5, %p58_p3  ;;  %p118_p10 = scmp.eq.s32.totalorder %s3981_s19, 1 }
  0x12   : > { %p5970_p9 = por %p112_p6, %p52_p1  ;;  %p5138_p13 = scmp.lt.s32.totalorder %s5886_s17, 2 }
  0x13   : > { %s8703_s24 = scalar_select %p5966_p8, 1, 0 }
  0x14   : > { %s8704_s25 = scalar_select %p5970_p9, 1, 0 }
  0x15   : > { %s5975_s26 = scalar_select %p43_p7, %s5874_s14, %s45_s21  }
  0x16   : > { %p5977_p11 = por %p118_p10, %p58_p3  ;;  %s5984_s28 = sand.u32 1, %s5874_s14  }
  0x17   : > { %s3984_s29 = sshll.u32 %s5984_s28, 10  ;;  %s4679_s30 = sshll.u32 %s5882_s16, 14 }
  0x18   : > { %s8705_s27 = scalar_select %p5977_p11, 1, 0 }
  0x19   : > { %s5991_s6 = scalar_lea.hbm %s8567_s0, %s4679_s30  ;;  %s168_s7 = scalar_lea.vmem [#allocation3], %s3984_s29 }
  0x1a   : > { %s175_s8 = sshll.u32 %s168_s7, 4  ;;  %p5997_p0 = pnand %p5138_p13, %p5960_p4  ;;  %s5993_s8 = int_to_ptr.vmem [resolvable:$true] %s175_s8 }
  0x1b   : > { %s165_s10 = scalar_lea.sflag [#allocation4], %s5984_s28  ;;  %s5708_s11 = scalar_lea.hbm %s5991_s6, 16384 }
  0x1c   : > { %p5709_p2 = scmp.ne.s32.totalorder %s5991_s6, %s5708_s11  ;;  %p5710_p3 = pneg %p5997_p0 }
  0x1d   : > { %s5713_s21 = scalar_lea.hbm %s8567_s0, 32768  ;;  %p5714_p4 = scmp.lt.u32.totalorder %s5991_s6, %s8567_s0 }
  0x1e   : > { %p5711_p5 = pnand %p5710_p3, %p5709_p2  ;;  %p5715_p7 = scmp.lt.u32.totalorder %s5713_s21, %s5708_s11 }
  0x1f   : > { %p5717_p13 = scmp.lt.u32.totalorder %s5708_s11, %s5991_s6 }
  0x20   : > { %p5712_p6 = pneg %p5711_p5  ;;  %p5716_p10 = por %p5715_p7, %p5714_p4 }
  0x22   : > { %p5718_p12 = por %p5717_p13, %p5716_p10 }
  0x24   : > { %p5719_p1 = pnand %p5718_p12, %p5712_p6 }
  0x26   : > { %5722 = shalt.err (!%p5719_p1)
}
  0x27   : > { %s5723_s29 = scalar_lea.vmem %s5993_s8, 16384  ;;  %s5888_s30 = smov [#allocation3]  }
  0x28   : > { %p5724_p2 = scmp.ne.s32.totalorder %s5993_s8, %s5723_s29  ;;  %s5728_s4 = sshll.u32 %s5888_s30, 4  ;;  %s5729_s4 = int_to_ptr.vmem [resolvable:$false] %s5728_s4 }
  0x29   : > { %s5730_s5 = scalar_lea.vmem %s5729_s4, 32768  ;;  %p5731_p9 = scmp.lt.s32.totalorder %s5993_s8, %s5729_s4 }
  0x2a   : > { %p5726_p5 = pnand %p5724_p2, %p5710_p3  ;;  %p5732_p4 = scmp.lt.s32.totalorder %s5730_s5, %s5723_s29 }
  0x2c   : > { %p5727_p11 = pneg %p5726_p5  ;;  %p5733_p7 = por %p5732_p4, %p5731_p9 }
  0x2e   : > { %p5734_p10 = pnand %p5733_p7, %p5727_p11 }
  0x30   : > { %5737 = shalt.err (!%p5734_p10)
}
  0x31   : > { %s5889_s7 = smov 512   ;;  %s5890_s11 = smov 32  }
  0x32   : > { %5127 = dma.hbm_to_vmem [thread:$0]  (!%p5997_p0), %s5991_s6, 16384, %s5993_s8, %s165_s10, %s5889_s7, %s5889_s7, %s5890_s11  }
  0x33   : > { %p202_p12 = scmp.lt.s32.totalorder %s5886_s17, 3  ;;  %s3987_s18 = sshll.u32 %s5984_s28, 1 }
  0x34   : > { %s3988_s19 = sshll.u32 %s5882_s16, 5  ;;  %p8707_p9 = scmp.ge.s32.totalorder %s5886_s17, 1 }
  0x35   : > { %s6042_s29 = scalar_lea.hbm %s8568_s1, %s3988_s19  ;;  %s189_s30 = scalar_lea.vmem [#allocation6], %s3987_s18 }
  0x36   : > { %p6035_p11 = pnand %p8707_p9, %p202_p12  ;;  %s197_s4 = sshll.u32 %s189_s30, 4  ;;  %s198_s4 = int_to_ptr.vmem [resolvable:$true] %s197_s4 }
  0x37   : > { %s186_s6 = scalar_lea.sflag [#allocation7], %s5984_s28  ;;  %s5738_s8 = scalar_lea.hbm %s6042_s29, 32 }
  0x38   : > { %s8708_s21 = scalar_select %p6035_p11, 1, 0 }
  0x39   : > { %p5739_p1 = scmp.ne.s32.totalorder %s6042_s29, %s5738_s8  ;;  %s5743_s7 = scalar_lea.hbm %s8568_s1, 64 }
  0x3a   : > { %p5744_p2 = scmp.lt.u32.totalorder %s6042_s29, %s8568_s1  ;;  %p5745_p5 = scmp.lt.u32.totalorder %s5743_s7, %s5738_s8 }
  0x3b   : > { %p5741_p6 = pnand %p5739_p1, %p5710_p3  ;;  %p5747_p7 = scmp.lt.u32.totalorder %s5738_s8, %s6042_s29 }
  0x3c   : > { %p5746_p4 = por %p5745_p5, %p5744_p2 }
  0x3d   : > { %p5742_p13 = pneg %p5741_p6 }
  0x3e   : > { %p5748_p10 = por %p5747_p7, %p5746_p4 }
  0x40   : > { %p5749_p12 = pnand %p5748_p10, %p5742_p13 }
  0x42   : > { %5752 = shalt.err (!%p5749_p12)
}
  0x43   : > { %s5753_s28 = scalar_lea.vmem %s198_s4, 32  ;;  %s5891_s18 = smov [#allocation6]  }
  0x44   : > { %p5754_p9 = scmp.ne.s32.totalorder %s198_s4, %s5753_s28  ;;  %s5758_s22 = sshll.u32 %s5891_s18, 4  ;;  %s5759_s22 = int_to_ptr.vmem [resolvable:$false] %s5758_s22 }
  0x45   : > { %s5760_s23 = scalar_lea.vmem %s5759_s22, 64  ;;  %p5761_p8 = scmp.lt.s32.totalorder %s198_s4, %s5759_s22 }
  0x46   : > { %p5756_p1 = pnand %p5754_p9, %p5710_p3  ;;  %p5762_p11 = scmp.lt.s32.totalorder %s5760_s23, %s5753_s28 }
  0x48   : > { %p5757_p6 = pneg %p5756_p1  ;;  %p5763_p2 = por %p5762_p11, %p5761_p8 }
  0x4a   : > { %p5764_p5 = pnand %p5763_p2, %p5757_p6 }
  0x4c   : > { %5767 = shalt.err (!%p5764_p5)
}
  0x4d   : > { %5130 = dma.hbm_to_vmem [thread:$0]  (!%p5997_p0), %s6042_s29, 32, %s198_s4, %s186_s6  }
  0x4e   : > { %p8709_p13 = scmp.ne.s32.totalorder %s8708_s21, 0 }
  0x50   : > { %206 = sbr.rel (%p8709_p13) target bundleno = 1202 (0x4b2), region = 28 }
  0x57   : > { %s6067_s30 = sand.u32 1, %s5870_s13   ;;  %p8710_p8 = scmp.ne.s32.totalorder %s8703_s24, 0 }
  0x58   : > { %s3990_s8 = sshll.u32 %s6067_s30, 10  ;;  %s209_s10 = scalar_lea.sflag [#allocation4], %s6067_s30 }
  0x59   : > { %s6073_s5 = scalar_lea.vmem [#allocation3], %s3990_s8 }
  0x5a   : > { %5849 = dma.done.wait (%p8710_p8), %s209_s10, 16384  }
  0x5b   : > { %5851 = vsyncadd (%p8710_p8), %s209_s10, 4294950912  ;;  %s3991_s9 = sshll.u32 %s6067_s30, 1  ;;  %s218_s21 = scalar_lea.sflag [#allocation7], %s6067_s30  ;;  %v386_v0 = vlaneseq }
  0x5c   : > { %s6083_s29 = scalar_lea.vmem [#allocation6], %s3991_s9 }
  0x5d   : > { %5853 = dma.done.wait (%p8710_p8), %s218_s21, 32  }
  0x5e   : > { %5855 = vsyncadd (%p8710_p8), %s218_s21, 4294967264  ;;  %v6089_v1 = vshrl.u32 %v386_v0, 7  ;;  %v6091_v2 = vand.u32 127, %v386_v0  ;;  %v259_v14 = vld [vmem:[%s6073_s5 + $0x8] sm:$0xff]  ;;  %v261_v15 = vld [vmem:[%s6073_s5 + $0x18] sm:$0xff]  ;;  %s7398_s24 = scalar_lea.vmem [#allocation9], %s3990_s8 }
  0x5f   : > { %1310 = vmatprep.mubr.f32.mxu1 %v259_v14  ;;  %1567 = vmatprep.mubr.f32.mxu0 %v261_v15  ;;  %v8593_v17 = vmov 1.0|1.0   ;;  %s4680_s4 = sshll.u32 %s5878_s15, 14  ;;  %s3842_s6 = sshll.u32 %s7398_s24, 4  ;;  %s8457_s6 = int_to_ptr.vmem [resolvable:$true] %s3842_s6 }
  0x60   : > { %8711 = vst [vmem:[#allocation15_spill] sm:$0xff] %v6089_v1  ;;  %v6094_v3 = vadd.s32 8, %v6089_v1  ;;  %v453_v4 = vadd.s32 128, %v6091_v2  ;;  %v6098_v5 = vmul.u32 2, %v6091_v2  ;;  %v6101_v6 = vadd.s32 256, %v6089_v1  ;;  %s8455_s19 = scalar_lea.hbm %s8570_s3, %s4680_s4  ;;  %s3815_s28 = scalar_lea.sflag [#allocation10], %s6067_s30 }
  0x61   : > { %v6104_v7 = vadd.s32 264, %v6089_v1  ;;  %v6107_v8 = vadd.s32 16, %v6089_v1  ;;  %v6110_v9 = vadd.s32 24, %v6089_v1  ;;  %v6113_v10 = vadd.s32 272, %v6089_v1  ;;  %s5768_s18 = scalar_lea.vmem %s8457_s6, 16384  ;;  %p8898_p3 = scmp.ne.s32.totalorder %s8704_s25, 0 }
  0x62   : > { %8712 = vst [vmem:[#allocation16_spill] sm:$0xff] %v6094_v3  ;;  %v6115_v11 = vmul.u32 2, %v453_v4  ;;  %vm478_vm0 = vcmp.eq.s32.totalorder %v6089_v1, %v6098_v5  ;;  %vm482_vm1 = vcmp.eq.s32.totalorder %v6094_v3, %v6098_v5  ;;  %vm606_vm2 = vcmp.eq.s32.totalorder %v6101_v6, %v6098_v5  ;;  %p5769_p0 = scmp.ne.s32.totalorder %s8457_s6, %s5768_s18  ;;  %s5895_s22 = smov [#allocation9]  }
  0x63   : > { %8713 = vst [vmem:[#allocation17_spill] sm:$0xff] %v6107_v8  ;;  %8714 = vst [vmem:[#allocation18_spill] sm:$0xff] %v6110_v9  ;;  %vm610_vm4 = vcmp.eq.s32.totalorder %v6104_v7, %v6098_v5  ;;  %v6130_v13 = vadd.s32 280, %v6089_v1  ;;  %v6160_v18 = vadd.s32 32, %v6089_v1  ;;  %v6163_v19 = vadd.s32 40, %v6089_v1  ;;  %s5772_s23 = sshll.u32 %s5895_s22, 4  ;;  %s5773_s23 = int_to_ptr.vmem [resolvable:$false] %s5772_s23 }
  0x64   : > { %vm6123_vm3 = vmpackc.low %vm482_vm1, %vm478_vm0  ;;  %vm479_vm5 = vcmp.eq.s32.totalorder %v6089_v1, %v6115_v11  ;;  %vm483_vm6 = vcmp.eq.s32.totalorder %v6094_v3, %v6115_v11  ;;  %vm607_vm7 = vcmp.eq.s32.totalorder %v6101_v6, %v6115_v11  ;;  %vm611_vm8 = vcmp.eq.s32.totalorder %v6104_v7, %v6115_v11  ;;  %p5770_p11 = pnand %p5769_p0, %p8898_p3  ;;  %s5774_s8 = scalar_lea.vmem %s5773_s23, 32768 }
  0x65   : > { %vm6142_vm9 = vmpackc.low %vm610_vm4, %vm606_vm2  ;;  %vm487_vm11 = vcmp.eq.s32.totalorder %v6107_v8, %v6115_v11  ;;  %vm491_vm12 = vcmp.eq.s32.totalorder %v6110_v9, %v6115_v11  ;;  %vm615_vm13 = vcmp.eq.s32.totalorder %v6113_v10, %v6115_v11  ;;  %vm619_vm14 = vcmp.eq.s32.totalorder %v6130_v13, %v6115_v11  ;;  %8719 = vst [vmem:[#allocation19_spill] sm:$0xff] %v6160_v18  ;;  %p5775_p7 = scmp.lt.s32.totalorder %s8457_s6, %s5773_s23  ;;  %p5776_p10 = scmp.lt.s32.totalorder %s5774_s8, %s5768_s18 }
  0x66   : > { %vm4681_vm10 = vmpackc.low %vm483_vm6, %vm479_vm5  ;;  %vm486_vm0 = vcmp.eq.s32.totalorder %v6107_v8, %v6098_v5  ;;  %vm490_vm1 = vcmp.eq.s32.totalorder %v6110_v9, %v6098_v5  ;;  %8720 = vst [vmem:[#allocation20_spill] sm:$0xff] %v6163_v19  ;;  %vm614_vm4 = vcmp.eq.s32.totalorder %v6113_v10, %v6098_v5  ;;  %vm618_vm5 = vcmp.eq.s32.totalorder %v6130_v13, %v6098_v5  ;;  %p5771_p4 = pneg %p5770_p11 }
  0x67   : > { %4682 = vmatprep.subr.msk.bf16.mxu1 %vm4681_vm10, %v8593_v17  ;;  %vm4745_vm15 = vmpackc.low %vm611_vm8, %vm607_vm7  ;;  %v6174_v20 = vadd.s32 288, %v6089_v1  ;;  %v6177_v21 = vadd.s32 296, %v6089_v1  ;;  %vm495_vm6 = vcmp.eq.s32.totalorder %v6160_v18, %v6115_v11  ;;  %vm499_vm7 = vcmp.eq.s32.totalorder %v6163_v19, %v6115_v11  ;;  %p5777_p12 = por %p5776_p10, %p5775_p7 }
  0x68   : > { %4746 = vmatprep.subr.msk.bf16.mxu0 %vm4745_vm15, %v8593_v17  ;;  %4684 = vmatpush1.bf16.msk.msra.mxu1 %vm6123_vm3, %v8593_v17  ;;  %vm4685_vm2 = vmpackc.low %vm491_vm12, %vm487_vm11  ;;  %v6194_v22 = vadd.s32 48, %v6089_v1  ;;  %v6197_v23 = vadd.s32 56, %v6089_v1  ;;  %v6211_v24 = vadd.s32 304, %v6089_v1  ;;  %vm494_vm12 = vcmp.eq.s32.totalorder %v6160_v18, %v6098_v5 }
  0x69   : > { %4748 = vmatpush1.bf16.msk.msra.mxu0 %vm6142_vm9, %v8593_v17  ;;  %4686 = vmatprep.subr.msk.bf16.mxu1 %vm4685_vm2, %v8593_v17  ;;  %vm4749_vm3 = vmpackc.low %vm619_vm14, %vm615_vm13  ;;  %vm623_vm9 = vcmp.eq.s32.totalorder %v6174_v20, %v6115_v11  ;;  %vm627_vm10 = vcmp.eq.s32.totalorder %v6177_v21, %v6115_v11  ;;  %vm498_vm13 = vcmp.eq.s32.totalorder %v6163_v19, %v6098_v5  ;;  %v6224_v25 = vadd.s32 312, %v6089_v1  ;;  %p5778_p9 = pnand %p5777_p12, %p5771_p4 }
  0x6a   : > { %8721 = vst [vmem:[#allocation21_spill] sm:$0xff] %v6194_v22  ;;  %8722 = vst [vmem:[#allocation22_spill] sm:$0xff] %v6197_v23  ;;  %4750 = vmatprep.subr.msk.bf16.mxu0 %vm4749_vm3, %v8593_v17  ;;  %vm622_vm15 = vcmp.eq.s32.totalorder %v6174_v20, %v6098_v5  ;;  %vm503_vm2 = vcmp.eq.s32.totalorder %v6194_v22, %v6115_v11  ;;  %v6238_v26 = vadd.s32 64, %v6089_v1  ;;  %v6241_v27 = vadd.s32 72, %v6089_v1 }
  0x6b   : > { %vm4687_vm8 = vmpackc.low %vm490_vm1, %vm486_vm0  ;;  %vm626_vm0 = vcmp.eq.s32.totalorder %v6177_v21, %v6098_v5  ;;  %vm631_vm3 = vcmp.eq.s32.totalorder %v6211_v24, %v6115_v11  ;;  %v6252_v28 = vadd.s32 320, %v6089_v1  ;;  %v6255_v29 = vadd.s32 328, %v6089_v1 }
  0x6c   : > { %vm4751_vm11 = vmpackc.low %vm618_vm5, %vm614_vm4  ;;  %4688 = vmatpush1.bf16.msk.msra.mxu1 %vm4687_vm8, %v8593_v17  ;;  %vm507_vm4 = vcmp.eq.s32.totalorder %v6197_v23, %v6115_v11  ;;  %8723 = vst [vmem:[#allocation23_spill] sm:$0xff] %v6238_v26  ;;  %vm502_vm8 = vcmp.eq.s32.totalorder %v6194_v22, %v6098_v5  ;;  %v6276_v30 = vadd.s32 80, %v6089_v1  ;;  %v6279_v31 = vadd.s32 88, %v6089_v1 }
  0x6d   : > { %vm4689_vm14 = vmpackc.low %vm499_vm7, %vm495_vm6  ;;  %4752 = vmatpush1.bf16.msk.msra.mxu0 %vm4751_vm11, %v8593_v17  ;;  %8724 = vst [vmem:[#allocation24_spill] sm:$0xff] %v6241_v27  ;;  %vm635_vm6 = vcmp.eq.s32.totalorder %v6224_v25, %v6115_v11  ;;  %vm630_vm11 = vcmp.eq.s32.totalorder %v6211_v24, %v6098_v5  ;;  %v6287_v32 = vadd.s32 336, %v6089_v1  ;;  %v6290_v33 = vadd.s32 344, %v6089_v1 }
  0x6e   : > { %4690 = vmatprep.subr.msk.bf16.mxu1 %vm4689_vm14, %v8593_v17  ;;  %vm4753_vm1 = vmpackc.low %vm627_vm10, %vm623_vm9  ;;  %vm506_vm9 = vcmp.eq.s32.totalorder %v6197_v23, %v6098_v5  ;;  %vm511_vm14 = vcmp.eq.s32.totalorder %v6238_v26, %v6115_v11  ;;  %8725 = vst [vmem:[#allocation25_spill] sm:$0xff] %v6276_v30  ;;  %v6311_v34 = vadd.s32 96, %v6089_v1  ;;  %v6314_v35 = vadd.s32 104, %v6089_v1 }
  0x6f   : > { %4754 = vmatprep.subr.msk.bf16.mxu0 %vm4753_vm1, %v8593_v17  ;;  %vm4691_vm5 = vmpackc.low %vm498_vm13, %vm494_vm12  ;;  %vm634_vm12 = vcmp.eq.s32.totalorder %v6224_v25, %v6098_v5  ;;  %8726 = vst [vmem:[#allocation26_spill] sm:$0xff] %v6279_v31  ;;  %vm639_vm1 = vcmp.eq.s32.totalorder %v6252_v28, %v6115_v11  ;;  %v6322_v36 = vadd.s32 352, %v6089_v1  ;;  %v6325_v37 = vadd.s32 360, %v6089_v1 }
  0x70   : > { %vm4755_vm7 = vmpackc.low %vm626_vm0, %vm622_vm15  ;;  %4692 = vmatpush1.bf16.msk.msra.mxu1 %vm4691_vm5, %v8593_v17  ;;  %vm515_vm15 = vcmp.eq.s32.totalorder %v6241_v27, %v6115_v11  ;;  %vm510_vm5 = vcmp.eq.s32.totalorder %v6238_v26, %v6098_v5  ;;  %8727 = vst [vmem:[#allocation27_spill] sm:$0xff] %v6311_v34  ;;  %v6346_v38 = vadd.s32 112, %v6089_v1  ;;  %v6349_v39 = vadd.s32 120, %v6089_v1 }
  0x71   : > { %vm4693_vm10 = vmpackc.low %vm507_vm4, %vm503_vm2  ;;  %4756 = vmatpush1.bf16.msk.msra.mxu0 %vm4755_vm7, %v8593_v17  ;;  %vm643_vm2 = vcmp.eq.s32.totalorder %v6255_v29, %v6115_v11  ;;  %vm638_vm7 = vcmp.eq.s32.totalorder %v6252_v28, %v6098_v5  ;;  %8728 = vst [vmem:[#allocation28_spill] sm:$0xff] %v6314_v35  ;;  %v6357_v40 = vadd.s32 368, %v6089_v1  ;;  %v6360_v41 = vadd.s32 376, %v6089_v1 }
  0x72   : > { %4694 = vmatprep.subr.msk.bf16.mxu1 %vm4693_vm10, %v8593_v17  ;;  %vm4757_vm13 = vmpackc.low %vm635_vm6, %vm631_vm3  ;;  %vm514_vm3 = vcmp.eq.s32.totalorder %v6241_v27, %v6098_v5  ;;  %vm519_vm10 = vcmp.eq.s32.totalorder %v6276_v30, %v6115_v11  ;;  %8729 = vst [vmem:[#allocation29_spill] sm:$0xff] %v6346_v38  ;;  %v6381_v42 = vadd.s32 128, %v6089_v1  ;;  %v6384_v43 = vadd.s32 136, %v6089_v1 }
  0x73   : > { %4758 = vmatprep.subr.msk.bf16.mxu0 %vm4757_vm13, %v8593_v17  ;;  %vm4695_vm0 = vmpackc.low %vm506_vm9, %vm502_vm8  ;;  %vm642_vm8 = vcmp.eq.s32.totalorder %v6255_v29, %v6098_v5  ;;  %vm647_vm13 = vcmp.eq.s32.totalorder %v6287_v32, %v6115_v11  ;;  %8730 = vst [vmem:[#allocation30_spill] sm:$0xff] %v6349_v39  ;;  %v6392_v44 = vadd.s32 384, %v6089_v1  ;;  %v6395_v45 = vadd.s32 392, %v6089_v1 }
  0x74   : > { %vm4759_vm4 = vmpackc.low %vm634_vm12, %vm630_vm11  ;;  %4696 = vmatpush1.bf16.msk.msra.mxu1 %vm4695_vm0, %v8593_v17  ;;  %vm523_vm11 = vcmp.eq.s32.totalorder %v6279_v31, %v6115_v11  ;;  %vm518_vm0 = vcmp.eq.s32.totalorder %v6276_v30, %v6098_v5  ;;  %8731 = vst [vmem:[#allocation31_spill] sm:$0xff] %v6381_v42  ;;  %v6416_v46 = vadd.s32 144, %v6089_v1  ;;  %v6419_v47 = vadd.s32 152, %v6089_v1 }
  0x75   : > { %vm4697_vm6 = vmpackc.low %vm515_vm15, %vm511_vm14  ;;  %4760 = vmatpush1.bf16.msk.msra.mxu0 %vm4759_vm4, %v8593_v17  ;;  %vm651_vm14 = vcmp.eq.s32.totalorder %v6290_v33, %v6115_v11  ;;  %vm646_vm4 = vcmp.eq.s32.totalorder %v6287_v32, %v6098_v5  ;;  %8732 = vst [vmem:[#allocation32_spill] sm:$0xff] %v6384_v43  ;;  %v6427_v48 = vadd.s32 400, %v6089_v1  ;;  %v6430_v49 = vadd.s32 408, %v6089_v1 }
  0x76   : > { %4698 = vmatprep.subr.msk.bf16.mxu1 %vm4697_vm6, %v8593_v17  ;;  %vm4761_vm9 = vmpackc.low %vm643_vm2, %vm639_vm1  ;;  %vm522_vm1 = vcmp.eq.s32.totalorder %v6279_v31, %v6098_v5  ;;  %vm527_vm6 = vcmp.eq.s32.totalorder %v6311_v34, %v6115_v11  ;;  %8733 = vst [vmem:[#allocation33_spill] sm:$0xff] %v6416_v46  ;;  %v6451_v50 = vadd.s32 160, %v6089_v1  ;;  %v6454_v51 = vadd.s32 168, %v6089_v1 }
  0x77   : > { %4762 = vmatprep.subr.msk.bf16.mxu0 %vm4761_vm9, %v8593_v17  ;;  %vm4699_vm12 = vmpackc.low %vm514_vm3, %vm510_vm5  ;;  %vm650_vm5 = vcmp.eq.s32.totalorder %v6290_v33, %v6098_v5  ;;  %vm655_vm9 = vcmp.eq.s32.totalorder %v6322_v36, %v6115_v11  ;;  %8734 = vst [vmem:[#allocation34_spill] sm:$0xff] %v6419_v47  ;;  %v6462_v52 = vadd.s32 416, %v6089_v1  ;;  %v6465_v53 = vadd.s32 424, %v6089_v1 }
  0x78   : > { %vm4763_vm15 = vmpackc.low %vm642_vm8, %vm638_vm7  ;;  %4700 = vmatpush1.bf16.msk.msra.mxu1 %vm4699_vm12, %v8593_v17  ;;  %vm531_vm7 = vcmp.eq.s32.totalorder %v6314_v35, %v6115_v11  ;;  %vm526_vm12 = vcmp.eq.s32.totalorder %v6311_v34, %v6098_v5  ;;  %8735 = vst [vmem:[#allocation35_spill] sm:$0xff] %v6451_v50  ;;  %v6486_v54 = vadd.s32 176, %v6089_v1  ;;  %v6489_v55 = vadd.s32 184, %v6089_v1 }
  0x79   : > { %vm4701_vm2 = vmpackc.low %vm523_vm11, %vm519_vm10  ;;  %4764 = vmatpush1.bf16.msk.msra.mxu0 %vm4763_vm15, %v8593_v17  ;;  %vm659_vm10 = vcmp.eq.s32.totalorder %v6325_v37, %v6115_v11  ;;  %vm654_vm15 = vcmp.eq.s32.totalorder %v6322_v36, %v6098_v5  ;;  %8736 = vst [vmem:[#allocation36_spill] sm:$0xff] %v6454_v51  ;;  %v6497_v56 = vadd.s32 432, %v6089_v1  ;;  %v6500_v57 = vadd.s32 440, %v6089_v1 }
  0x7a   : > { %4702 = vmatprep.subr.msk.bf16.mxu1 %vm4701_vm2, %v8593_v17  ;;  %vm4765_vm3 = vmpackc.low %vm651_vm14, %vm647_vm13  ;;  %vm530_vm13 = vcmp.eq.s32.totalorder %v6314_v35, %v6098_v5  ;;  %vm535_vm2 = vcmp.eq.s32.totalorder %v6346_v38, %v6115_v11  ;;  %8737 = vst [vmem:[#allocation37_spill] sm:$0xff] %v6465_v53  ;;  %v6515_v58 = vadd.s32 192, %v6089_v1  ;;  %v6524_v59 = vadd.s32 200, %v6089_v1 }
  0x7b   : > { %4766 = vmatprep.subr.msk.bf16.mxu0 %vm4765_vm3, %v8593_v17  ;;  %vm4703_vm8 = vmpackc.low %vm522_vm1, %vm518_vm0  ;;  %vm658_vm0 = vcmp.eq.s32.totalorder %v6325_v37, %v6098_v5  ;;  %vm663_vm3 = vcmp.eq.s32.totalorder %v6357_v40, %v6115_v11  ;;  %8738 = vst [vmem:[#allocation38_spill] sm:$0xff] %v6486_v54  ;;  %v6532_v60 = vadd.s32 448, %v6089_v1  ;;  %v6535_v61 = vadd.s32 456, %v6089_v1 }
  0x7c   : > { %vm4767_vm11 = vmpackc.low %vm650_vm5, %vm646_vm4  ;;  %4704 = vmatpush1.bf16.msk.msra.mxu1 %vm4703_vm8, %v8593_v17  ;;  %vm539_vm4 = vcmp.eq.s32.totalorder %v6349_v39, %v6115_v11  ;;  %vm534_vm8 = vcmp.eq.s32.totalorder %v6346_v38, %v6098_v5  ;;  %8739 = vst [vmem:[#allocation39_spill] sm:$0xff] %v6489_v55  ;;  %v6556_v62 = vadd.s32 208, %v6089_v1  ;;  %v6559_v63 = vadd.s32 216, %v6089_v1 }
  0x7d   : > { %vm4705_vm14 = vmpackc.low %vm531_vm7, %vm527_vm6  ;;  %4768 = vmatpush1.bf16.msk.msra.mxu0 %vm4767_vm11, %v8593_v17  ;;  %vm667_vm6 = vcmp.eq.s32.totalorder %v6360_v41, %v6115_v11  ;;  %vm662_vm11 = vcmp.eq.s32.totalorder %v6357_v40, %v6098_v5  ;;  %8740 = vst [vmem:[#allocation40_spill] sm:$0xff] %v6497_v56  ;;  %v455_v0 = vadd.s32 384, %v6091_v2  ;;  %v6571_v4 = vadd.s32 464, %v6089_v1 }
  0x7e   : > { %4706 = vmatprep.subr.msk.bf16.mxu1 %vm4705_vm14, %v8593_v17  ;;  %vm4769_vm1 = vmpackc.low %vm659_vm10, %vm655_vm9  ;;  %vm538_vm9 = vcmp.eq.s32.totalorder %v6349_v39, %v6098_v5  ;;  %vm543_vm14 = vcmp.eq.s32.totalorder %v6381_v42, %v6115_v11  ;;  %8741 = vst [vmem:[#allocation41_spill] sm:$0xff] %v6500_v57  ;;  %v6574_v12 = vadd.s32 472, %v6089_v1  ;;  %v6595_v2 = vadd.s32 224, %v6089_v1 }
  0x7f   : > { %4770 = vmatprep.subr.msk.bf16.mxu0 %vm4769_vm1, %v8593_v17  ;;  %vm4707_vm5 = vmpackc.low %vm530_vm13, %vm526_vm12  ;;  %vm666_vm12 = vcmp.eq.s32.totalorder %v6360_v41, %v6098_v5  ;;  %vm671_vm1 = vcmp.eq.s32.totalorder %v6392_v44, %v6115_v11  ;;  %8742 = vst [vmem:[#allocation42_spill] sm:$0xff] %v6515_v58  ;;  %v6604_v14 = vadd.s32 232, %v6089_v1  ;;  %v3996_v15 = vadd.s32 4294967040, %v455_v0 }
  0x80   : > { %vm4771_vm7 = vmpackc.low %vm658_vm0, %vm654_vm15  ;;  %4708 = vmatpush1.bf16.msk.msra.mxu1 %vm4707_vm5, %v8593_v17  ;;  %vm547_vm15 = vcmp.eq.s32.totalorder %v6384_v43, %v6115_v11  ;;  %vm542_vm5 = vcmp.eq.s32.totalorder %v6381_v42, %v6098_v5  ;;  %8743 = vst [vmem:[#allocation43_spill] sm:$0xff] %v6524_v59  ;;  %v6615_v16 = vadd.s32 480, %v6089_v1  ;;  %v6642_v0 = vadd.s32 240, %v6089_v1 }
  0x81   : > { %vm4709_vm10 = vmpackc.low %vm539_vm4, %vm535_vm2  ;;  %4772 = vmatpush1.bf16.msk.msra.mxu0 %vm4771_vm7, %v8593_v17  ;;  %vm675_vm2 = vcmp.eq.s32.totalorder %v6395_v45, %v6115_v11  ;;  %vm670_vm7 = vcmp.eq.s32.totalorder %v6392_v44, %v6098_v5  ;;  %8744 = vst [vmem:[#allocation44_spill] sm:$0xff] %v6532_v60 }
  0x82   : > { %4710 = vmatprep.subr.msk.bf16.mxu1 %vm4709_vm10, %v8593_v17  ;;  %vm4773_vm13 = vmpackc.low %vm667_vm6, %vm663_vm3  ;;  %vm546_vm3 = vcmp.eq.s32.totalorder %v6384_v43, %v6098_v5  ;;  %vm551_vm10 = vcmp.eq.s32.totalorder %v6416_v46, %v6115_v11  ;;  %8745 = vst [vmem:[#allocation45_spill] sm:$0xff] %v6535_v61 }
  0x83   : > { %4774 = vmatprep.subr.msk.bf16.mxu0 %vm4773_vm13, %v8593_v17  ;;  %vm4711_vm0 = vmpackc.low %vm538_vm9, %vm534_vm8  ;;  %vm674_vm8 = vcmp.eq.s32.totalorder %v6395_v45, %v6098_v5  ;;  %vm679_vm13 = vcmp.eq.s32.totalorder %v6427_v48, %v6115_v11  ;;  %8746 = vst [vmem:[#allocation46_spill] sm:$0xff] %v6556_v62 }
  0x84   : > { %vm4775_vm4 = vmpackc.low %vm666_vm12, %vm662_vm11  ;;  %4712 = vmatpush1.bf16.msk.msra.mxu1 %vm4711_vm0, %v8593_v17  ;;  %vm555_vm11 = vcmp.eq.s32.totalorder %v6419_v47, %v6115_v11  ;;  %vm550_vm0 = vcmp.eq.s32.totalorder %v6416_v46, %v6098_v5  ;;  %8747 = vst [vmem:[#allocation47_spill] sm:$0xff] %v6559_v63 }
  0x85   : > { %vm4713_vm6 = vmpackc.low %vm547_vm15, %vm543_vm14  ;;  %4776 = vmatpush1.bf16.msk.msra.mxu0 %vm4775_vm4, %v8593_v17  ;;  %vm683_vm14 = vcmp.eq.s32.totalorder %v6430_v49, %v6115_v11  ;;  %vm678_vm4 = vcmp.eq.s32.totalorder %v6427_v48, %v6098_v5  ;;  %8748 = vst [vmem:[#allocation48_spill] sm:$0xff] %v6595_v2 }
  0x86   : > { %4714 = vmatprep.subr.msk.bf16.mxu1 %vm4713_vm6, %v8593_v17  ;;  %vm4777_vm9 = vmpackc.low %vm675_vm2, %vm671_vm1  ;;  %vm554_vm1 = vcmp.eq.s32.totalorder %v6419_v47, %v6098_v5  ;;  %vm559_vm6 = vcmp.eq.s32.totalorder %v6451_v50, %v6115_v11  ;;  %8749 = vst [vmem:[#allocation49_spill] sm:$0xff] %v6604_v14 }
  0x87   : > { %4778 = vmatprep.subr.msk.bf16.mxu0 %vm4777_vm9, %v8593_v17  ;;  %vm4715_vm12 = vmpackc.low %vm546_vm3, %vm542_vm5  ;;  %vm682_vm5 = vcmp.eq.s32.totalorder %v6430_v49, %v6098_v5  ;;  %vm687_vm9 = vcmp.eq.s32.totalorder %v6462_v52, %v6115_v11  ;;  %8751 = vst [vmem:[#allocation51_spill] sm:$0xff] %v6642_v0 }
  0x88   : > { %vm4779_vm15 = vmpackc.low %vm674_vm8, %vm670_vm7  ;;  %4716 = vmatpush1.bf16.msk.msra.mxu1 %vm4715_vm12, %v8593_v17  ;;  %vm563_vm7 = vcmp.eq.s32.totalorder %v6454_v51, %v6115_v11  ;;  %vm558_vm12 = vcmp.eq.s32.totalorder %v6451_v50, %v6098_v5 }
  0x89   : > { %vm4717_vm2 = vmpackc.low %vm555_vm11, %vm551_vm10  ;;  %4780 = vmatpush1.bf16.msk.msra.mxu0 %vm4779_vm15, %v8593_v17  ;;  %vm691_vm10 = vcmp.eq.s32.totalorder %v6465_v53, %v6115_v11  ;;  %vm686_vm15 = vcmp.eq.s32.totalorder %v6462_v52, %v6098_v5 }
  0x8a   : > { %4718 = vmatprep.subr.msk.bf16.mxu1 %vm4717_vm2, %v8593_v17  ;;  %vm4781_vm3 = vmpackc.low %vm683_vm14, %vm679_vm13  ;;  %vm562_vm13 = vcmp.eq.s32.totalorder %v6454_v51, %v6098_v5  ;;  %vm567_vm2 = vcmp.eq.s32.totalorder %v6486_v54, %v6115_v11 }
  0x8b   : > { %4782 = vmatprep.subr.msk.bf16.mxu0 %vm4781_vm3, %v8593_v17  ;;  %vm4719_vm8 = vmpackc.low %vm554_vm1, %vm550_vm0  ;;  %vm690_vm0 = vcmp.eq.s32.totalorder %v6465_v53, %v6098_v5  ;;  %vm695_vm3 = vcmp.eq.s32.totalorder %v6497_v56, %v6115_v11  ;;  %v6659_v53 = vadd.s32 504, %v6089_v1 }
  0x8c   : > { %vm4783_vm11 = vmpackc.low %vm682_vm5, %vm678_vm4  ;;  %4720 = vmatpush1.bf16.msk.msra.mxu1 %vm4719_vm8, %v8593_v17  ;;  %vm571_vm4 = vcmp.eq.s32.totalorder %v6489_v55, %v6115_v11  ;;  %vm566_vm8 = vcmp.eq.s32.totalorder %v6486_v54, %v6098_v5 }
  0x8d   : > { %vm4721_vm14 = vmpackc.low %vm563_vm7, %vm559_vm6  ;;  %4784 = vmatpush1.bf16.msk.msra.mxu0 %vm4783_vm11, %v8593_v17  ;;  %vm699_vm6 = vcmp.eq.s32.totalorder %v6500_v57, %v6115_v11  ;;  %vm694_vm11 = vcmp.eq.s32.totalorder %v6497_v56, %v6098_v5  ;;  %v6656_v56 = vadd.s32 496, %v6089_v1  ;;  %8754 = vst [vmem:[#allocation54_spill] sm:$0xff] %v6659_v53 }
  0x8e   : > { %4722 = vmatprep.subr.msk.bf16.mxu1 %vm4721_vm14, %v8593_v17  ;;  %vm4785_vm1 = vmpackc.low %vm691_vm10, %vm687_vm9  ;;  %vm570_vm9 = vcmp.eq.s32.totalorder %v6489_v55, %v6098_v5 }
  0x8f   : > { %4786 = vmatprep.subr.msk.bf16.mxu0 %vm4785_vm1, %v8593_v17  ;;  %vm4723_vm5 = vmpackc.low %vm562_vm13, %vm558_vm12  ;;  %vm698_vm12 = vcmp.eq.s32.totalorder %v6500_v57, %v6098_v5  ;;  %vm575_vm13 = vcmp.eq.s32.totalorder %v6515_v58, %v6115_v11  ;;  %vm703_vm1 = vcmp.eq.s32.totalorder %v6532_v60, %v6115_v11  ;;  %v6618_v57 = vadd.s32 488, %v6089_v1  ;;  %8753 = vst [vmem:[#allocation53_spill] sm:$0xff] %v6656_v56 }
  0x90   : > { %vm4787_vm7 = vmpackc.low %vm690_vm0, %vm686_vm15  ;;  %4724 = vmatpush1.bf16.msk.msra.mxu1 %vm4723_vm5, %v8593_v17  ;;  %vm579_vm15 = vcmp.eq.s32.totalorder %v6524_v59, %v6115_v11  ;;  %vm574_vm5 = vcmp.eq.s32.totalorder %v6515_v58, %v6098_v5 }
  0x91   : > { %vm4725_vm10 = vmpackc.low %vm571_vm4, %vm567_vm2  ;;  %4788 = vmatpush1.bf16.msk.msra.mxu0 %vm4787_vm7, %v8593_v17  ;;  %vm707_vm2 = vcmp.eq.s32.totalorder %v6535_v61, %v6115_v11  ;;  %vm702_vm7 = vcmp.eq.s32.totalorder %v6532_v60, %v6098_v5  ;;  %8750 = vst [vmem:[#allocation50_spill] sm:$0xff] %v6618_v57  ;;  %v469_v60 = vmul.u32 2, %v3996_v15 }
  0x92   : > { %4726 = vmatprep.subr.msk.bf16.mxu1 %vm4725_vm10, %v8593_v17  ;;  %vm4789_vm14 = vmpackc.low %vm699_vm6, %vm695_vm3  ;;  %vm578_vm3 = vcmp.eq.s32.totalorder %v6524_v59, %v6098_v5  ;;  %vm583_vm10 = vcmp.eq.s32.totalorder %v6556_v62, %v6115_v11 }
  0x93   : > { %4790 = vmatprep.subr.msk.bf16.mxu0 %vm4789_vm14, %v8593_v17  ;;  %vm4727_vm0 = vmpackc.low %vm570_vm9, %vm566_vm8  ;;  %vm706_vm8 = vcmp.eq.s32.totalorder %v6535_v61, %v6098_v5  ;;  %vm715_vm14 = vcmp.eq.s32.totalorder %v6574_v12, %v6115_v11  ;;  %v6645_v61 = vadd.s32 248, %v6089_v1  ;;  %v6685_v15 = vadd.s32 1, %v469_v60  ;;  %v6727_v60 = vld [vmem:[%s6073_s5 + $0x28] sm:$0xff] }
  0x94   : > { %vm4791_vm4 = vmpackc.low %vm698_vm12, %vm694_vm11  ;;  %4728 = vmatpush1.bf16.msk.msra.mxu1 %vm4727_vm0, %v8593_v17  ;;  %vm587_vm11 = vcmp.eq.s32.totalorder %v6559_v63, %v6115_v11  ;;  %vm582_vm0 = vcmp.eq.s32.totalorder %v6556_v62, %v6098_v5 }
  0x95   : > { %vm4729_vm6 = vmpackc.low %vm579_vm15, %vm575_vm13  ;;  %4792 = vmatpush1.bf16.msk.msra.mxu0 %vm4791_vm4, %v8593_v17  ;;  %vm711_vm13 = vcmp.eq.s32.totalorder %v6571_v4, %v6115_v11  ;;  %vm710_vm4 = vcmp.eq.s32.totalorder %v6571_v4, %v6098_v5  ;;  %8752 = vst [vmem:[#allocation52_spill] sm:$0xff] %v6645_v61 }
  0x96   : > { %4730 = vmatprep.subr.msk.bf16.mxu1 %vm4729_vm6, %v8593_v17  ;;  %vm4793_vm9 = vmpackc.low %vm707_vm2, %vm703_vm1  ;;  %vm586_vm1 = vcmp.eq.s32.totalorder %v6559_v63, %v6098_v5 }
  0x97   : > { %4794 = vmatprep.subr.msk.bf16.mxu0 %vm4793_vm9, %v8593_v17  ;;  %vm4731_vm12 = vmpackc.low %vm578_vm3, %vm574_vm5  ;;  %vm714_vm5 = vcmp.eq.s32.totalorder %v6574_v12, %v6098_v5  ;;  %vm591_vm3 = vcmp.eq.s32.totalorder %v6595_v2, %v6115_v11  ;;  %vm719_vm9 = vcmp.eq.s32.totalorder %v6615_v16, %v6115_v11 }
  0x98   : > { %vm4795_vm15 = vmpackc.low %vm706_vm8, %vm702_vm7  ;;  %4732 = vmatpush1.bf16.msk.msra.mxu1 %vm4731_vm12, %v8593_v17  ;;  %vm595_vm7 = vcmp.eq.s32.totalorder %v6604_v14, %v6115_v11  ;;  %vm590_vm12 = vcmp.eq.s32.totalorder %v6595_v2, %v6098_v5 }
  0x99   : > { %vm4733_vm2 = vmpackc.low %vm587_vm11, %vm583_vm10  ;;  %4796 = vmatpush1.bf16.msk.msra.mxu0 %vm4795_vm15, %v8593_v17  ;;  %vm723_vm10 = vcmp.eq.s32.totalorder %v6618_v57, %v6115_v11  ;;  %vm718_vm15 = vcmp.eq.s32.totalorder %v6615_v16, %v6098_v5 }
  0x9a   : > { %4734 = vmatprep.subr.msk.bf16.mxu1 %vm4733_vm2, %v8593_v17  ;;  %vm4797_vm6 = vmpackc.low %vm715_vm14, %vm711_vm13  ;;  %vm594_vm13 = vcmp.eq.s32.totalorder %v6604_v14, %v6098_v5  ;;  %vm599_vm2 = vcmp.eq.s32.totalorder %v6642_v0, %v6115_v11 }
  0x9b   : > { %4798 = vmatprep.subr.msk.bf16.mxu0 %vm4797_vm6, %v8593_v17  ;;  %vm4735_vm8 = vmpackc.low %vm586_vm1, %vm582_vm0  ;;  %vm722_vm0 = vcmp.eq.s32.totalorder %v6618_v57, %v6098_v5  ;;  %vm731_vm6 = vcmp.eq.s32.totalorder %v6659_v53, %v6115_v11  ;;  %v6693_v57 = vadd.s32 1, %v6098_v5 }
  0x9c   : > { %vm4799_vm11 = vmpackc.low %vm714_vm5, %vm710_vm4  ;;  %4736 = vmatpush1.bf16.msk.msra.mxu1 %vm4735_vm8, %v8593_v17  ;;  %vm603_vm4 = vcmp.eq.s32.totalorder %v6645_v61, %v6115_v11  ;;  %vm598_vm8 = vcmp.eq.s32.totalorder %v6642_v0, %v6098_v5 }
  0x9d   : > { %vm4737_vm14 = vmpackc.low %vm595_vm7, %vm591_vm3  ;;  %4800 = vmatpush1.bf16.msk.msra.mxu0 %vm4799_vm11, %v8593_v17  ;;  %vm727_vm3 = vcmp.eq.s32.totalorder %v6656_v56, %v6115_v11  ;;  %vm726_vm11 = vcmp.eq.s32.totalorder %v6656_v56, %v6098_v5  ;;  %v260_v11 = vld [vmem:[%s6073_s5 + $0x10] sm:$0xff]  ;;  %v6785_v56 = vld [vmem:[%s6073_s5 + $0x88] sm:$0xff] }
  0x9e   : > { %4738 = vmatprep.subr.msk.bf16.mxu1 %vm4737_vm14, %v8593_v17  ;;  %vm4801_vm1 = vmpackc.low %vm723_vm10, %vm719_vm9  ;;  %vm602_vm9 = vcmp.eq.s32.totalorder %v6645_v61, %v6098_v5  ;;  %vm481_vm14 = vcmp.eq.s32.totalorder %v6089_v1, %v6685_v15 }
  0x9f   : > { %4802 = vmatprep.subr.msk.bf16.mxu0 %vm4801_vm1, %v8593_v17  ;;  %vm4739_vm5 = vmpackc.low %vm594_vm13, %vm590_vm12  ;;  %vm730_vm12 = vcmp.eq.s32.totalorder %v6659_v53, %v6098_v5  ;;  %vm480_vm1 = vcmp.eq.s32.totalorder %v6089_v1, %v6693_v57  ;;  %v6717_v5 = vld [vmem:[%s6073_s5] sm:$0xff]  ;;  %v6746_v53 = vld [vmem:[%s6073_s5 + $0x48] sm:$0xff] }
  0xa0   : > { %vm4803_vm7 = vmpackc.low %vm722_vm0, %vm718_vm15  ;;  %4740 = vmatpush1.bf16.msk.msra.mxu1 %vm4739_vm5, %v8593_v17  ;;  %vm485_vm15 = vcmp.eq.s32.totalorder %v6094_v3, %v6685_v15  ;;  %v6737_v1 = vld [vmem:[%s6073_s5 + $0x20] sm:$0xff] }
  0xa1   : > { %vm4741_vm10 = vmpackc.low %vm603_vm4, %vm599_vm2  ;;  %4804 = vmatpush1.bf16.msk.msra.mxu0 %vm4803_vm7, %v8593_v17  ;;  %vm484_vm2 = vcmp.eq.s32.totalorder %v6094_v3, %v6693_v57  ;;  %v265_v3 = vld [vmem:[%s6073_s5 + $0x38] sm:$0xff] }
  0xa2   : > { %4742 = vmatprep.subr.msk.bf16.mxu1 %vm4741_vm10, %v8593_v17  ;;  %vm4805_vm13 = vmpackc.low %vm731_vm6, %vm727_vm3  ;;  %vm489_vm3 = vcmp.eq.s32.totalorder %v6107_v8, %v6685_v15  ;;  %vm493_vm6 = vcmp.eq.s32.totalorder %v6110_v9, %v6685_v15  ;;  %vm492_vm10 = vcmp.eq.s32.totalorder %v6110_v9, %v6693_v57  ;;  %v8755_v9 = vmov 1.0|1.0  }
  0xa3   : > { %4806 = vmatprep.subr.msk.bf16.mxu0 %vm4805_vm13, %v8593_v17  ;;  %vm4743_vm0 = vmpackc.low %vm602_vm9, %vm598_vm8  ;;  %vm488_vm9 = vcmp.eq.s32.totalorder %v6107_v8, %v6693_v57  ;;  %v264_v8 = vld [vmem:[%s6073_s5 + $0x30] sm:$0xff] }
  0xa4   : > { %vm4807_vm4 = vmpackc.low %vm730_vm12, %vm726_vm11  ;;  %4744 = vmatpush1.bf16.msk.msra.mxu1 %vm4743_vm0, %v8593_v17  ;;  %vm497_vm11 = vcmp.eq.s32.totalorder %v6160_v18, %v6685_v15  ;;  %vm501_vm12 = vcmp.eq.s32.totalorder %v6163_v19, %v6685_v15  ;;  %vm500_vm0 = vcmp.eq.s32.totalorder %v6163_v19, %v6693_v57  ;;  %v272_v19 = vld [vmem:[%s6073_s5 + $0x70] sm:$0xff] }
  0xa5   : > { %vm4809_vm5 = vmpackc.low %vm485_vm15, %vm481_vm14  ;;  %4808 = vmatpush1.bf16.msk.msra.mxu0 %vm4807_vm4, %v8593_v17  ;;  %vm496_vm15 = vcmp.eq.s32.totalorder %v6160_v18, %v6693_v57  ;;  %v6766_v18 = vld [vmem:[%s6073_s5 + $0x68] sm:$0xff] }
  0xa6   : > { %4810 = vmatprep.subr.msk.bf16.mxu1 %vm4809_vm5, %v8593_v17  ;;  %vm4811_vm7 = vmpackc.low %vm484_vm2, %vm480_vm1  ;;  %vm505_vm1 = vcmp.eq.s32.totalorder %v6194_v22, %v6685_v15  ;;  %vm509_vm2 = vcmp.eq.s32.totalorder %v6197_v23, %v6685_v15 }
  0xa7   : > { %1311 = vmatmul.mubr.f32.vlgmr.msra.gmra.mrb[0].mxu1 %v6717_v5  ;;  %vm4813_vm8 = vmpackc.low %vm493_vm6, %vm489_vm3  ;;  %vm504_vm3 = vcmp.eq.s32.totalorder %v6194_v22, %v6693_v57  ;;  %vm508_vm6 = vcmp.eq.s32.totalorder %v6197_v23, %v6693_v57  ;;  %v276_v23 = vld [vmem:[%s6073_s5 + $0x90] sm:$0xff]  ;;  %v6805_v22 = vld [vmem:[%s6073_s5 + $0xa8] sm:$0xff] }
  0xa8   : > { %1568 = vmatmul.mubr.f32.vlgmr.msra.gmra.mrb[0].mxu0 %v260_v11  ;;  %4812 = vmatpush1.bf16.msk.msra.mxu1 %vm4811_vm7, %v8593_v17  ;;  %v269_v11 = vld [vmem:[%s6073_s5 + $0x58] sm:$0xff]  ;;  %vm4815_vm13 = vmpackc.low %vm492_vm10, %vm488_vm9  ;;  %vm513_vm7 = vcmp.eq.s32.totalorder %v6238_v26, %v6685_v15 }
  0xa9   : > { %1316 = vmatprep.mubr.f32.mxu1 %v6727_v60  ;;  %1573 = vmatprep.mubr.f32.mxu0 %v265_v3  ;;  %vm4817_vm14 = vmpackc.low %vm501_vm12, %vm497_vm11  ;;  %v6757_v3 = vld [vmem:[%s6073_s5 + $0x40] sm:$0xff]  ;;  %vm512_vm11 = vcmp.eq.s32.totalorder %v6238_v26, %v6693_v57  ;;  %vm516_vm12 = vcmp.eq.s32.totalorder %v6241_v27, %v6693_v57  ;;  %v6825_v26 = vld [vmem:[%s6073_s5 + $0xc8] sm:$0xff] }
  0xaa   : > { %4814 = vmatprep.subr.msk.bf16.mxu1 %vm4813_vm8, %v8593_v17  ;;  %v268_v17 = vld [vmem:[%s6073_s5 + $0x50] sm:$0xff]  ;;  %vm4819_vm4 = vmpackc.low %vm500_vm0, %vm496_vm15  ;;  %vm517_vm8 = vcmp.eq.s32.totalorder %v6241_v27, %v6685_v15 }
  0xab   : > { %1317 = vmatmul.mubr.f32.gmra.mrb[2].mxu1 %v6737_v1  ;;  %vm4821_vm5 = vmpackc.low %vm509_vm2, %vm505_vm1  ;;  %vm520_vm1 = vcmp.eq.s32.totalorder %v6276_v30, %v6693_v57  ;;  %vm524_vm2 = vcmp.eq.s32.totalorder %v6279_v31, %v6693_v57  ;;  %v280_v27 = vld [vmem:[%s6073_s5 + $0xb0] sm:$0xff] }
  0xac   : > { %1574 = vmatmul.mubr.f32.gmra.mrb[2].mxu0 %v264_v8  ;;  %1322 = vmatprep.mubr.f32.mxu1 %v6746_v53  ;;  %v273_v8 = vld [vmem:[%s6073_s5 + $0x78] sm:$0xff]  ;;  %vm4823_vm9 = vmpackc.low %vm508_vm6, %vm504_vm3 }
  0xad   : > { %1579 = vmatprep.mubr.f32.mxu0 %v269_v11  ;;  %4816 = vmatpush1.bf16.msk.msra.mxu1 %vm4815_vm13, %v8755_v9  ;;  %v6777_v11 = vld [vmem:[%s6073_s5 + $0x60] sm:$0xff]  ;;  %vm4825_vm10 = vmpackc.low %vm517_vm8, %vm513_vm7  ;;  %vm521_vm13 = vcmp.eq.s32.totalorder %v6276_v30, %v6685_v15  ;;  %vm528_vm7 = vcmp.eq.s32.totalorder %v6311_v34, %v6693_v57  ;;  %vm532_vm8 = vcmp.eq.s32.totalorder %v6314_v35, %v6693_v57  ;;  %v6845_v30 = vld [vmem:[%s6073_s5 + $0xe8] sm:$0xff] }
  0xae   : > { %4818 = vmatprep.subr.msk.bf16.mxu1 %vm4817_vm14, %v8755_v9  ;;  %vm525_vm14 = vcmp.eq.s32.totalorder %v6279_v31, %v6685_v15  ;;  %vm4827_vm15 = vmpackc.low %vm516_vm12, %vm512_vm11  ;;  %v284_v31 = vld [vmem:[%s6073_s5 + $0xd0] sm:$0xff] }
  0xaf   : > { %1323 = vmatmul.mubr.f32.gmra.mrb[4].mxu1 %v6757_v3  ;;  %vm4829_vm0 = vmpackc.low %vm525_vm14, %vm521_vm13  ;;  %vm536_vm13 = vcmp.eq.s32.totalorder %v6346_v38, %v6693_v57  ;;  %vm540_vm14 = vcmp.eq.s32.totalorder %v6349_v39, %v6693_v57 }
  0xb0   : > { %1580 = vmatmul.mubr.f32.gmra.mrb[4].mxu0 %v268_v17  ;;  %1328 = vmatprep.mubr.f32.mxu1 %v6766_v18  ;;  %v277_v17 = vld [vmem:[%s6073_s5 + $0x98] sm:$0xff]  ;;  %vm4831_vm3 = vmpackc.low %vm524_vm2, %vm520_vm1 }
  0xb1   : > { %1585 = vmatprep.mubr.f32.mxu0 %v273_v8  ;;  %4820 = vmatpush1.bf16.msk.msra.mxu1 %vm4819_vm4, %v8755_v9  ;;  %v6797_v8 = vld [vmem:[%s6073_s5 + $0x80] sm:$0xff]  ;;  %vm529_vm4 = vcmp.eq.s32.totalorder %v6311_v34, %v6685_v15  ;;  %vm4835_vm11 = vmpackc.low %vm532_vm8, %vm528_vm7  ;;  %v6865_v34 = vld [vmem:[%s6073_s5 + $0x108] sm:$0xff] }
  0xb2   : > { %4822 = vmatprep.subr.msk.bf16.mxu1 %vm4821_vm5, %v8755_v9  ;;  %vm533_vm5 = vcmp.eq.s32.totalorder %v6314_v35, %v6685_v15  ;;  %v288_v35 = vld [vmem:[%s6073_s5 + $0xf0] sm:$0xff]  ;;  %vm4839_vm1 = vmpackc.low %vm540_vm14, %vm536_vm13 }
  0xb3   : > { %1329 = vmatmul.mubr.f32.gmra.mrb[6].mxu1 %v6777_v11  ;;  %vm4833_vm6 = vmpackc.low %vm533_vm5, %vm529_vm4  ;;  %vm544_vm4 = vcmp.eq.s32.totalorder %v6381_v42, %v6693_v57  ;;  %vm548_vm5 = vcmp.eq.s32.totalorder %v6384_v43, %v6693_v57 }
  0xb4   : > { %1586 = vmatmul.mubr.f32.gmra.mrb[6].mxu0 %v272_v19  ;;  %1334 = vmatprep.mubr.f32.mxu1 %v6785_v56  ;;  %v281_v19 = vld [vmem:[%s6073_s5 + $0xb8] sm:$0xff]  ;;  %vm4843_vm7 = vmpackc.low %vm548_vm5, %vm544_vm4 }
  0xb5   : > { %1591 = vmatprep.mubr.f32.mxu0 %v277_v17  ;;  %4824 = vmatpush1.bf16.msk.msra.mxu1 %vm4823_vm9, %v8755_v9  ;;  %v6817_v17 = vld [vmem:[%s6073_s5 + $0xa0] sm:$0xff]  ;;  %vm537_vm9 = vcmp.eq.s32.totalorder %v6346_v38, %v6685_v15  ;;  %v6885_v38 = vld [vmem:[%s6073_s5 + $0x128] sm:$0xff] }
  0xb6   : > { %4826 = vmatprep.subr.msk.bf16.mxu1 %vm4825_vm10, %v8755_v9  ;;  %vm541_vm10 = vcmp.eq.s32.totalorder %v6349_v39, %v6685_v15  ;;  %v292_v39 = vld [vmem:[%s6073_s5 + $0x110] sm:$0xff] }
  0xb7   : > { %1335 = vmatmul.mubr.f32.gmra.mrb[8].mxu1 %v6797_v8  ;;  %vm4837_vm12 = vmpackc.low %vm541_vm10, %vm537_vm9  ;;  %vm552_vm9 = vcmp.eq.s32.totalorder %v6416_v46, %v6693_v57  ;;  %vm556_vm10 = vcmp.eq.s32.totalorder %v6419_v47, %v6693_v57 }
  0xb8   : > { %1592 = vmatmul.mubr.f32.gmra.mrb[8].mxu0 %v276_v23  ;;  %1340 = vmatprep.mubr.f32.mxu1 %v6805_v22  ;;  %v285_v23 = vld [vmem:[%s6073_s5 + $0xd8] sm:$0xff]  ;;  %vm4847_vm13 = vmpackc.low %vm556_vm10, %vm552_vm9 }
  0xb9   : > { %1597 = vmatprep.mubr.f32.mxu0 %v281_v19  ;;  %4828 = vmatpush1.bf16.msk.msra.mxu1 %vm4827_vm15, %v8755_v9  ;;  %v6837_v19 = vld [vmem:[%s6073_s5 + $0xc0] sm:$0xff]  ;;  %vm545_vm15 = vcmp.eq.s32.totalorder %v6381_v42, %v6685_v15  ;;  %v6905_v42 = vld [vmem:[%s6073_s5 + $0x148] sm:$0xff] }
  0xba   : > { %4830 = vmatprep.subr.msk.bf16.mxu1 %vm4829_vm0, %v8755_v9  ;;  %vm549_vm0 = vcmp.eq.s32.totalorder %v6384_v43, %v6685_v15  ;;  %v296_v43 = vld [vmem:[%s6073_s5 + $0x130] sm:$0xff] }
  0xbb   : > { %1341 = vmatmul.mubr.f32.gmra.mrb[10].mxu1 %v6817_v17  ;;  %vm4841_vm2 = vmpackc.low %vm549_vm0, %vm545_vm15  ;;  %vm560_vm15 = vcmp.eq.s32.totalorder %v6451_v50, %v6693_v57  ;;  %vm564_vm0 = vcmp.eq.s32.totalorder %v6454_v51, %v6693_v57 }
  0xbc   : > { %1598 = vmatmul.mubr.f32.gmra.mrb[10].mxu0 %v280_v27  ;;  %1346 = vmatprep.mubr.f32.mxu1 %v6825_v26  ;;  %v289_v27 = vld [vmem:[%s6073_s5 + $0xf8] sm:$0xff]  ;;  %vm4851_vm4 = vmpackc.low %vm564_vm0, %vm560_vm15 }
  0xbd   : > { %1603 = vmatprep.mubr.f32.mxu0 %v285_v23  ;;  %4832 = vmatpush1.bf16.msk.msra.mxu1 %vm4831_vm3, %v8755_v9  ;;  %v6857_v23 = vld [vmem:[%s6073_s5 + $0xe0] sm:$0xff]  ;;  %vm553_vm3 = vcmp.eq.s32.totalorder %v6416_v46, %v6685_v15  ;;  %v6925_v46 = vld [vmem:[%s6073_s5 + $0x168] sm:$0xff] }
  0xbe   : > { %4834 = vmatprep.subr.msk.bf16.mxu1 %vm4833_vm6, %v8755_v9  ;;  %vm557_vm6 = vcmp.eq.s32.totalorder %v6419_v47, %v6685_v15  ;;  %v300_v47 = vld [vmem:[%s6073_s5 + $0x150] sm:$0xff] }
  0xbf   : > { %1347 = vmatmul.mubr.f32.gmra.mrb[12].mxu1 %v6837_v19  ;;  %vm4845_vm8 = vmpackc.low %vm557_vm6, %vm553_vm3  ;;  %vm568_vm3 = vcmp.eq.s32.totalorder %v6486_v54, %v6693_v57  ;;  %vm572_vm6 = vcmp.eq.s32.totalorder %v6489_v55, %v6693_v57 }
  0xc0   : > { %1604 = vmatmul.mubr.f32.gmra.mrb[12].mxu0 %v284_v31  ;;  %1352 = vmatprep.mubr.f32.mxu1 %v6845_v30  ;;  %v293_v31 = vld [vmem:[%s6073_s5 + $0x118] sm:$0xff]  ;;  %vm4855_vm9 = vmpackc.low %vm572_vm6, %vm568_vm3 }
  0xc1   : > { %1609 = vmatprep.mubr.f32.mxu0 %v289_v27  ;;  %4836 = vmatpush1.bf16.msk.msra.mxu1 %vm4835_vm11, %v8755_v9  ;;  %v6877_v27 = vld [vmem:[%s6073_s5 + $0x100] sm:$0xff]  ;;  %vm561_vm11 = vcmp.eq.s32.totalorder %v6451_v50, %v6685_v15  ;;  %v6945_v50 = vld [vmem:[%s6073_s5 + $0x188] sm:$0xff] }
  0xc2   : > { %4838 = vmatprep.subr.msk.bf16.mxu1 %vm4837_vm12, %v8755_v9  ;;  %vm565_vm12 = vcmp.eq.s32.totalorder %v6454_v51, %v6685_v15  ;;  %v304_v51 = vld [vmem:[%s6073_s5 + $0x170] sm:$0xff] }
  0xc3   : > { %1353 = vmatmul.mubr.f32.gmra.mrb[14].mxu1 %v6857_v23  ;;  %vm4849_vm14 = vmpackc.low %vm565_vm12, %vm561_vm11  ;;  %vm576_vm11 = vcmp.eq.s32.totalorder %v6515_v58, %v6693_v57  ;;  %vm580_vm12 = vcmp.eq.s32.totalorder %v6524_v59, %v6693_v57 }
  0xc4   : > { %1610 = vmatmul.mubr.f32.gmra.mrb[14].mxu0 %v288_v35  ;;  %1358 = vmatprep.mubr.f32.mxu1 %v6865_v34  ;;  %v297_v35 = vld [vmem:[%s6073_s5 + $0x138] sm:$0xff]  ;;  %vm4859_vm15 = vmpackc.low %vm580_vm12, %vm576_vm11 }
  0xc5   : > { %1615 = vmatprep.mubr.f32.mxu0 %v293_v31  ;;  %4840 = vmatpush1.bf16.msk.msra.mxu1 %vm4839_vm1, %v8755_v9  ;;  %v6897_v31 = vld [vmem:[%s6073_s5 + $0x120] sm:$0xff]  ;;  %vm569_vm1 = vcmp.eq.s32.totalorder %v6486_v54, %v6685_v15  ;;  %v6965_v54 = vld [vmem:[%s6073_s5 + $0x1a8] sm:$0xff] }
  0xc6   : > { %4842 = vmatprep.subr.msk.bf16.mxu1 %vm4841_vm2, %v8755_v9  ;;  %vm573_vm2 = vcmp.eq.s32.totalorder %v6489_v55, %v6685_v15  ;;  %v308_v55 = vld [vmem:[%s6073_s5 + $0x190] sm:$0xff] }
  0xc7   : > { %1359 = vmatmul.mubr.f32.gmra.mrb[16].mxu1 %v6877_v27  ;;  %vm4853_vm5 = vmpackc.low %vm573_vm2, %vm569_vm1  ;;  %vm584_vm1 = vcmp.eq.s32.totalorder %v6556_v62, %v6693_v57  ;;  %vm588_vm2 = vcmp.eq.s32.totalorder %v6559_v63, %v6693_v57 }
  0xc8   : > { %1616 = vmatmul.mubr.f32.gmra.mrb[16].mxu0 %v292_v39  ;;  %1364 = vmatprep.mubr.f32.mxu1 %v6885_v38  ;;  %v301_v39 = vld [vmem:[%s6073_s5 + $0x158] sm:$0xff]  ;;  %vm4863_vm3 = vmpackc.low %vm588_vm2, %vm584_vm1 }
  0xc9   : > { %1621 = vmatprep.mubr.f32.mxu0 %v297_v35  ;;  %4844 = vmatpush1.bf16.msk.msra.mxu1 %vm4843_vm7, %v8755_v9  ;;  %v6917_v35 = vld [vmem:[%s6073_s5 + $0x140] sm:$0xff]  ;;  %vm577_vm7 = vcmp.eq.s32.totalorder %v6515_v58, %v6685_v15  ;;  %v6985_v58 = vld [vmem:[%s6073_s5 + $0x1c8] sm:$0xff] }
  0xca   : > { %4846 = vmatprep.subr.msk.bf16.mxu1 %vm4845_vm8, %v8755_v9  ;;  %vm581_vm8 = vcmp.eq.s32.totalorder %v6524_v59, %v6685_v15  ;;  %v312_v59 = vld [vmem:[%s6073_s5 + $0x1b0] sm:$0xff] }
  0xcb   : > { %1365 = vmatmul.mubr.f32.gmra.mrb[18].mxu1 %v6897_v31  ;;  %vm4857_vm10 = vmpackc.low %vm581_vm8, %vm577_vm7  ;;  %vm592_vm7 = vcmp.eq.s32.totalorder %v6595_v2, %v6693_v57  ;;  %vm596_vm8 = vcmp.eq.s32.totalorder %v6604_v14, %v6693_v57 }
  0xcc   : > { %1622 = vmatmul.mubr.f32.gmra.mrb[18].mxu0 %v296_v43  ;;  %1370 = vmatprep.mubr.f32.mxu1 %v6905_v42  ;;  %v305_v43 = vld [vmem:[%s6073_s5 + $0x178] sm:$0xff]  ;;  %vm4867_vm11 = vmpackc.low %vm596_vm8, %vm592_vm7 }
  0xcd   : > { %1627 = vmatprep.mubr.f32.mxu0 %v301_v39  ;;  %4848 = vmatpush1.bf16.msk.msra.mxu1 %vm4847_vm13, %v8755_v9  ;;  %v6937_v39 = vld [vmem:[%s6073_s5 + $0x160] sm:$0xff]  ;;  %vm585_vm13 = vcmp.eq.s32.totalorder %v6556_v62, %v6685_v15  ;;  %v7005_v62 = vld [vmem:[%s6073_s5 + $0x1e8] sm:$0xff] }
  0xce   : > { %4850 = vmatprep.subr.msk.bf16.mxu1 %vm4849_vm14, %v8755_v9  ;;  %vm589_vm14 = vcmp.eq.s32.totalorder %v6559_v63, %v6685_v15  ;;  %v316_v63 = vld [vmem:[%s6073_s5 + $0x1d0] sm:$0xff]  ;;  %8757 = vst [vmem:[#allocation56_spill] sm:$0xff] %v7005_v62 }
  0xcf   : > { %1371 = vmatmul.mubr.f32.gmra.mrb[20].mxu1 %v6917_v35  ;;  %vm4861_vm0 = vmpackc.low %vm589_vm14, %vm585_vm13  ;;  %vm600_vm13 = vcmp.eq.s32.totalorder %v6642_v0, %v6693_v57  ;;  %vm604_vm14 = vcmp.eq.s32.totalorder %v6645_v61, %v6693_v57 }
  0xd0   : > { %1628 = vmatmul.mubr.f32.gmra.mrb[20].mxu0 %v300_v47  ;;  %1376 = vmatprep.mubr.f32.mxu1 %v6925_v46  ;;  %v309_v47 = vld [vmem:[%s6073_s5 + $0x198] sm:$0xff]  ;;  %vm4871_vm1 = vmpackc.low %vm604_vm14, %vm600_vm13 }
  0xd1   : > { %1633 = vmatprep.mubr.f32.mxu0 %v305_v43  ;;  %4852 = vmatpush1.bf16.msk.msra.mxu1 %vm4851_vm4, %v8755_v9  ;;  %v6957_v43 = vld [vmem:[%s6073_s5 + $0x180] sm:$0xff]  ;;  %vm593_vm4 = vcmp.eq.s32.totalorder %v6595_v2, %v6685_v15  ;;  %v7037_v2 = vld [vmem:[%s6073_s5 + $0x228] sm:$0xff] }
  0xd2   : > { %4854 = vmatprep.subr.msk.bf16.mxu1 %vm4853_vm5, %v8755_v9  ;;  %vm597_vm5 = vcmp.eq.s32.totalorder %v6604_v14, %v6685_v15  ;;  %v7025_v14 = vld [vmem:[%s6073_s5 + $0x208] sm:$0xff]  ;;  %8761 = vst [vmem:[#allocation60_spill] sm:$0xff] %v7037_v2 }
  0xd3   : > { %1377 = vmatmul.mubr.f32.gmra.mrb[22].mxu1 %v6937_v39  ;;  %vm4865_vm6 = vmpackc.low %vm597_vm5, %vm593_vm4  ;;  %8759 = vst [vmem:[#allocation58_spill] sm:$0xff] %v7025_v14  ;;  %vm608_vm4 = vcmp.eq.s32.totalorder %v6101_v6, %v6693_v57  ;;  %vm612_vm5 = vcmp.eq.s32.totalorder %v6104_v7, %v6693_v57 }
  0xd4   : > { %1634 = vmatmul.mubr.f32.gmra.mrb[22].mxu0 %v304_v51  ;;  %1382 = vmatprep.mubr.f32.mxu1 %v6945_v50  ;;  %v313_v51 = vld [vmem:[%s6073_s5 + $0x1b8] sm:$0xff]  ;;  %vm4875_vm7 = vmpackc.low %vm612_vm5, %vm608_vm4 }
  0xd5   : > { %1639 = vmatprep.mubr.f32.mxu0 %v309_v47  ;;  %4856 = vmatpush1.bf16.msk.msra.mxu1 %vm4855_vm9, %v8755_v9  ;;  %v6977_v47 = vld [vmem:[%s6073_s5 + $0x1a0] sm:$0xff]  ;;  %vm601_vm9 = vcmp.eq.s32.totalorder %v6642_v0, %v6685_v15  ;;  %v320_v0 = vld [vmem:[%s6073_s5 + $0x1f0] sm:$0xff] }
  0xd6   : > { %4858 = vmatprep.subr.msk.bf16.mxu1 %vm4857_vm10, %v8755_v9  ;;  %vm605_vm10 = vcmp.eq.s32.totalorder %v6645_v61, %v6685_v15  ;;  %v324_v61 = vld [vmem:[%s6073_s5 + $0x210] sm:$0xff] }
  0xd7   : > { %1383 = vmatmul.mubr.f32.gmra.mrb[24].mxu1 %v6957_v43  ;;  %vm4869_vm12 = vmpackc.low %vm605_vm10, %vm601_vm9  ;;  %vm616_vm9 = vcmp.eq.s32.totalorder %v6113_v10, %v6693_v57  ;;  %vm620_vm10 = vcmp.eq.s32.totalorder %v6130_v13, %v6693_v57 }
  0xd8   : > { %1640 = vmatmul.mubr.f32.gmra.mrb[24].mxu0 %v308_v55  ;;  %1388 = vmatprep.mubr.f32.mxu1 %v6965_v54  ;;  %v317_v55 = vld [vmem:[%s6073_s5 + $0x1d8] sm:$0xff]  ;;  %vm4879_vm13 = vmpackc.low %vm620_vm10, %vm616_vm9 }
  0xd9   : > { %1645 = vmatprep.mubr.f32.mxu0 %v313_v51  ;;  %4860 = vmatpush1.bf16.msk.msra.mxu1 %vm4859_vm15, %v8755_v9  ;;  %v6997_v51 = vld [vmem:[%s6073_s5 + $0x1c0] sm:$0xff]  ;;  %vm609_vm15 = vcmp.eq.s32.totalorder %v6101_v6, %v6685_v15  ;;  %v8788_v6 = vld [vmem:[#allocation40_spill] sm:$0xff] }
  0xda   : > { %4862 = vmatprep.subr.msk.bf16.mxu1 %vm4861_vm0, %v8755_v9  ;;  %8756 = vst [vmem:[#allocation55_spill] sm:$0xff] %v6997_v51  ;;  %vm613_vm0 = vcmp.eq.s32.totalorder %v6104_v7, %v6685_v15  ;;  %v8789_v7 = vld [vmem:[#allocation41_spill] sm:$0xff] }
  0xdb   : > { %1389 = vmatmul.mubr.f32.gmra.mrb[26].mxu1 %v6977_v47  ;;  %vm4873_vm2 = vmpackc.low %vm613_vm0, %vm609_vm15  ;;  %vm624_vm15 = vcmp.eq.s32.totalorder %v6174_v20, %v6693_v57  ;;  %vm628_vm0 = vcmp.eq.s32.totalorder %v6177_v21, %v6693_v57 }
  0xdc   : > { %1646 = vmatmul.mubr.f32.gmra.mrb[26].mxu0 %v312_v59  ;;  %1394 = vmatprep.mubr.f32.mxu1 %v6985_v58  ;;  %v321_v59 = vld [vmem:[%s6073_s5 + $0x1f8] sm:$0xff]  ;;  %vm4883_vm4 = vmpackc.low %vm628_vm0, %vm624_vm15 }
  0xdd   : > { %1651 = vmatprep.mubr.f32.mxu0 %v317_v55  ;;  %4864 = vmatpush1.bf16.msk.msra.mxu1 %vm4863_vm3, %v8755_v9  ;;  %v7017_v55 = vld [vmem:[%s6073_s5 + $0x1e0] sm:$0xff]  ;;  %vm617_vm3 = vcmp.eq.s32.totalorder %v6113_v10, %v6685_v15  ;;  %v8790_v10 = vld [vmem:[#allocation44_spill] sm:$0xff] }
  0xde   : > { %4866 = vmatprep.subr.msk.bf16.mxu1 %vm4865_vm6, %v8755_v9  ;;  %8758 = vst [vmem:[#allocation57_spill] sm:$0xff] %v7017_v55  ;;  %vm621_vm6 = vcmp.eq.s32.totalorder %v6130_v13, %v6685_v15  ;;  %v8791_v13 = vld [vmem:[#allocation45_spill] sm:$0xff] }
  0xdf   : > { %1395 = vmatmul.mubr.f32.gmra.mrb[28].mxu1 %v6997_v51  ;;  %v7175_v51 = vld [vmem:[%s6073_s5 + $0x3c0] sm:$0xff]  ;;  %vm4877_vm8 = vmpackc.low %vm621_vm6, %vm617_vm3  ;;  %vm632_vm3 = vcmp.eq.s32.totalorder %v6211_v24, %v6693_v57  ;;  %vm636_vm6 = vcmp.eq.s32.totalorder %v6224_v25, %v6693_v57 }
  0xe0   : > { %1652 = vmatmul.mubr.f32.gmra.mrb[28].mxu0 %v316_v63  ;;  %1400 = vmatprep.mubr.f32.mxu1 %v7005_v62  ;;  %v325_v63 = vld [vmem:[%s6073_s5 + $0x218] sm:$0xff]  ;;  %vm4887_vm9 = vmpackc.low %vm636_vm6, %vm632_vm3 }
  0xe1   : > { %1657 = vmatprep.mubr.f32.mxu0 %v321_v59  ;;  %4868 = vmatpush1.bf16.msk.msra.mxu1 %vm4867_vm11, %v8755_v9  ;;  %v7033_v59 = vld [vmem:[%s6073_s5 + $0x200] sm:$0xff]  ;;  %v329_v62 = vld [vmem:[%s6073_s5 + $0x238] sm:$0xff]  ;;  %vm625_vm11 = vcmp.eq.s32.totalorder %v6174_v20, %v6685_v15 }
  0xe2   : > { %4870 = vmatprep.subr.msk.bf16.mxu1 %vm4869_vm12, %v8755_v9  ;;  %8760 = vst [vmem:[#allocation59_spill] sm:$0xff] %v7033_v59  ;;  %vm629_vm12 = vcmp.eq.s32.totalorder %v6177_v21, %v6685_v15  ;;  %v8793_v20 = vld [vmem:[#allocation53_spill] sm:$0xff]  ;;  %v8794_v21 = vld [vmem:[#allocation54_spill] sm:$0xff] }
  0xe3   : > { %1401 = vmatmul.mubr.f32.gmra.mrb[30].mxu1 %v7017_v55  ;;  %v333_v55 = vld [vmem:[%s6073_s5 + $0x258] sm:$0xff]  ;;  %vm4881_vm14 = vmpackc.low %vm629_vm12, %vm625_vm11  ;;  %vm640_vm11 = vcmp.eq.s32.totalorder %v6252_v28, %v6693_v57  ;;  %vm644_vm12 = vcmp.eq.s32.totalorder %v6255_v29, %v6693_v57 }
  0xe4   : > { %1658 = vmatmul.mubr.f32.gmra.mrb[30].mxu0 %v320_v0  ;;  %1406 = vmatprep.mubr.f32.mxu1 %v7025_v14  ;;  %v7045_v0 = vld [vmem:[%s6073_s5 + $0x220] sm:$0xff]  ;;  %v7049_v14 = vld [vmem:[%s6073_s5 + $0x248] sm:$0xff]  ;;  %vm4891_vm15 = vmpackc.low %vm644_vm12, %vm640_vm11 }
  0xe5   : > { %1663 = vmatprep.mubr.f32.mxu0 %v325_v63  ;;  %4872 = vmatpush1.bf16.msk.msra.mxu1 %vm4871_vm1, %v8755_v9  ;;  %8762 = vst [vmem:[#allocation61_spill] sm:$0xff] %v7045_v0  ;;  %v328_v63 = vld [vmem:[%s6073_s5 + $0x230] sm:$0xff]  ;;  %8763 = vst [vmem:[#allocation62_spill] sm:$0xff] %v7049_v14  ;;  %vm633_vm1 = vcmp.eq.s32.totalorder %v6211_v24, %v6685_v15 }
  0xe6   : > { %4874 = vmatprep.subr.msk.bf16.mxu1 %vm4873_vm2, %v8755_v9  ;;  %vm637_vm2 = vcmp.eq.s32.totalorder %v6224_v25, %v6685_v15  ;;  %v8796_v24 = vld [vmem:[#allocation56_spill] sm:$0xff]  ;;  %v8797_v25 = vld [vmem:[#allocation57_spill] sm:$0xff] }
  0xe7   : > { %1407 = vmatmul.mubr.f32.gmra.mrb[32].mxu1 %v7033_v59  ;;  %v7055_v59 = vld [vmem:[%s6073_s5 + $0x240] sm:$0xff]  ;;  %vm4885_vm5 = vmpackc.low %vm637_vm2, %vm633_vm1  ;;  %vm648_vm1 = vcmp.eq.s32.totalorder %v6287_v32, %v6693_v57  ;;  %vm652_vm2 = vcmp.eq.s32.totalorder %v6290_v33, %v6693_v57 }
  0xe8   : > { %1664 = vmatmul.mubr.f32.gmra.mrb[32].mxu0 %v324_v61  ;;  %1412 = vmatprep.mubr.f32.mxu1 %v7037_v2  ;;  %8764 = vst [vmem:[#allocation63_spill] sm:$0xff] %v7055_v59  ;;  %v332_v61 = vld [vmem:[%s6073_s5 + $0x250] sm:$0xff]  ;;  %v7059_v2 = vld [vmem:[%s6073_s5 + $0x268] sm:$0xff]  ;;  %vm4895_vm3 = vmpackc.low %vm652_vm2, %vm648_vm1 }
  0xe9   : > { %1669 = vmatprep.mubr.f32.mxu0 %v329_v62  ;;  %8765 = vst [vmem:[#allocation64_spill] sm:$0xff] %v7059_v2  ;;  %v337_v62 = vld [vmem:[%s6073_s5 + $0x278] sm:$0xff] }
  0xeb   : > { %1413 = vmatmul.mubr.f32.gmra.mrb[34].mxu1 %v7045_v0  ;;  %v7065_v0 = vld [vmem:[%s6073_s5 + $0x260] sm:$0xff] }
  0xec   : > { %1670 = vmatmul.mubr.f32.gmra.mrb[34].mxu0 %v328_v63  ;;  %1418 = vmatprep.mubr.f32.mxu1 %v7049_v14  ;;  %8766 = vst [vmem:[#allocation65_spill] sm:$0xff] %v7065_v0  ;;  %v336_v63 = vld [vmem:[%s6073_s5 + $0x270] sm:$0xff]  ;;  %v7069_v14 = vld [vmem:[%s6073_s5 + $0x288] sm:$0xff] }
  0xed   : > { %1675 = vmatprep.mubr.f32.mxu0 %v333_v55  ;;  %8767 = vst [vmem:[#allocation66_spill] sm:$0xff] %v7069_v14  ;;  %v341_v55 = vld [vmem:[%s6073_s5 + $0x298] sm:$0xff] }
  0xef   : > { %1419 = vmatmul.mubr.f32.gmra.mrb[36].mxu1 %v7055_v59  ;;  %v7075_v59 = vld [vmem:[%s6073_s5 + $0x280] sm:$0xff] }
  0xf0   : > { %1676 = vmatmul.mubr.f32.gmra.mrb[36].mxu0 %v332_v61  ;;  %1424 = vmatprep.mubr.f32.mxu1 %v7059_v2  ;;  %8768 = vst [vmem:[#allocation67_spill] sm:$0xff] %v7075_v59  ;;  %v340_v61 = vld [vmem:[%s6073_s5 + $0x290] sm:$0xff]  ;;  %v7079_v2 = vld [vmem:[%s6073_s5 + $0x2a8] sm:$0xff] }
  0xf1   : > { %1681 = vmatprep.mubr.f32.mxu0 %v337_v62  ;;  %8769 = vst [vmem:[#allocation68_spill] sm:$0xff] %v7079_v2  ;;  %v345_v62 = vld [vmem:[%s6073_s5 + $0x2b8] sm:$0xff] }
  0xf3   : > { %1425 = vmatmul.mubr.f32.gmra.mrb[38].mxu1 %v7065_v0  ;;  %v7085_v0 = vld [vmem:[%s6073_s5 + $0x2a0] sm:$0xff] }
  0xf4   : > { %1682 = vmatmul.mubr.f32.gmra.mrb[38].mxu0 %v336_v63  ;;  %1430 = vmatprep.mubr.f32.mxu1 %v7069_v14  ;;  %8770 = vst [vmem:[#allocation69_spill] sm:$0xff] %v7085_v0  ;;  %v344_v63 = vld [vmem:[%s6073_s5 + $0x2b0] sm:$0xff]  ;;  %v7089_v14 = vld [vmem:[%s6073_s5 + $0x2c8] sm:$0xff] }
  0xf5   : > { %1687 = vmatprep.mubr.f32.mxu0 %v341_v55  ;;  %8771 = vst [vmem:[#allocation70_spill] sm:$0xff] %v7089_v14  ;;  %v349_v55 = vld [vmem:[%s6073_s5 + $0x2d8] sm:$0xff] }
  0xf7   : > { %1431 = vmatmul.mubr.f32.gmra.mrb[40].mxu1 %v7075_v59  ;;  %v7095_v59 = vld [vmem:[%s6073_s5 + $0x2c0] sm:$0xff] }
  0xf8   : > { %1688 = vmatmul.mubr.f32.gmra.mrb[40].mxu0 %v340_v61  ;;  %1436 = vmatprep.mubr.f32.mxu1 %v7079_v2  ;;  %8772 = vst [vmem:[#allocation71_spill] sm:$0xff] %v7095_v59  ;;  %v348_v61 = vld [vmem:[%s6073_s5 + $0x2d0] sm:$0xff]  ;;  %v7099_v2 = vld [vmem:[%s6073_s5 + $0x2e8] sm:$0xff] }
  0xf9   : > { %1693 = vmatprep.mubr.f32.mxu0 %v345_v62  ;;  %8773 = vst [vmem:[#allocation72_spill] sm:$0xff] %v7099_v2  ;;  %v353_v62 = vld [vmem:[%s6073_s5 + $0x2f8] sm:$0xff] }
  0xfb   : > { %1437 = vmatmul.mubr.f32.gmra.mrb[42].mxu1 %v7085_v0  ;;  %v7105_v0 = vld [vmem:[%s6073_s5 + $0x2e0] sm:$0xff] }
  0xfc   : > { %1694 = vmatmul.mubr.f32.gmra.mrb[42].mxu0 %v344_v63  ;;  %1442 = vmatprep.mubr.f32.mxu1 %v7089_v14  ;;  %8774 = vst [vmem:[#allocation73_spill] sm:$0xff] %v7105_v0  ;;  %v352_v63 = vld [vmem:[%s6073_s5 + $0x2f0] sm:$0xff]  ;;  %v7109_v14 = vld [vmem:[%s6073_s5 + $0x308] sm:$0xff] }
  0xfd   : > { %1699 = vmatprep.mubr.f32.mxu0 %v349_v55  ;;  %8775 = vst [vmem:[#allocation74_spill] sm:$0xff] %v7109_v14  ;;  %v357_v55 = vld [vmem:[%s6073_s5 + $0x318] sm:$0xff] }
  0xff   : > { %1443 = vmatmul.mubr.f32.gmra.mrb[44].mxu1 %v7095_v59  ;;  %v7115_v59 = vld [vmem:[%s6073_s5 + $0x300] sm:$0xff] }
 0x100   : > { %1700 = vmatmul.mubr.f32.gmra.mrb[44].mxu0 %v348_v61  ;;  %1448 = vmatprep.mubr.f32.mxu1 %v7099_v2  ;;  %8776 = vst [vmem:[#allocation75_spill] sm:$0xff] %v7115_v59  ;;  %v356_v61 = vld [vmem:[%s6073_s5 + $0x310] sm:$0xff]  ;;  %v7119_v2 = vld [vmem:[%s6073_s5 + $0x328] sm:$0xff] }
 0x101   : > { %1705 = vmatprep.mubr.f32.mxu0 %v353_v62  ;;  %8777 = vst [vmem:[#allocation76_spill] sm:$0xff] %v7119_v2  ;;  %v361_v62 = vld [vmem:[%s6073_s5 + $0x338] sm:$0xff] }
 0x103   : > { %1449 = vmatmul.mubr.f32.gmra.mrb[46].mxu1 %v7105_v0  ;;  %v7125_v0 = vld [vmem:[%s6073_s5 + $0x320] sm:$0xff] }
 0x104   : > { %1706 = vmatmul.mubr.f32.gmra.mrb[46].mxu0 %v352_v63  ;;  %1454 = vmatprep.mubr.f32.mxu1 %v7109_v14  ;;  %8778 = vst [vmem:[#allocation77_spill] sm:$0xff] %v7125_v0  ;;  %v360_v63 = vld [vmem:[%s6073_s5 + $0x330] sm:$0xff]  ;;  %v7129_v14 = vld [vmem:[%s6073_s5 + $0x348] sm:$0xff] }
 0x105   : > { %1711 = vmatprep.mubr.f32.mxu0 %v357_v55  ;;  %8779 = vst [vmem:[#allocation78_spill] sm:$0xff] %v7129_v14  ;;  %v365_v55 = vld [vmem:[%s6073_s5 + $0x358] sm:$0xff] }
 0x107   : > { %1455 = vmatmul.mubr.f32.gmra.mrb[48].mxu1 %v7115_v59  ;;  %v7135_v59 = vld [vmem:[%s6073_s5 + $0x340] sm:$0xff] }
 0x108   : > { %1712 = vmatmul.mubr.f32.gmra.mrb[48].mxu0 %v356_v61  ;;  %1460 = vmatprep.mubr.f32.mxu1 %v7119_v2  ;;  %8780 = vst [vmem:[#allocation79_spill] sm:$0xff] %v7135_v59  ;;  %v364_v61 = vld [vmem:[%s6073_s5 + $0x350] sm:$0xff]  ;;  %v7139_v2 = vld [vmem:[%s6073_s5 + $0x368] sm:$0xff] }
 0x109   : > { %1717 = vmatprep.mubr.f32.mxu0 %v361_v62  ;;  %8781 = vst [vmem:[#allocation80_spill] sm:$0xff] %v7139_v2  ;;  %v369_v62 = vld [vmem:[%s6073_s5 + $0x378] sm:$0xff] }
 0x10b   : > { %1461 = vmatmul.mubr.f32.gmra.mrb[50].mxu1 %v7125_v0  ;;  %v7145_v0 = vld [vmem:[%s6073_s5 + $0x360] sm:$0xff] }
 0x10c   : > { %1718 = vmatmul.mubr.f32.gmra.mrb[50].mxu0 %v360_v63  ;;  %1466 = vmatprep.mubr.f32.mxu1 %v7129_v14  ;;  %8782 = vst [vmem:[#allocation81_spill] sm:$0xff] %v7145_v0  ;;  %v368_v63 = vld [vmem:[%s6073_s5 + $0x370] sm:$0xff]  ;;  %v7149_v14 = vld [vmem:[%s6073_s5 + $0x388] sm:$0xff] }
 0x10d   : > { %1723 = vmatprep.mubr.f32.mxu0 %v365_v55  ;;  %8783 = vst [vmem:[#allocation82_spill] sm:$0xff] %v7149_v14  ;;  %v373_v55 = vld [vmem:[%s6073_s5 + $0x398] sm:$0xff] }
 0x10f   : > { %1467 = vmatmul.mubr.f32.gmra.mrb[52].mxu1 %v7135_v59  ;;  %v7155_v59 = vld [vmem:[%s6073_s5 + $0x380] sm:$0xff] }
 0x110   : > { %1724 = vmatmul.mubr.f32.gmra.mrb[52].mxu0 %v364_v61  ;;  %1472 = vmatprep.mubr.f32.mxu1 %v7139_v2  ;;  %8784 = vst [vmem:[#allocation83_spill] sm:$0xff] %v7155_v59  ;;  %v372_v61 = vld [vmem:[%s6073_s5 + $0x390] sm:$0xff]  ;;  %v7159_v2 = vld [vmem:[%s6073_s5 + $0x3a8] sm:$0xff] }
 0x111   : > { %1729 = vmatprep.mubr.f32.mxu0 %v369_v62  ;;  %8785 = vst [vmem:[#allocation84_spill] sm:$0xff] %v7159_v2  ;;  %v377_v62 = vld [vmem:[%s6073_s5 + $0x3b8] sm:$0xff] }
 0x113   : > { %1473 = vmatmul.mubr.f32.gmra.mrb[54].mxu1 %v7145_v0  ;;  %v7165_v0 = vld [vmem:[%s6073_s5 + $0x3a0] sm:$0xff] }
 0x114   : > { %1730 = vmatmul.mubr.f32.gmra.mrb[54].mxu0 %v368_v63  ;;  %1478 = vmatprep.mubr.f32.mxu1 %v7149_v14  ;;  %8786 = vst [vmem:[#allocation85_spill] sm:$0xff] %v7165_v0  ;;  %v376_v63 = vld [vmem:[%s6073_s5 + $0x3b0] sm:$0xff]  ;;  %v7169_v14 = vld [vmem:[%s6073_s5 + $0x3c8] sm:$0xff] }
 0x115   : > { %1735 = vmatprep.mubr.f32.mxu0 %v373_v55  ;;  %v381_v55 = vld [vmem:[%s6073_s5 + $0x3d8] sm:$0xff] }
 0x117   : > { %1479 = vmatmul.mubr.f32.gmra.mrb[56].mxu1 %v7155_v59  ;;  %v385_v59 = vld [vmem:[%s6073_s5 + $0x3f8] sm:$0xff] }
 0x118   : > { %1736 = vmatmul.mubr.f32.gmra.mrb[56].mxu0 %v372_v61  ;;  %1484 = vmatprep.mubr.f32.mxu1 %v7159_v2  ;;  %v380_v61 = vld [vmem:[%s6073_s5 + $0x3d0] sm:$0xff]  ;;  %v7179_v2 = vld [vmem:[%s6073_s5 + $0x3e8] sm:$0xff] }
 0x119   : > { %1741 = vmatprep.mubr.f32.mxu0 %v377_v62  ;;  %v7185_v62 = vld [vmem:[%s6073_s5 + $0x3e0] sm:$0xff] }
 0x11b   : > { %1485 = vmatmul.mubr.f32.gmra.mrb[58].mxu1 %v7165_v0  ;;  %v384_v0 = vld [vmem:[%s6073_s5 + $0x3f0] sm:$0xff] }
 0x11c   : > { %1742 = vmatmul.mubr.f32.gmra.mrb[58].mxu0 %v376_v63  ;;  %1490 = vmatprep.mubr.f32.mxu1 %v7169_v14  ;;  %v5643_v63 = vld [vmem:[%s6073_s5 + $0x8] sm:$0xff] }
 0x11d   : > { %1747 = vmatprep.mubr.f32.mxu0 %v381_v55 }
 0x11f   : > { %1491 = vmatmul.mubr.f32.gmra.mrb[60].mxu1 %v7175_v51 }
 0x120   : > { %1748 = vmatmul.mubr.f32.gmra.mrb[60].mxu0 %v380_v61  ;;  %1496 = vmatprep.mubr.f32.mxu1 %v7179_v2 }
 0x121   : > { %1753 = vmatprep.mubr.f32.mxu0 %v385_v59 }
 0x123   : > { %1497 = vmatmul.mubr.f32.gmra.mrb[62].mxu1 %v7185_v62 }
 0x124   : > { %1754 = vmatmul.mubr.f32.gmra.mrb[62].mxu0 %v384_v0  ;;  %1824 = vmatprep.mubr.f32.mxu1 %v5643_v63  ;;  %v8815_v0 = vld [vmem:[#allocation75_spill] sm:$0xff]  ;;  %v8816_v63 = vld [vmem:[#allocation76_spill] sm:$0xff] }
 0x127   : > { %1825 = vmatmul.mubr.f32.vlgmr.msra.gmra.mrb[64].mxu1 %v6717_v5 }
 0x128   : > { %4876 = vmatpush1.bf16.msk.msra.mxu1 %vm4875_vm7, %v8755_v9  ;;  %1830 = vmatprep.mubr.f32.mxu1 %v6727_v60  ;;  %vm641_vm7 = vcmp.eq.s32.totalorder %v6252_v28, %v6685_v15  ;;  %v8799_v28 = vld [vmem:[#allocation59_spill] sm:$0xff] }
 0x129   : > { %4878 = vmatprep.subr.msk.bf16.mxu1 %vm4877_vm8, %v8755_v9  ;;  %vm645_vm8 = vcmp.eq.s32.totalorder %v6255_v29, %v6685_v15  ;;  %v8800_v29 = vld [vmem:[#allocation60_spill] sm:$0xff] }
 0x12a   : > { %vm4889_vm10 = vmpackc.low %vm645_vm8, %vm641_vm7  ;;  %vm656_vm7 = vcmp.eq.s32.totalorder %v6322_v36, %v6693_v57  ;;  %vm660_vm8 = vcmp.eq.s32.totalorder %v6325_v37, %v6693_v57 }
 0x12b   : > { %1831 = vmatmul.mubr.f32.gmra.mrb[66].mxu1 %v6737_v1  ;;  %vm4899_vm11 = vmpackc.low %vm660_vm8, %vm656_vm7  ;;  %v8787_v1 = vld [vmem:[#allocation37_spill] sm:$0xff] }
 0x12c   : > { %1836 = vmatprep.mubr.f32.mxu1 %v6746_v53  ;;  %4880 = vmatpush1.bf16.msk.msra.mxu1 %vm4879_vm13, %v8755_v9  ;;  %vm649_vm13 = vcmp.eq.s32.totalorder %v6287_v32, %v6685_v15  ;;  %v8802_v32 = vld [vmem:[#allocation62_spill] sm:$0xff] }
 0x12d   : > { %4882 = vmatprep.subr.msk.bf16.mxu1 %vm4881_vm14, %v8755_v9  ;;  %vm653_vm14 = vcmp.eq.s32.totalorder %v6290_v33, %v6685_v15  ;;  %v8803_v33 = vld [vmem:[#allocation63_spill] sm:$0xff] }
 0x12e   : > { %vm4893_vm0 = vmpackc.low %vm653_vm14, %vm649_vm13  ;;  %vm664_vm13 = vcmp.eq.s32.totalorder %v6357_v40, %v6693_v57  ;;  %vm668_vm14 = vcmp.eq.s32.totalorder %v6360_v41, %v6693_v57 }
 0x12f   : > { %1837 = vmatmul.mubr.f32.gmra.mrb[68].mxu1 %v6757_v3  ;;  %vm4903_vm1 = vmpackc.low %vm668_vm14, %vm664_vm13 }
 0x130   : > { %1842 = vmatprep.mubr.f32.mxu1 %v6766_v18  ;;  %4884 = vmatpush1.bf16.msk.msra.mxu1 %vm4883_vm4, %v8755_v9  ;;  %vm657_vm4 = vcmp.eq.s32.totalorder %v6322_v36, %v6685_v15  ;;  %v8792_v18 = vld [vmem:[#allocation50_spill] sm:$0xff]  ;;  %v8805_v36 = vld [vmem:[#allocation65_spill] sm:$0xff] }
 0x131   : > { %4886 = vmatprep.subr.msk.bf16.mxu1 %vm4885_vm5, %v8755_v9  ;;  %vm661_vm5 = vcmp.eq.s32.totalorder %v6325_v37, %v6685_v15  ;;  %v8806_v37 = vld [vmem:[#allocation66_spill] sm:$0xff] }
 0x132   : > { %vm4897_vm6 = vmpackc.low %vm661_vm5, %vm657_vm4  ;;  %vm672_vm4 = vcmp.eq.s32.totalorder %v6392_v44, %v6693_v57  ;;  %vm676_vm5 = vcmp.eq.s32.totalorder %v6395_v45, %v6693_v57 }
 0x133   : > { %1843 = vmatmul.mubr.f32.gmra.mrb[70].mxu1 %v6777_v11  ;;  %vm4907_vm7 = vmpackc.low %vm676_vm5, %vm672_vm4 }
 0x134   : > { %1848 = vmatprep.mubr.f32.mxu1 %v6785_v56  ;;  %4888 = vmatpush1.bf16.msk.msra.mxu1 %vm4887_vm9, %v8755_v9  ;;  %vm665_vm9 = vcmp.eq.s32.totalorder %v6357_v40, %v6685_v15  ;;  %v8808_v40 = vld [vmem:[#allocation68_spill] sm:$0xff] }
 0x135   : > { %4890 = vmatprep.subr.msk.bf16.mxu1 %vm4889_vm10, %v8755_v9  ;;  %vm669_vm10 = vcmp.eq.s32.totalorder %v6360_v41, %v6685_v15 }
 0x136   : > { %vm4901_vm12 = vmpackc.low %vm669_vm10, %vm665_vm9  ;;  %vm680_vm9 = vcmp.eq.s32.totalorder %v6427_v48, %v6693_v57  ;;  %vm684_vm10 = vcmp.eq.s32.totalorder %v6430_v49, %v6693_v57 }
 0x137   : > { %1849 = vmatmul.mubr.f32.gmra.mrb[72].mxu1 %v6797_v8  ;;  %vm4911_vm13 = vmpackc.low %vm684_vm10, %vm680_vm9 }
 0x138   : > { %1854 = vmatprep.mubr.f32.mxu1 %v6805_v22  ;;  %4892 = vmatpush1.bf16.msk.msra.mxu1 %vm4891_vm15, %v8755_v9  ;;  %vm673_vm15 = vcmp.eq.s32.totalorder %v6392_v44, %v6685_v15  ;;  %v8795_v22 = vld [vmem:[#allocation55_spill] sm:$0xff] }
 0x139   : > { %4894 = vmatprep.subr.msk.bf16.mxu1 %vm4893_vm0, %v8755_v9  ;;  %vm677_vm0 = vcmp.eq.s32.totalorder %v6395_v45, %v6685_v15  ;;  %v8809_v45 = vld [vmem:[#allocation69_spill] sm:$0xff] }
 0x13a   : > { %vm4905_vm2 = vmpackc.low %vm677_vm0, %vm673_vm15  ;;  %vm688_vm15 = vcmp.eq.s32.totalorder %v6462_v52, %v6693_v57  ;;  %vm692_vm0 = vcmp.eq.s32.totalorder %v8787_v1, %v6693_v57 }
 0x13b   : > { %1855 = vmatmul.mubr.f32.gmra.mrb[74].mxu1 %v6817_v17  ;;  %vm4915_vm4 = vmpackc.low %vm692_vm0, %vm688_vm15  ;;  %v8813_v17 = vld [vmem:[#allocation73_spill] sm:$0xff] }
 0x13c   : > { %1860 = vmatprep.mubr.f32.mxu1 %v6825_v26  ;;  %4896 = vmatpush1.bf16.msk.msra.mxu1 %vm4895_vm3, %v8755_v9  ;;  %vm681_vm3 = vcmp.eq.s32.totalorder %v6427_v48, %v6685_v15  ;;  %v8798_v26 = vld [vmem:[#allocation58_spill] sm:$0xff] }
 0x13d   : > { %4898 = vmatprep.subr.msk.bf16.mxu1 %vm4897_vm6, %v8755_v9  ;;  %vm685_vm6 = vcmp.eq.s32.totalorder %v6430_v49, %v6685_v15  ;;  %v8810_v49 = vld [vmem:[#allocation70_spill] sm:$0xff] }
 0x13e   : > { %vm4909_vm8 = vmpackc.low %vm685_vm6, %vm681_vm3  ;;  %vm696_vm3 = vcmp.eq.s32.totalorder %v8788_v6, %v6693_v57  ;;  %vm700_vm6 = vcmp.eq.s32.totalorder %v8789_v7, %v6693_v57 }
 0x13f   : > { %1861 = vmatmul.mubr.f32.gmra.mrb[76].mxu1 %v6837_v19  ;;  %vm4919_vm9 = vmpackc.low %vm700_vm6, %vm696_vm3 }
 0x140   : > { %1866 = vmatprep.mubr.f32.mxu1 %v6845_v30  ;;  %4900 = vmatpush1.bf16.msk.msra.mxu1 %vm4899_vm11, %v8755_v9  ;;  %vm689_vm11 = vcmp.eq.s32.totalorder %v6462_v52, %v6685_v15  ;;  %v8801_v30 = vld [vmem:[#allocation61_spill] sm:$0xff] }
 0x141   : > { %4902 = vmatprep.subr.msk.bf16.mxu1 %vm4901_vm12, %v8755_v9  ;;  %vm693_vm12 = vcmp.eq.s32.totalorder %v8787_v1, %v6685_v15 }
 0x142   : > { %vm4913_vm14 = vmpackc.low %vm693_vm12, %vm689_vm11  ;;  %vm704_vm11 = vcmp.eq.s32.totalorder %v8790_v10, %v6693_v57  ;;  %vm708_vm12 = vcmp.eq.s32.totalorder %v8791_v13, %v6693_v57 }
 0x143   : > { %1867 = vmatmul.mubr.f32.gmra.mrb[78].mxu1 %v6857_v23  ;;  %vm4923_vm15 = vmpackc.low %vm708_vm12, %vm704_vm11 }
 0x144   : > { %1872 = vmatprep.mubr.f32.mxu1 %v6865_v34  ;;  %4904 = vmatpush1.bf16.msk.msra.mxu1 %vm4903_vm1, %v8755_v9  ;;  %vm697_vm1 = vcmp.eq.s32.totalorder %v8788_v6, %v6685_v15  ;;  %v8804_v34 = vld [vmem:[#allocation64_spill] sm:$0xff] }
 0x145   : > { %4906 = vmatprep.subr.msk.bf16.mxu1 %vm4905_vm2, %v8755_v9  ;;  %vm701_vm2 = vcmp.eq.s32.totalorder %v8789_v7, %v6685_v15 }
 0x146   : > { %vm4917_vm5 = vmpackc.low %vm701_vm2, %vm697_vm1  ;;  %vm712_vm1 = vcmp.eq.s32.totalorder %v6571_v4, %v6693_v57  ;;  %vm716_vm2 = vcmp.eq.s32.totalorder %v6574_v12, %v6693_v57 }
 0x147   : > { %1873 = vmatmul.mubr.f32.gmra.mrb[80].mxu1 %v6877_v27  ;;  %vm4927_vm3 = vmpackc.low %vm716_vm2, %vm712_vm1  ;;  %v8814_v27 = vld [vmem:[#allocation74_spill] sm:$0xff] }
 0x148   : > { %1878 = vmatprep.mubr.f32.mxu1 %v6885_v38  ;;  %4908 = vmatpush1.bf16.msk.msra.mxu1 %vm4907_vm7, %v8755_v9  ;;  %vm705_vm7 = vcmp.eq.s32.totalorder %v8790_v10, %v6685_v15  ;;  %v8807_v38 = vld [vmem:[#allocation67_spill] sm:$0xff] }
 0x149   : > { %4910 = vmatprep.subr.msk.bf16.mxu1 %vm4909_vm8, %v8755_v9  ;;  %vm709_vm8 = vcmp.eq.s32.totalorder %v8791_v13, %v6685_v15 }
 0x14a   : > { %vm4921_vm10 = vmpackc.low %vm709_vm8, %vm705_vm7  ;;  %vm720_vm7 = vcmp.eq.s32.totalorder %v6615_v16, %v6693_v57  ;;  %vm724_vm8 = vcmp.eq.s32.totalorder %v8792_v18, %v6693_v57 }
 0x14b   : > { %1879 = vmatmul.mubr.f32.gmra.mrb[82].mxu1 %v6897_v31  ;;  %vm4931_vm11 = vmpackc.low %vm724_vm8, %vm720_vm7 }
 0x14c   : > { %1884 = vmatprep.mubr.f32.mxu1 %v6905_v42  ;;  %4912 = vmatpush1.bf16.msk.msra.mxu1 %vm4911_vm13, %v8755_v9  ;;  %vm713_vm13 = vcmp.eq.s32.totalorder %v6571_v4, %v6685_v15 }
 0x14d   : > { %4914 = vmatprep.subr.msk.bf16.mxu1 %vm4913_vm14, %v8755_v9  ;;  %vm717_vm14 = vcmp.eq.s32.totalorder %v6574_v12, %v6685_v15 }
 0x14e   : > { %vm4925_vm0 = vmpackc.low %vm717_vm14, %vm713_vm13  ;;  %vm728_vm13 = vcmp.eq.s32.totalorder %v8793_v20, %v6693_v57  ;;  %vm732_vm14 = vcmp.eq.s32.totalorder %v8794_v21, %v6693_v57 }
 0x14f   : > { %1885 = vmatmul.mubr.f32.gmra.mrb[84].mxu1 %v6917_v35 }
 0x150   : > { %1890 = vmatprep.mubr.f32.mxu1 %v6925_v46  ;;  %4916 = vmatpush1.bf16.msk.msra.mxu1 %vm4915_vm4, %v8755_v9  ;;  %vm721_vm4 = vcmp.eq.s32.totalorder %v6615_v16, %v6685_v15  ;;  %v8812_v16 = vld [vmem:[#allocation72_spill] sm:$0xff] }
 0x151   : > { %4918 = vmatprep.subr.msk.bf16.mxu1 %vm4917_vm5, %v8755_v9  ;;  %vm725_vm5 = vcmp.eq.s32.totalorder %v8792_v18, %v6685_v15 }
 0x152   : > { %vm4929_vm6 = vmpackc.low %vm725_vm5, %vm721_vm4 }
 0x153   : > { %1891 = vmatmul.mubr.f32.gmra.mrb[86].mxu1 %v6937_v39 }
 0x154   : > { %1896 = vmatprep.mubr.f32.mxu1 %v6945_v50  ;;  %4920 = vmatpush1.bf16.msk.msra.mxu1 %vm4919_vm9, %v8755_v9  ;;  %vm729_vm9 = vcmp.eq.s32.totalorder %v8793_v20, %v6685_v15  ;;  %v8817_v20 = vld [vmem:[#allocation77_spill] sm:$0xff] }
 0x155   : > { %4922 = vmatprep.subr.msk.bf16.mxu1 %vm4921_vm10, %v8755_v9  ;;  %vm733_vm10 = vcmp.eq.s32.totalorder %v8794_v21, %v6685_v15 }
 0x156   : > { %vm4933_vm12 = vmpackc.low %vm733_vm10, %vm729_vm9 }
 0x157   : > { %1897 = vmatmul.mubr.f32.gmra.mrb[88].mxu1 %v6957_v43 }
 0x158   : > { %1902 = vmatprep.mubr.f32.mxu1 %v6965_v54  ;;  %4924 = vmatpush1.bf16.msk.msra.mxu1 %vm4923_vm15, %v8755_v9  ;;  %vm4935_vm15 = vmpackc.low %vm732_vm14, %vm728_vm13 }
 0x159   : > { %4926 = vmatprep.subr.msk.bf16.mxu1 %vm4925_vm0, %v8755_v9 }
 0x15b   : > { %1903 = vmatmul.mubr.f32.gmra.mrb[90].mxu1 %v6977_v47 }
 0x15c   : > { %1908 = vmatprep.mubr.f32.mxu1 %v6985_v58  ;;  %4928 = vmatpush1.bf16.msk.msra.mxu1 %vm4927_vm3, %v8755_v9  ;;  %v8811_v58 = vld [vmem:[#allocation71_spill] sm:$0xff] }
 0x15d   : > { %4930 = vmatprep.subr.msk.bf16.mxu1 %vm4929_vm6, %v8755_v9 }
 0x15f   : > { %1909 = vmatmul.mubr.f32.gmra.mrb[92].mxu1 %v8795_v22 }
 0x160   : > { %1914 = vmatprep.mubr.f32.mxu1 %v8796_v24  ;;  %4932 = vmatpush1.bf16.msk.msra.mxu1 %vm4931_vm11, %v8755_v9  ;;  %v8818_v24 = vld [vmem:[#allocation78_spill] sm:$0xff] }
 0x161   : > { %4934 = vmatprep.subr.msk.bf16.mxu1 %vm4933_vm12, %v8755_v9 }
 0x163   : > { %1915 = vmatmul.mubr.f32.gmra.mrb[94].mxu1 %v8797_v25 }
 0x164   : > { %1920 = vmatprep.mubr.f32.mxu1 %v8798_v26  ;;  %4936 = vmatpush1.bf16.msk.msra.mxu1 %vm4935_vm15, %v8755_v9 }
 0x167   : > { %1921 = vmatmul.mubr.f32.gmra.mrb[96].mxu1 %v8799_v28 }
 0x168   : > { %1926 = vmatprep.mubr.f32.mxu1 %v8800_v29 }
 0x16b   : > { %1927 = vmatmul.mubr.f32.gmra.mrb[98].mxu1 %v8801_v30 }
 0x16c   : > { %1932 = vmatprep.mubr.f32.mxu1 %v8802_v32 }
 0x16f   : > { %1933 = vmatmul.mubr.f32.gmra.mrb[100].mxu1 %v8803_v33  ;;  %v8819_v33 = vld [vmem:[#allocation79_spill] sm:$0xff] }
 0x170   : > { %1938 = vmatprep.mubr.f32.mxu1 %v8804_v34 }
 0x173   : > { %1939 = vmatmul.mubr.f32.gmra.mrb[102].mxu1 %v8805_v36 }
 0x174   : > { %1944 = vmatprep.mubr.f32.mxu1 %v8806_v37  ;;  %v8820_v37 = vld [vmem:[#allocation80_spill] sm:$0xff] }
 0x177   : > { %1945 = vmatmul.mubr.f32.gmra.mrb[104].mxu1 %v8807_v38 }
 0x178   : > { %1950 = vmatprep.mubr.f32.mxu1 %v8808_v40 }
 0x17a   : > { %v1312_v41 = vpop.f32.mrb[0].mxu1 }
 0x17b   : > { %v1569_v42 = vpop.f32.mrb[0].mxu0  ;;  %v1314_v44 = vpop.f32.mrb[1].mxu1  ;;  %1951 = vmatmul.mubr.f32.gmra.mrb[106].mxu1 %v8809_v45 }
 0x17c   : > { %v7388_v46 = vadd.f32 %v1569_v42, %v1312_v41  ;;  %v1571_v48 = vpop.f32.mrb[1].mxu0  ;;  %1956 = vmatprep.mubr.f32.mxu1 %v8810_v49 }
 0x17d   : > { %v7391_v50 = vadd.f32 %v1571_v48, %v1314_v44  ;;  %v8821_v48 = vld [vmem:[#allocation81_spill] sm:$0xff] }
 0x17e   : > { %v2274_v52 = vmul.f32 0.00390625, %v7388_v46  ;;  %v1318_v53 = vpop.f32.mrb[2].mxu1 }
 0x17f   : > { %v2275_v54 = vmul.f32 0.00390625, %v7391_v50  ;;  %v1575_v56 = vpop.f32.mrb[2].mxu0  ;;  %v1320_v57 = vpop.f32.mrb[3].mxu1  ;;  %1957 = vmatmul.mubr.f32.gmra.mrb[108].mxu1 %v8811_v58 }
 0x180   : > { %2338 = vst [vmem:[%s7398_s24] sm:$0xff] %v2274_v52  ;;  %v7401_v4 = vadd.f32 %v1575_v56, %v1318_v53  ;;  %v1577_v12 = vpop.f32.mrb[3].mxu0  ;;  %1962 = vmatprep.mubr.f32.mxu1 %v8812_v16  ;;  %v8822_v53 = vld [vmem:[#allocation82_spill] sm:$0xff] }
 0x181   : > { %2339 = vst [vmem:[%s7398_s24 + $0x8] sm:$0xff] %v2275_v54  ;;  %v7405_v15 = vadd.f32 %v1577_v12, %v1320_v57 }
 0x182   : > { %v2276_v5 = vmul.f32 0.00390625, %v7401_v4  ;;  %v1324_v60 = vpop.f32.mrb[4].mxu1 }
 0x183   : > { %v2277_v3 = vmul.f32 0.00390625, %v7405_v15  ;;  %v1581_v11 = vpop.f32.mrb[4].mxu0  ;;  %v1326_v8 = vpop.f32.mrb[5].mxu1  ;;  %1963 = vmatmul.mubr.f32.gmra.mrb[110].mxu1 %v8813_v17 }
 0x184   : > { %2340 = vst [vmem:[%s7398_s24 + $0x10] sm:$0xff] %v2276_v5  ;;  %v7411_v19 = vadd.f32 %v1581_v11, %v1324_v60  ;;  %v1583_v23 = vpop.f32.mrb[5].mxu0  ;;  %1968 = vmatprep.mubr.f32.mxu1 %v8814_v27  ;;  %v8823_v5 = vld [vmem:[#allocation83_spill] sm:$0xff]  ;;  %v8824_v11 = vld [vmem:[#allocation84_spill] sm:$0xff] }
 0x185   : > { %2341 = vst [vmem:[%s7398_s24 + $0x18] sm:$0xff] %v2277_v3  ;;  %v7415_v31 = vadd.f32 %v1583_v23, %v1326_v8 }
 0x186   : > { %v2278_v35 = vmul.f32 0.00390625, %v7411_v19  ;;  %v1330_v39 = vpop.f32.mrb[6].mxu1 }
 0x187   : > { %v2279_v43 = vmul.f32 0.00390625, %v7415_v31  ;;  %v1587_v47 = vpop.f32.mrb[6].mxu0  ;;  %v1332_v59 = vpop.f32.mrb[7].mxu1  ;;  %1969 = vmatmul.mubr.f32.gmra.mrb[112].mxu1 %v8815_v0 }
 0x188   : > { %2342 = vst [vmem:[%s7398_s24 + $0x20] sm:$0xff] %v2278_v35  ;;  %v7421_v55 = vadd.f32 %v1587_v47, %v1330_v39  ;;  %v1589_v61 = vpop.f32.mrb[7].mxu0  ;;  %1974 = vmatprep.mubr.f32.mxu1 %v8816_v63 }
 0x189   : > { %2343 = vst [vmem:[%s7398_s24 + $0x28] sm:$0xff] %v2279_v43  ;;  %v7425_v1 = vadd.f32 %v1589_v61, %v1332_v59  ;;  %v8825_v43 = vld [vmem:[#allocation85_spill] sm:$0xff] }
 0x18a   : > { %v2280_v6 = vmul.f32 0.00390625, %v7421_v55  ;;  %v1336_v7 = vpop.f32.mrb[8].mxu1 }
 0x18b   : > { %v2281_v10 = vmul.f32 0.00390625, %v7425_v1  ;;  %v1593_v13 = vpop.f32.mrb[8].mxu0  ;;  %v1338_v18 = vpop.f32.mrb[9].mxu1  ;;  %1975 = vmatmul.mubr.f32.gmra.mrb[114].mxu1 %v8817_v20 }
 0x18c   : > { %2344 = vst [vmem:[%s7398_s24 + $0x30] sm:$0xff] %v2280_v6  ;;  %v7431_v21 = vadd.f32 %v1593_v13, %v1336_v7  ;;  %v1595_v22 = vpop.f32.mrb[9].mxu0  ;;  %1980 = vmatprep.mubr.f32.mxu1 %v8818_v24 }
 0x18d   : > { %2345 = vst [vmem:[%s7398_s24 + $0x38] sm:$0xff] %v2281_v10  ;;  %v7435_v25 = vadd.f32 %v1595_v22, %v1338_v18 }
 0x18e   : > { %v2282_v26 = vmul.f32 0.00390625, %v7431_v21  ;;  %v1342_v28 = vpop.f32.mrb[10].mxu1 }
 0x18f   : > { %v2283_v29 = vmul.f32 0.00390625, %v7435_v25  ;;  %v1599_v30 = vpop.f32.mrb[10].mxu0  ;;  %v1344_v32 = vpop.f32.mrb[11].mxu1  ;;  %1981 = vmatmul.mubr.f32.gmra.mrb[116].mxu1 %v8819_v33 }
 0x190   : > { %2346 = vst [vmem:[%s7398_s24 + $0x40] sm:$0xff] %v2282_v26  ;;  %v7441_v34 = vadd.f32 %v1599_v30, %v1342_v28  ;;  %v1601_v36 = vpop.f32.mrb[11].mxu0  ;;  %1986 = vmatprep.mubr.f32.mxu1 %v8820_v37 }
 0x191   : > { %2347 = vst [vmem:[%s7398_s24 + $0x48] sm:$0xff] %v2283_v29  ;;  %v7445_v38 = vadd.f32 %v1601_v36, %v1344_v32  ;;  %v5893_v32 = vmov 0.0|0.0  }
 0x192   : > { %v2284_v40 = vmul.f32 0.00390625, %v7441_v34  ;;  %v1348_v41 = vpop.f32.mrb[12].mxu1  ;;  %4937 = vmatprep.subr.bf16.mxu0 %v5893_v32 }
 0x193   : > { %v2285_v42 = vmul.f32 0.00390625, %v7445_v38  ;;  %v1605_v44 = vpop.f32.mrb[12].mxu0  ;;  %v1350_v45 = vpop.f32.mrb[13].mxu1  ;;  %1987 = vmatmul.mubr.f32.gmra.mrb[118].mxu1 %v8821_v48 }
 0x194   : > { %2348 = vst [vmem:[%s7398_s24 + $0x50] sm:$0xff] %v2284_v40  ;;  %v7451_v49 = vadd.f32 %v1605_v44, %v1348_v41  ;;  %v1607_v52 = vpop.f32.mrb[13].mxu0  ;;  %1992 = vmatprep.mubr.f32.mxu1 %v8822_v53  ;;  %v5646_v53 = vld [vmem:[%s6073_s5 + $0x38] sm:$0xff] }
 0x195   : > { %2349 = vst [vmem:[%s7398_s24 + $0x58] sm:$0xff] %v2285_v42  ;;  %v7455_v54 = vadd.f32 %v1607_v52, %v1350_v45  ;;  %v5645_v45 = vld [vmem:[%s6073_s5 + $0x10] sm:$0xff] }
 0x196   : > { %v2286_v56 = vmul.f32 0.00390625, %v7451_v49  ;;  %v1354_v57 = vpop.f32.mrb[14].mxu1 }
 0x197   : > { %v2287_v58 = vmul.f32 0.00390625, %v7455_v54  ;;  %v1611_v12 = vpop.f32.mrb[14].mxu0  ;;  %v1356_v16 = vpop.f32.mrb[15].mxu1  ;;  %1993 = vmatmul.mubr.f32.gmra.mrb[120].mxu1 %v8823_v5 }
 0x198   : > { %2350 = vst [vmem:[%s7398_s24 + $0x60] sm:$0xff] %v2286_v56  ;;  %v7461_v60 = vadd.f32 %v1611_v12, %v1354_v57  ;;  %v1613_v3 = vpop.f32.mrb[15].mxu0  ;;  %1998 = vmatprep.mubr.f32.mxu1 %v8824_v11  ;;  %v8826_v57 = vld [vmem:[#allocation15_spill] sm:$0xff] }
 0x199   : > { %2351 = vst [vmem:[%s7398_s24 + $0x68] sm:$0xff] %v2287_v58  ;;  %v7465_v8 = vadd.f32 %v1613_v3, %v1356_v16  ;;  %v2956_v58 = vsub.s32 0, %v8826_v57 }
 0x19a   : > { %v2288_v17 = vmul.f32 0.00390625, %v7461_v60  ;;  %v1360_v23 = vpop.f32.mrb[16].mxu1 }
 0x19b   : > { %v2289_v27 = vmul.f32 0.00390625, %v7465_v8  ;;  %v1617_v35 = vpop.f32.mrb[16].mxu0  ;;  %v1362_v39 = vpop.f32.mrb[17].mxu1  ;;  %1999 = vmatmul.mubr.f32.gmra.mrb[122].mxu1 %v8825_v43  ;;  %v5648_v43 = vld [vmem:[%s6073_s5 + $0x58] sm:$0xff] }
 0x19c   : > { %2352 = vst [vmem:[%s7398_s24 + $0x70] sm:$0xff] %v2288_v17  ;;  %v7471_v47 = vadd.f32 %v1617_v35, %v1360_v23  ;;  %v1619_v59 = vpop.f32.mrb[17].mxu0  ;;  %2004 = vmatprep.mubr.f32.mxu1 %v7169_v14 }
 0x19d   : > { %2353 = vst [vmem:[%s7398_s24 + $0x78] sm:$0xff] %v2289_v27  ;;  %v7475_v0 = vadd.f32 %v1619_v59, %v1362_v39  ;;  %v5647_v27 = vld [vmem:[%s6073_s5 + $0x30] sm:$0xff] }
 0x19e   : > { %v2290_v61 = vmul.f32 0.00390625, %v7471_v47  ;;  %v1366_v63 = vpop.f32.mrb[18].mxu1 }
 0x19f   : > { %v2291_v6 = vmul.f32 0.00390625, %v7475_v0  ;;  %v1623_v7 = vpop.f32.mrb[18].mxu0  ;;  %v1368_v10 = vpop.f32.mrb[19].mxu1  ;;  %2005 = vmatmul.mubr.f32.gmra.mrb[124].mxu1 %v7175_v51  ;;  %v2915_v51 = vld [vmem:[%s6083_s29] sm:$0x3] }
 0x1a0   : > { %2354 = vst [vmem:[%s7398_s24 + $0x80] sm:$0xff] %v2290_v61  ;;  %v7481_v13 = vadd.f32 %v1623_v7, %v1366_v63  ;;  %v1625_v18 = vpop.f32.mrb[19].mxu0  ;;  %2010 = vmatprep.mubr.f32.mxu1 %v7179_v2  ;;  %v5644_v2 = vld [vmem:[%s6073_s5 + $0x18] sm:$0xff]  ;;  %v2916_v33 = vmul.f32 256.0, %v2915_v51  ;;  %v8827_v7 = vld [vmem:[#allocation16_spill] sm:$0xff] }
 0x1a1   : > { %2355 = vst [vmem:[%s7398_s24 + $0x88] sm:$0xff] %v2291_v6  ;;  %v7485_v14 = vadd.f32 %v1625_v18, %v1368_v10  ;;  %v8828_v10 = vld [vmem:[#allocation17_spill] sm:$0xff] }
 0x1a2   : > { %v2292_v20 = vmul.f32 0.00390625, %v7481_v13  ;;  %v1372_v22 = vpop.f32.mrb[20].mxu1  ;;  %v4573_v40 = vmax.f32 %v2916_v33, 0.0 }
 0x1a3   : > { %v2293_v24 = vmul.f32 0.00390625, %v7485_v14  ;;  %v1629_v26 = vpop.f32.mrb[20].mxu0  ;;  %v1374_v28 = vpop.f32.mrb[21].mxu1  ;;  %2011 = vmatmul.mubr.f32.gmra.mrb[126].mxu1 %v7185_v62 }
 0x1a4   : > { %2356 = vst [vmem:[%s7398_s24 + $0x90] sm:$0xff] %v2292_v20  ;;  %v7492_v29 = vadd.f32 %v1629_v26, %v1372_v22  ;;  %v1631_v30 = vpop.f32.mrb[21].mxu0  ;;  %2081 = vmatprep.mubr.f32.mxu1 %v5644_v2  ;;  %v7506_v56 = vmin.f32 %v4573_v40, 255.0  ;;  %v8829_v26 = vld [vmem:[#allocation18_spill] sm:$0xff]  ;;  %v8831_v40 = vld [vmem:[#allocation20_spill] sm:$0xff] }
 0x1a5   : > { %2357 = vst [vmem:[%s7398_s24 + $0x98] sm:$0xff] %v2293_v24  ;;  %v7497_v36 = vadd.f32 %v1631_v30, %v1374_v28  ;;  %v5649_v24 = vld [vmem:[%s6073_s5 + $0x50] sm:$0xff]  ;;  %v5650_v30 = vld [vmem:[%s6073_s5 + $0x78] sm:$0xff] }
 0x1a6   : > { %v2294_v62 = vmul.f32 0.00390625, %v7492_v29  ;;  %v1378_v37 = vpop.f32.mrb[22].mxu1  ;;  %v8686_v3 = vcvt.f32.s32 %v7506_v56 }
 0x1a7   : > { %v2295_v41 = vmul.f32 0.00390625, %v7497_v36  ;;  %v1635_v42 = vpop.f32.mrb[22].mxu0  ;;  %v1380_v44 = vpop.f32.mrb[23].mxu1  ;;  %2082 = vmatmul.mubr.f32.vlgmr.msra.gmra.mrb[64].mxu1 %v5645_v45  ;;  %v5651_v45 = vld [vmem:[%s6073_s5 + $0x70] sm:$0xff] }
 0x1a8   : > { %2358 = vst [vmem:[%s7398_s24 + $0xa0] sm:$0xff] %v2294_v62  ;;  %v7503_v48 = vadd.f32 %v1635_v42, %v1378_v37  ;;  %v1637_v52 = vpop.f32.mrb[23].mxu0  ;;  %2087 = vmatprep.mubr.f32.mxu1 %v5646_v53  ;;  %v7522_v59 = vrot.slane %v8686_v3, %v2956_v58  ;;  %v8830_v37 = vld [vmem:[#allocation19_spill] sm:$0xff]  ;;  %v5652_v58 = vld [vmem:[%s6073_s5 + $0x98] sm:$0xff] }
 0x1a9   : > { %2359 = vst [vmem:[%s7398_s24 + $0xa8] sm:$0xff] %v2295_v41  ;;  %v7510_v12 = vadd.f32 %v1637_v52, %v1380_v44 }
 0x1aa   : > { %v2296_v16 = vmul.f32 0.00390625, %v7503_v48  ;;  %v1384_v5 = vpop.f32.mrb[24].mxu1  ;;  %vm2958_vm0 = vcmp.eq.s32.totalorder %v8826_v57, %v7522_v59  ;;  %vm2959_vm1 = vcmp.eq.s32.totalorder %v8827_v7, %v7522_v59  ;;  %vm2960_vm2 = vcmp.eq.s32.totalorder %v8828_v10, %v7522_v59 }
 0x1ab   : > { %v2297_v11 = vmul.f32 0.00390625, %v7510_v12  ;;  %v1641_v17 = vpop.f32.mrb[24].mxu0  ;;  %v1386_v23 = vpop.f32.mrb[25].mxu1  ;;  %2088 = vmatmul.mubr.f32.gmra.mrb[66].mxu1 %v5647_v27  ;;  %vm4938_vm4 = vmpackc.low %vm2959_vm1, %vm2958_vm0  ;;  %vm2961_vm5 = vcmp.eq.s32.totalorder %v8829_v26, %v7522_v59  ;;  %vm2962_vm6 = vcmp.eq.s32.totalorder %v8830_v37, %v7522_v59  ;;  %vm2963_vm7 = vcmp.eq.s32.totalorder %v8831_v40, %v7522_v59 }
 0x1ac   : > { %2360 = vst [vmem:[%s7398_s24 + $0xb0] sm:$0xff] %v2296_v16  ;;  %v7517_v35 = vadd.f32 %v1641_v17, %v1384_v5  ;;  %v1643_v39 = vpop.f32.mrb[25].mxu0  ;;  %2093 = vmatprep.mubr.f32.mxu1 %v5648_v43  ;;  %4939 = vmatpush1.bf16.msk.msra.mxu0 %vm4938_vm4, %v8755_v9  ;;  %vm4941_vm3 = vmpackc.low %vm2961_vm5, %vm2960_vm2  ;;  %v8832_v17 = vld [vmem:[#allocation21_spill] sm:$0xff] }
 0x1ad   : > { %2361 = vst [vmem:[%s7398_s24 + $0xb8] sm:$0xff] %v2297_v11  ;;  %v7525_v61 = vadd.f32 %v1643_v39, %v1386_v23  ;;  %4940 = vmatprep.subr.bf16.mxu0 %v5893_v32  ;;  %vm4944_vm8 = vmpackc.low %vm2963_vm7, %vm2962_vm6  ;;  %vm2964_vm9 = vcmp.eq.s32.totalorder %v8832_v17, %v7522_v59  ;;  %v8833_v23 = vld [vmem:[#allocation22_spill] sm:$0xff] }
 0x1ae   : > { %v2298_v63 = vmul.f32 0.00390625, %v7517_v35  ;;  %v1390_v6 = vpop.f32.mrb[26].mxu1  ;;  %vm2965_vm10 = vcmp.eq.s32.totalorder %v8833_v23, %v7522_v59 }
 0x1af   : > { %v2299_v18 = vmul.f32 0.00390625, %v7525_v61  ;;  %v1647_v20 = vpop.f32.mrb[26].mxu0  ;;  %v1392_v22 = vpop.f32.mrb[27].mxu1  ;;  %2094 = vmatmul.mubr.f32.gmra.mrb[68].mxu1 %v5649_v24  ;;  %vm4947_vm11 = vmpackc.low %vm2965_vm10, %vm2964_vm9 }
 0x1b0   : > { %2362 = vst [vmem:[%s7398_s24 + $0xc0] sm:$0xff] %v2298_v63  ;;  %v7539_v28 = vadd.f32 %v1647_v20, %v1390_v6  ;;  %v1649_v51 = vpop.f32.mrb[27].mxu0  ;;  %2099 = vmatprep.mubr.f32.mxu1 %v5650_v30  ;;  %4942 = vmatpush1.bf16.msk.msra.mxu0 %vm4941_vm3, %v8755_v9  ;;  %v5653_v63 = vld [vmem:[%s6073_s5 + $0x90] sm:$0xff]  ;;  %v5654_v20 = vld [vmem:[%s6073_s5 + $0xb8] sm:$0xff] }
 0x1b1   : > { %2363 = vst [vmem:[%s7398_s24 + $0xc8] sm:$0xff] %v2299_v18  ;;  %v7544_v2 = vadd.f32 %v1649_v51, %v1392_v22  ;;  %4943 = vmatprep.subr.bf16.mxu0 %v5893_v32 }
 0x1b2   : > { %v2300_v33 = vmul.f32 0.00390625, %v7539_v28  ;;  %v1396_v62 = vpop.f32.mrb[28].mxu1 }
 0x1b3   : > { %v2301_v41 = vmul.f32 0.00390625, %v7544_v2  ;;  %v1653_v42 = vpop.f32.mrb[28].mxu0  ;;  %v1398_v44 = vpop.f32.mrb[29].mxu1  ;;  %2100 = vmatmul.mubr.f32.gmra.mrb[70].mxu1 %v5651_v45 }
 0x1b4   : > { %2364 = vst [vmem:[%s7398_s24 + $0xd0] sm:$0xff] %v2300_v33  ;;  %v7558_v52 = vadd.f32 %v1653_v42, %v1396_v62  ;;  %v1655_v53 = vpop.f32.mrb[29].mxu0  ;;  %2105 = vmatprep.mubr.f32.mxu1 %v5652_v58  ;;  %4945 = vmatpush1.bf16.msk.msra.mxu0 %vm4944_vm8, %v8755_v9  ;;  %v8834_v42 = vld [vmem:[#allocation23_spill] sm:$0xff]  ;;  %v5656_v58 = vld [vmem:[%s6073_s5 + $0xd8] sm:$0xff] }
 0x1b5   : > { %2365 = vst [vmem:[%s7398_s24 + $0xd8] sm:$0xff] %v2301_v41  ;;  %v7563_v16 = vadd.f32 %v1655_v53, %v1398_v44  ;;  %4946 = vmatprep.subr.bf16.mxu0 %v5893_v32  ;;  %v5655_v41 = vld [vmem:[%s6073_s5 + $0xb0] sm:$0xff]  ;;  %vm2966_vm12 = vcmp.eq.s32.totalorder %v8834_v42, %v7522_v59 }
 0x1b6   : > { %v2302_v5 = vmul.f32 0.00390625, %v7558_v52  ;;  %v1402_v11 = vpop.f32.mrb[30].mxu1  ;;  %v8835_v44 = vld [vmem:[#allocation24_spill] sm:$0xff] }
 0x1b7   : > { %v2303_v27 = vmul.f32 0.00390625, %v7563_v16  ;;  %v1659_v39 = vpop.f32.mrb[30].mxu0  ;;  %v1404_v43 = vpop.f32.mrb[31].mxu1  ;;  %2106 = vmatmul.mubr.f32.gmra.mrb[72].mxu1 %v5653_v63  ;;  %vm2967_vm13 = vcmp.eq.s32.totalorder %v8835_v44, %v7522_v59 }
 0x1b8   : > { %2366 = vst [vmem:[%s7398_s24 + $0xe0] sm:$0xff] %v2302_v5  ;;  %v7580_v6 = vadd.f32 %v1659_v39, %v1402_v11  ;;  %v1661_v18 = vpop.f32.mrb[31].mxu0  ;;  %2111 = vmatprep.mubr.f32.mxu1 %v5654_v20  ;;  %4948 = vmatpush1.bf16.msk.msra.mxu0 %vm4947_vm11, %v8755_v9  ;;  %vm7607_vm14 = vmpackc.low %vm2967_vm13, %vm2966_vm12  ;;  %v5657_v20 = vld [vmem:[%s6073_s5 + $0xd0] sm:$0xff] }
 0x1b9   : > { %2367 = vst [vmem:[%s7398_s24 + $0xe8] sm:$0xff] %v2303_v27  ;;  %v7585_v22 = vadd.f32 %v1661_v18, %v1404_v43  ;;  %4949 = vmatprep.subr.bf16.mxu0 %v5893_v32 }
 0x1ba   : > { %v2304_v24 = vmul.f32 0.00390625, %v7580_v6  ;;  %v1408_v51 = vpop.f32.mrb[32].mxu1 }
 0x1bb   : > { %v2305_v30 = vmul.f32 0.00390625, %v7585_v22  ;;  %v1665_v33 = vpop.f32.mrb[32].mxu0  ;;  %v1410_v62 = vpop.f32.mrb[33].mxu1  ;;  %2112 = vmatmul.mubr.f32.gmra.mrb[74].mxu1 %v5655_v41  ;;  %v5658_v41 = vld [vmem:[%s6073_s5 + $0xf8] sm:$0xff] }
 0x1bc   : > { %2368 = vst [vmem:[%s7398_s24 + $0xf0] sm:$0xff] %v2304_v24  ;;  %v1666_v45 = vadd.f32 %v1665_v33, %v1408_v51  ;;  %v1667_v53 = vpop.f32.mrb[33].mxu0  ;;  %2117 = vmatprep.mubr.f32.mxu1 %v5656_v58  ;;  %v8839_v33 = vld [vmem:[#allocation26_spill] sm:$0xff]  ;;  %4951 = vmatpush1.bf16.msk.msra.mxu0 %vm7607_vm14, %v8755_v9 }
 0x1bd   : > { %2369 = vst [vmem:[%s7398_s24 + $0xf8] sm:$0xff] %v2305_v30  ;;  %v1668_v5 = vadd.f32 %v1667_v53, %v1410_v62  ;;  %v8838_v30 = vld [vmem:[#allocation25_spill] sm:$0xff]  ;;  %vm2969_vm0 = vcmp.eq.s32.totalorder %v8839_v33, %v7522_v59  ;;  %4952 = vmatprep.subr.bf16.mxu0 %v5893_v32 }
 0x1be   : > { %v2306_v11 = vmul.f32 0.00390625, %v1666_v45  ;;  %v1414_v27 = vpop.f32.mrb[34].mxu1  ;;  %v5195_v39 = vpack.i.bf16 %v7388_v46, %v1666_v45  ;;  %vm2968_vm15 = vcmp.eq.s32.totalorder %v8838_v30, %v7522_v59 }
 0x1bf   : > { %v2307_v63 = vmul.f32 0.00390625, %v1668_v5  ;;  %v1671_v18 = vpop.f32.mrb[34].mxu0  ;;  %2118 = vmatmul.mubr.f32.gmra.mrb[76].mxu1 %v5657_v20  ;;  %v1416_v24 = vpop.f32.mrb[35].mxu1  ;;  %v5307_v51 = vpack.i.bf16 %v7391_v50, %v1668_v5  ;;  %vm7631_vm1 = vmpackc.low %vm2969_vm0, %vm2968_vm15 }
 0x1c0   : > { %2370 = vst [vmem:[%s7398_s24 + $0x100] sm:$0xff] %v2306_v11  ;;  %v1672_v46 = vadd.f32 %v1671_v18, %v1414_v27  ;;  %v1673_v62 = vpop.f32.mrb[35].mxu0  ;;  %5196 = vxpose.xlu0.b32.start [1/16] %v5195_v39, 128  ;;  %2123 = vmatprep.mubr.f32.mxu1 %v5658_v41  ;;  %v5659_v39 = vld [vmem:[%s6073_s5 + $0xf0] sm:$0xff] }
 0x1c1   : > { %2371 = vst [vmem:[%s7398_s24 + $0x108] sm:$0xff] %v2307_v63  ;;  %v1674_v45 = vadd.f32 %v1673_v62, %v1416_v24  ;;  %5308 = vxpose.xlu1.b32.start [1/16] %v5307_v51, 128  ;;  %v8842_v63 = vld [vmem:[#allocation27_spill] sm:$0xff]  ;;  %v8843_v18 = vld [vmem:[#allocation28_spill] sm:$0xff]  ;;  %v5660_v51 = vld [vmem:[%s6073_s5 + $0x118] sm:$0xff]  ;;  %4954 = vmatpush1.bf16.msk.msra.mxu0 %vm7631_vm1, %v8755_v9 }
 0x1c2   : > { %v2308_v50 = vmul.f32 0.00390625, %v1672_v46  ;;  %v1420_v53 = vpop.f32.mrb[36].mxu1  ;;  %v5197_v58 = vpack.i.bf16 %v7401_v4, %v1672_v46  ;;  %vm2970_vm2 = vcmp.eq.s32.totalorder %v8842_v63, %v7522_v59  ;;  %vm2971_vm4 = vcmp.eq.s32.totalorder %v8843_v18, %v7522_v59  ;;  %4955 = vmatprep.subr.bf16.mxu0 %v5893_v32 }
 0x1c3   : > { %v2309_v11 = vmul.f32 0.00390625, %v1674_v45  ;;  %v1677_v27 = vpop.f32.mrb[36].mxu0  ;;  %2124 = vmatmul.mubr.f32.gmra.mrb[78].mxu1 %v5659_v39  ;;  %v1422_v43 = vpop.f32.mrb[37].mxu1  ;;  %v5309_v4 = vpack.i.bf16 %v7405_v15, %v1674_v45  ;;  %vm7655_vm5 = vmpackc.low %vm2971_vm4, %vm2970_vm2 }
 0x1c4   : > { %2372 = vst [vmem:[%s7398_s24 + $0x110] sm:$0xff] %v2308_v50  ;;  %v1678_v20 = vadd.f32 %v1677_v27, %v1420_v53  ;;  %v1679_v24 = vpop.f32.mrb[37].mxu0  ;;  %5198 = vxpose.xlu0.b32.cont [2/16] %v5197_v58, 128  ;;  %2129 = vmatprep.mubr.f32.mxu1 %v5660_v51  ;;  %v5661_v58 = vld [vmem:[%s6073_s5 + $0x110] sm:$0xff]  ;;  %v8847_v27 = vld [vmem:[#allocation30_spill] sm:$0xff] }
 0x1c5   : > { %2373 = vst [vmem:[%s7398_s24 + $0x118] sm:$0xff] %v2309_v11  ;;  %v1680_v46 = vadd.f32 %v1679_v24, %v1422_v43  ;;  %5310 = vxpose.xlu1.b32.cont [2/16] %v5309_v4, 128  ;;  %v8846_v11 = vld [vmem:[#allocation29_spill] sm:$0xff]  ;;  %vm2973_vm6 = vcmp.eq.s32.totalorder %v8847_v27, %v7522_v59  ;;  %4957 = vmatpush1.bf16.msk.msra.mxu0 %vm7655_vm5, %v8755_v9 }
 0x1c6   : > { %v2310_v15 = vmul.f32 0.00390625, %v1678_v20  ;;  %v1426_v62 = vpop.f32.mrb[38].mxu1  ;;  %v5199_v41 = vpack.i.bf16 %v7411_v19, %v1678_v20  ;;  %vm2972_vm3 = vcmp.eq.s32.totalorder %v8846_v11, %v7522_v59  ;;  %v5662_v4 = vld [vmem:[%s6073_s5 + $0x138] sm:$0xff]  ;;  %4958 = vmatprep.subr.bf16.mxu0 %v5893_v32 }
 0x1c7   : > { %v2311_v50 = vmul.f32 0.00390625, %v1680_v46  ;;  %v1683_v53 = vpop.f32.mrb[38].mxu0  ;;  %2130 = vmatmul.mubr.f32.gmra.mrb[80].mxu1 %v5661_v58  ;;  %v1428_v5 = vpop.f32.mrb[39].mxu1  ;;  %v5311_v19 = vpack.i.bf16 %v7415_v31, %v1680_v46  ;;  %vm7679_vm7 = vmpackc.low %vm2973_vm6, %vm2972_vm3 }
 0x1c8   : > { %2374 = vst [vmem:[%s7398_s24 + $0x120] sm:$0xff] %v2310_v15  ;;  %v1684_v39 = vadd.f32 %v1683_v53, %v1426_v62  ;;  %v1685_v43 = vpop.f32.mrb[39].mxu0  ;;  %5200 = vxpose.xlu0.b32.cont [3/16] %v5199_v41, 128  ;;  %2135 = vmatprep.mubr.f32.mxu1 %v5662_v4  ;;  %v5663_v41 = vld [vmem:[%s6073_s5 + $0x130] sm:$0xff] }
 0x1c9   : > { %2375 = vst [vmem:[%s7398_s24 + $0x128] sm:$0xff] %v2311_v50  ;;  %v1686_v20 = vadd.f32 %v1685_v43, %v1428_v5  ;;  %5312 = vxpose.xlu1.b32.cont [3/16] %v5311_v19, 128  ;;  %v8850_v50 = vld [vmem:[#allocation31_spill] sm:$0xff]  ;;  %v8851_v53 = vld [vmem:[#allocation32_spill] sm:$0xff]  ;;  %v5664_v19 = vld [vmem:[%s6073_s5 + $0x158] sm:$0xff]  ;;  %4960 = vmatpush1.bf16.msk.msra.mxu0 %vm7679_vm7, %v8755_v9 }
 0x1ca   : > { %v2312_v31 = vmul.f32 0.00390625, %v1684_v39  ;;  %v1432_v24 = vpop.f32.mrb[40].mxu1  ;;  %v5201_v51 = vpack.i.bf16 %v7421_v55, %v1684_v39  ;;  %vm2974_vm8 = vcmp.eq.s32.totalorder %v8850_v50, %v7522_v59  ;;  %vm2975_vm9 = vcmp.eq.s32.totalorder %v8851_v53, %v7522_v59  ;;  %4961 = vmatprep.subr.bf16.mxu0 %v5893_v32 }
 0x1cb   : > { %v2313_v15 = vmul.f32 0.00390625, %v1686_v20  ;;  %v1689_v62 = vpop.f32.mrb[40].mxu0  ;;  %2136 = vmatmul.mubr.f32.gmra.mrb[82].mxu1 %v5663_v41  ;;  %v1434_v45 = vpop.f32.mrb[41].mxu1  ;;  %v5313_v55 = vpack.i.bf16 %v7425_v1, %v1686_v20  ;;  %vm7703_vm10 = vmpackc.low %vm2975_vm9, %vm2974_vm8 }
 0x1cc   : > { %2376 = vst [vmem:[%s7398_s24 + $0x130] sm:$0xff] %v2312_v31  ;;  %v1690_v58 = vadd.f32 %v1689_v62, %v1432_v24  ;;  %v1691_v5 = vpop.f32.mrb[41].mxu0  ;;  %5202 = vxpose.xlu0.b32.cont [4/16] %v5201_v51, 128  ;;  %2141 = vmatprep.mubr.f32.mxu1 %v5664_v19  ;;  %v5665_v51 = vld [vmem:[%s6073_s5 + $0x150] sm:$0xff]  ;;  %v8855_v62 = vld [vmem:[#allocation34_spill] sm:$0xff] }
 0x1cd   : > { %2377 = vst [vmem:[%s7398_s24 + $0x138] sm:$0xff] %v2313_v15  ;;  %v1692_v39 = vadd.f32 %v1691_v5, %v1434_v45  ;;  %5314 = vxpose.xlu1.b32.cont [4/16] %v5313_v55, 128  ;;  %v8854_v15 = vld [vmem:[#allocation33_spill] sm:$0xff]  ;;  %vm2977_vm12 = vcmp.eq.s32.totalorder %v8855_v62, %v7522_v59  ;;  %4963 = vmatpush1.bf16.msk.msra.mxu0 %vm7703_vm10, %v8755_v9 }
 0x1ce   : > { %v2314_v1 = vmul.f32 0.00390625, %v1690_v58  ;;  %v1438_v43 = vpop.f32.mrb[42].mxu1  ;;  %v5203_v4 = vpack.i.bf16 %v7431_v21, %v1690_v58  ;;  %vm2976_vm11 = vcmp.eq.s32.totalorder %v8854_v15, %v7522_v59  ;;  %v5666_v55 = vld [vmem:[%s6073_s5 + $0x178] sm:$0xff]  ;;  %4964 = vmatprep.subr.bf16.mxu0 %v5893_v32 }
 0x1cf   : > { %v2315_v31 = vmul.f32 0.00390625, %v1692_v39  ;;  %v1695_v24 = vpop.f32.mrb[42].mxu0  ;;  %2142 = vmatmul.mubr.f32.gmra.mrb[84].mxu1 %v5665_v51  ;;  %v1440_v46 = vpop.f32.mrb[43].mxu1  ;;  %v5315_v21 = vpack.i.bf16 %v7435_v25, %v1692_v39  ;;  %vm7727_vm13 = vmpackc.low %vm2977_vm12, %vm2976_vm11 }
 0x1d0   : > { %2378 = vst [vmem:[%s7398_s24 + $0x140] sm:$0xff] %v2314_v1  ;;  %v1696_v41 = vadd.f32 %v1695_v24, %v1438_v43  ;;  %v1697_v45 = vpop.f32.mrb[43].mxu0  ;;  %5204 = vxpose.xlu0.b32.cont [5/16] %v5203_v4, 128  ;;  %2147 = vmatprep.mubr.f32.mxu1 %v5666_v55  ;;  %v5667_v4 = vld [vmem:[%s6073_s5 + $0x170] sm:$0xff] }
 0x1d1   : > { %2379 = vst [vmem:[%s7398_s24 + $0x148] sm:$0xff] %v2315_v31  ;;  %v1698_v58 = vadd.f32 %v1697_v45, %v1440_v46  ;;  %5316 = vxpose.xlu1.b32.cont [5/16] %v5315_v21, 128  ;;  %v8858_v31 = vld [vmem:[#allocation35_spill] sm:$0xff]  ;;  %v8859_v24 = vld [vmem:[#allocation36_spill] sm:$0xff]  ;;  %v5668_v21 = vld [vmem:[%s6073_s5 + $0x198] sm:$0xff]  ;;  %4966 = vmatpush1.bf16.msk.msra.mxu0 %vm7727_vm13, %v8755_v9 }
 0x1d2   : > { %v2316_v25 = vmul.f32 0.00390625, %v1696_v41  ;;  %v1444_v5 = vpop.f32.mrb[44].mxu1  ;;  %v5205_v19 = vpack.i.bf16 %v7441_v34, %v1696_v41  ;;  %vm2978_vm14 = vcmp.eq.s32.totalorder %v8858_v31, %v7522_v59  ;;  %vm2979_vm15 = vcmp.eq.s32.totalorder %v8859_v24, %v7522_v59  ;;  %4967 = vmatprep.subr.bf16.mxu0 %v5893_v32 }
 0x1d3   : > { %v2317_v1 = vmul.f32 0.00390625, %v1698_v58  ;;  %v1701_v43 = vpop.f32.mrb[44].mxu0  ;;  %2148 = vmatmul.mubr.f32.gmra.mrb[86].mxu1 %v5667_v4  ;;  %v1446_v20 = vpop.f32.mrb[45].mxu1  ;;  %v5317_v34 = vpack.i.bf16 %v7445_v38, %v1698_v58  ;;  %vm7751_vm0 = vmpackc.low %vm2979_vm15, %vm2978_vm14 }
 0x1d4   : > { %2380 = vst [vmem:[%s7398_s24 + $0x150] sm:$0xff] %v2316_v25  ;;  %v1702_v51 = vadd.f32 %v1701_v43, %v1444_v5  ;;  %v1703_v46 = vpop.f32.mrb[45].mxu0  ;;  %5206 = vxpose.xlu0.b32.cont [6/16] %v5205_v19, 128  ;;  %2153 = vmatprep.mubr.f32.mxu1 %v5668_v21  ;;  %v5669_v19 = vld [vmem:[%s6073_s5 + $0x190] sm:$0xff]  ;;  %v8863_v43 = vld [vmem:[#allocation39_spill] sm:$0xff] }
 0x1d5   : > { %2381 = vst [vmem:[%s7398_s24 + $0x158] sm:$0xff] %v2317_v1  ;;  %v1704_v41 = vadd.f32 %v1703_v46, %v1446_v20  ;;  %5318 = vxpose.xlu1.b32.cont [6/16] %v5317_v34, 128  ;;  %v8862_v1 = vld [vmem:[#allocation38_spill] sm:$0xff]  ;;  %vm2981_vm2 = vcmp.eq.s32.totalorder %v8863_v43, %v7522_v59  ;;  %v5670_v34 = vld [vmem:[%s6073_s5 + $0x1b8] sm:$0xff]  ;;  %4969 = vmatpush1.bf16.msk.msra.mxu0 %vm7751_vm0, %v8755_v9 }
 0x1d6   : > { %v2318_v38 = vmul.f32 0.00390625, %v1702_v51  ;;  %v1450_v45 = vpop.f32.mrb[46].mxu1  ;;  %v5207_v55 = vpack.i.bf16 %v7451_v49, %v1702_v51  ;;  %vm2980_vm1 = vcmp.eq.s32.totalorder %v8862_v1, %v7522_v59  ;;  %4970 = vmatprep.subr.bf16.mxu0 %v5893_v32 }
 0x1d7   : > { %v2319_v25 = vmul.f32 0.00390625, %v1704_v41  ;;  %v1707_v5 = vpop.f32.mrb[46].mxu0  ;;  %2154 = vmatmul.mubr.f32.gmra.mrb[88].mxu1 %v5669_v19  ;;  %v1452_v39 = vpop.f32.mrb[47].mxu1  ;;  %v5319_v49 = vpack.i.bf16 %v7455_v54, %v1704_v41  ;;  %vm7775_vm4 = vmpackc.low %vm2981_vm2, %vm2980_vm1 }
 0x1d8   : > { %2382 = vst [vmem:[%s7398_s24 + $0x160] sm:$0xff] %v2318_v38  ;;  %v1708_v4 = vadd.f32 %v1707_v5, %v1450_v45  ;;  %v1709_v20 = vpop.f32.mrb[47].mxu0  ;;  %5208 = vxpose.xlu0.b32.cont [7/16] %v5207_v55, 128  ;;  %2159 = vmatprep.mubr.f32.mxu1 %v5670_v34  ;;  %v5671_v55 = vld [vmem:[%s6073_s5 + $0x1b0] sm:$0xff]  ;;  %v8867_v5 = vld [vmem:[#allocation43_spill] sm:$0xff] }
 0x1d9   : > { %2383 = vst [vmem:[%s7398_s24 + $0x168] sm:$0xff] %v2319_v25  ;;  %v1710_v51 = vadd.f32 %v1709_v20, %v1452_v39  ;;  %5320 = vxpose.xlu1.b32.cont [7/16] %v5319_v49, 128  ;;  %v8866_v25 = vld [vmem:[#allocation42_spill] sm:$0xff]  ;;  %vm2983_vm3 = vcmp.eq.s32.totalorder %v8867_v5, %v7522_v59  ;;  %v5672_v49 = vld [vmem:[%s6073_s5 + $0x1d8] sm:$0xff]  ;;  %4972 = vmatpush1.bf16.msk.msra.mxu0 %vm7775_vm4, %v8755_v9 }
 0x1da   : > { %v2320_v54 = vmul.f32 0.00390625, %v1708_v4  ;;  %v1456_v46 = vpop.f32.mrb[48].mxu1  ;;  %v5209_v21 = vpack.i.bf16 %v7461_v60, %v1708_v4  ;;  %vm2982_vm5 = vcmp.eq.s32.totalorder %v8866_v25, %v7522_v59  ;;  %4973 = vmatprep.subr.bf16.mxu0 %v5893_v32 }
 0x1db   : > { %v2321_v38 = vmul.f32 0.00390625, %v1710_v51  ;;  %v1713_v45 = vpop.f32.mrb[48].mxu0  ;;  %2160 = vmatmul.mubr.f32.gmra.mrb[90].mxu1 %v5671_v55  ;;  %v1458_v58 = vpop.f32.mrb[49].mxu1  ;;  %v5321_v60 = vpack.i.bf16 %v7465_v8, %v1710_v51  ;;  %vm7799_vm6 = vmpackc.low %vm2983_vm3, %vm2982_vm5 }
 0x1dc   : > { %2384 = vst [vmem:[%s7398_s24 + $0x170] sm:$0xff] %v2320_v54  ;;  %v1714_v19 = vadd.f32 %v1713_v45, %v1456_v46  ;;  %v1715_v39 = vpop.f32.mrb[49].mxu0  ;;  %5210 = vxpose.xlu0.b32.cont [8/16] %v5209_v21, 128  ;;  %2165 = vmatprep.mubr.f32.mxu1 %v5672_v49  ;;  %v5673_v21 = vld [vmem:[%s6073_s5 + $0x1d0] sm:$0xff]  ;;  %v8871_v45 = vld [vmem:[#allocation47_spill] sm:$0xff] }
 0x1dd   : > { %2385 = vst [vmem:[%s7398_s24 + $0x178] sm:$0xff] %v2321_v38  ;;  %v1716_v4 = vadd.f32 %v1715_v39, %v1458_v58  ;;  %5322 = vxpose.xlu1.b32.cont [8/16] %v5321_v60, 128  ;;  %v8870_v38 = vld [vmem:[#allocation46_spill] sm:$0xff]  ;;  %vm2985_vm8 = vcmp.eq.s32.totalorder %v8871_v45, %v7522_v59  ;;  %v5674_v60 = vld [vmem:[%s6073_s5 + $0x1f8] sm:$0xff]  ;;  %4975 = vmatpush1.bf16.msk.msra.mxu0 %vm7799_vm6, %v8755_v9 }
 0x1de   : > { %v2322_v8 = vmul.f32 0.00390625, %v1714_v19  ;;  %v1462_v20 = vpop.f32.mrb[50].mxu1  ;;  %v5211_v34 = vpack.i.bf16 %v7471_v47, %v1714_v19  ;;  %vm2984_vm7 = vcmp.eq.s32.totalorder %v8870_v38, %v7522_v59  ;;  %4976 = vmatprep.subr.bf16.mxu0 %v5893_v32 }
 0x1df   : > { %v2323_v54 = vmul.f32 0.00390625, %v1716_v4  ;;  %v1719_v46 = vpop.f32.mrb[50].mxu0  ;;  %2166 = vmatmul.mubr.f32.gmra.mrb[92].mxu1 %v5673_v21  ;;  %v1464_v41 = vpop.f32.mrb[51].mxu1  ;;  %v5323_v47 = vpack.i.bf16 %v7475_v0, %v1716_v4  ;;  %vm7823_vm9 = vmpackc.low %vm2985_vm8, %vm2984_vm7 }
 0x1e0   : > { %2386 = vst [vmem:[%s7398_s24 + $0x180] sm:$0xff] %v2322_v8  ;;  %v1720_v55 = vadd.f32 %v1719_v46, %v1462_v20  ;;  %v1721_v58 = vpop.f32.mrb[51].mxu0  ;;  %5212 = vxpose.xlu0.b32.cont [9/16] %v5211_v34, 128  ;;  %2171 = vmatprep.mubr.f32.mxu1 %v5674_v60  ;;  %v5675_v34 = vld [vmem:[%s6073_s5 + $0x1f0] sm:$0xff]  ;;  %v8875_v46 = vld [vmem:[#allocation49_spill] sm:$0xff] }
 0x1e1   : > { %2387 = vst [vmem:[%s7398_s24 + $0x188] sm:$0xff] %v2323_v54  ;;  %v1722_v19 = vadd.f32 %v1721_v58, %v1464_v41  ;;  %5324 = vxpose.xlu1.b32.cont [9/16] %v5323_v47, 128  ;;  %v8874_v54 = vld [vmem:[#allocation48_spill] sm:$0xff]  ;;  %vm2987_vm11 = vcmp.eq.s32.totalorder %v8875_v46, %v7522_v59  ;;  %v5676_v47 = vld [vmem:[%s6073_s5 + $0x218] sm:$0xff]  ;;  %4978 = vmatpush1.bf16.msk.msra.mxu0 %vm7823_vm9, %v8755_v9 }
 0x1e2   : > { %v2324_v0 = vmul.f32 0.00390625, %v1720_v55  ;;  %v1468_v39 = vpop.f32.mrb[52].mxu1  ;;  %v5213_v49 = vpack.i.bf16 %v7481_v13, %v1720_v55  ;;  %vm2986_vm10 = vcmp.eq.s32.totalorder %v8874_v54, %v7522_v59  ;;  %4979 = vmatprep.subr.bf16.mxu0 %v5893_v32 }
 0x1e3   : > { %v2325_v8 = vmul.f32 0.00390625, %v1722_v19  ;;  %v1725_v20 = vpop.f32.mrb[52].mxu0  ;;  %2172 = vmatmul.mubr.f32.gmra.mrb[94].mxu1 %v5675_v34  ;;  %v1470_v51 = vpop.f32.mrb[53].mxu1  ;;  %v5325_v13 = vpack.i.bf16 %v7485_v14, %v1722_v19  ;;  %vm7847_vm12 = vmpackc.low %vm2987_vm11, %vm2986_vm10 }
 0x1e4   : > { %2388 = vst [vmem:[%s7398_s24 + $0x190] sm:$0xff] %v2324_v0  ;;  %v1726_v21 = vadd.f32 %v1725_v20, %v1468_v39  ;;  %v1727_v41 = vpop.f32.mrb[53].mxu0  ;;  %5214 = vxpose.xlu0.b32.cont [10/16] %v5213_v49, 128  ;;  %2177 = vmatprep.mubr.f32.mxu1 %v5676_v47  ;;  %v5677_v49 = vld [vmem:[%s6073_s5 + $0x210] sm:$0xff] }
 0x1e5   : > { %2389 = vst [vmem:[%s7398_s24 + $0x198] sm:$0xff] %v2325_v8  ;;  %v1728_v55 = vadd.f32 %v1727_v41, %v1470_v51  ;;  %5326 = vxpose.xlu1.b32.cont [10/16] %v5325_v13, 128  ;;  %v8878_v8 = vld [vmem:[#allocation51_spill] sm:$0xff]  ;;  %v8879_v20 = vld [vmem:[#allocation52_spill] sm:$0xff]  ;;  %v5678_v13 = vld [vmem:[%s6073_s5 + $0x238] sm:$0xff]  ;;  %4981 = vmatpush1.bf16.msk.msra.mxu0 %vm7847_vm12, %v8755_v9 }
 0x1e6   : > { %v2326_v14 = vmul.f32 0.00390625, %v1726_v21  ;;  %v1474_v58 = vpop.f32.mrb[54].mxu1  ;;  %v5215_v60 = vpack.i.bf16 %v7492_v29, %v1726_v21  ;;  %vm2988_vm13 = vcmp.eq.s32.totalorder %v8878_v8, %v7522_v59  ;;  %vm2989_vm14 = vcmp.eq.s32.totalorder %v8879_v20, %v7522_v59  ;;  %4982 = vmatprep.subr.bf16.mxu0 %v5893_v32 }
 0x1e7   : > { %v2327_v0 = vmul.f32 0.00390625, %v1728_v55  ;;  %v1731_v39 = vpop.f32.mrb[54].mxu0  ;;  %2178 = vmatmul.mubr.f32.gmra.mrb[96].mxu1 %v5677_v49  ;;  %v1476_v4 = vpop.f32.mrb[55].mxu1  ;;  %v5327_v29 = vpack.i.bf16 %v7497_v36, %v1728_v55  ;;  %vm7871_vm15 = vmpackc.low %vm2989_vm14, %vm2988_vm13 }
 0x1e8   : > { %2390 = vst [vmem:[%s7398_s24 + $0x1a0] sm:$0xff] %v2326_v14  ;;  %v1732_v34 = vadd.f32 %v1731_v39, %v1474_v58  ;;  %v1733_v51 = vpop.f32.mrb[55].mxu0  ;;  %5216 = vxpose.xlu0.b32.cont [11/16] %v5215_v60, 128  ;;  %2183 = vmatprep.mubr.f32.mxu1 %v5678_v13  ;;  %v5679_v60 = vld [vmem:[%s6073_s5 + $0x230] sm:$0xff]  ;;  %v5680_v39 = vld [vmem:[%s6073_s5 + $0x258] sm:$0xff] }
 0x1e9   : > { %2391 = vst [vmem:[%s7398_s24 + $0x1a8] sm:$0xff] %v2327_v0  ;;  %v1734_v21 = vadd.f32 %v1733_v51, %v1476_v4  ;;  %5328 = vxpose.xlu1.b32.cont [11/16] %v5327_v29, 128  ;;  %4984 = vmatpush1.bf16.msk.msra.mxu0 %vm7871_vm15, %v8755_v9  ;;  %v5681_v51 = vld [vmem:[%s6073_s5 + $0x250] sm:$0xff] }
 0x1ea   : > { %v2328_v36 = vmul.f32 0.00390625, %v1732_v34  ;;  %v1480_v41 = vpop.f32.mrb[56].mxu1  ;;  %v5217_v47 = vpack.i.bf16 %v7503_v48, %v1732_v34 }
 0x1eb   : > { %v2329_v14 = vmul.f32 0.00390625, %v1734_v21  ;;  %v1737_v58 = vpop.f32.mrb[56].mxu0  ;;  %2184 = vmatmul.mubr.f32.gmra.mrb[98].mxu1 %v5679_v60  ;;  %v1482_v19 = vpop.f32.mrb[57].mxu1  ;;  %v5329_v0 = vpack.i.bf16 %v7510_v12, %v1734_v21 }
 0x1ec   : > { %2392 = vst [vmem:[%s7398_s24 + $0x1b0] sm:$0xff] %v2328_v36  ;;  %v1738_v32 = vadd.f32 %v1737_v58, %v1480_v41  ;;  %v1739_v48 = vpop.f32.mrb[57].mxu0  ;;  %5218 = vxpose.xlu0.b32.cont [12/16] %v5217_v47, 128  ;;  %2189 = vmatprep.mubr.f32.mxu1 %v5680_v39  ;;  %v5682_v47 = vld [vmem:[%s6073_s5 + $0x278] sm:$0xff] }
 0x1ed   : > { %2393 = vst [vmem:[%s7398_s24 + $0x1b8] sm:$0xff] %v2329_v14  ;;  %v1740_v59 = vadd.f32 %v1739_v48, %v1482_v19  ;;  %5330 = vxpose.xlu1.b32.cont [12/16] %v5329_v0, 128  ;;  %v5683_v19 = vld [vmem:[%s6073_s5 + $0x270] sm:$0xff]  ;;  %v5684_v39 = vld [vmem:[%s6073_s5 + $0x298] sm:$0xff] }
 0x1ee   : > { %v2330_v49 = vmul.f32 0.00390625, %v1738_v32  ;;  %v1486_v4 = vpop.f32.mrb[58].mxu1  ;;  %v5219_v12 = vpack.i.bf16 %v7517_v35, %v1738_v32 }
 0x1ef   : > { %v2331_v29 = vmul.f32 0.00390625, %v1740_v59  ;;  %v1743_v34 = vpop.f32.mrb[58].mxu0  ;;  %2190 = vmatmul.mubr.f32.gmra.mrb[100].mxu1 %v5681_v51  ;;  %v1488_v13 = vpop.f32.mrb[59].mxu1  ;;  %v5331_v21 = vpack.i.bf16 %v7525_v61, %v1740_v59 }
 0x1f0   : > { %2394 = vst [vmem:[%s7398_s24 + $0x1c0] sm:$0xff] %v2330_v49  ;;  %v1744_v36 = vadd.f32 %v1743_v34, %v1486_v4  ;;  %v1745_v41 = vpop.f32.mrb[59].mxu0  ;;  %5220 = vxpose.xlu0.b32.cont [13/16] %v5219_v12, 128  ;;  %2195 = vmatprep.mubr.f32.mxu1 %v5682_v47  ;;  %v5685_v34 = vld [vmem:[%s6073_s5 + $0x290] sm:$0xff] }
 0x1f1   : > { %2395 = vst [vmem:[%s7398_s24 + $0x1c8] sm:$0xff] %v2331_v29  ;;  %v1746_v9 = vadd.f32 %v1745_v41, %v1488_v13  ;;  %5332 = vxpose.xlu1.b32.cont [13/16] %v5331_v21, 128 }
 0x1f2   : > { %v2332_v35 = vmul.f32 0.00390625, %v1744_v36  ;;  %v1492_v55 = vpop.f32.mrb[60].mxu1  ;;  %v5221_v14 = vpack.i.bf16 %v7539_v28, %v1744_v36  ;;  %v5686_v36 = vld [vmem:[%s6073_s5 + $0x2b8] sm:$0xff] }
 0x1f3   : > { %v2333_v58 = vmul.f32 0.00390625, %v1746_v9  ;;  %v1749_v60 = vpop.f32.mrb[60].mxu0  ;;  %2196 = vmatmul.mubr.f32.gmra.mrb[102].mxu1 %v5683_v19  ;;  %v1494_v61 = vpop.f32.mrb[61].mxu1  ;;  %v5333_v0 = vpack.i.bf16 %v7544_v2, %v1746_v9  ;;  %v5694_v19 = vld [vmem:[%s6073_s5 + $0x338] sm:$0xff] }
 0x1f4   : > { %2396 = vst [vmem:[%s7398_s24 + $0x1d0] sm:$0xff] %v2332_v35  ;;  %v1750_v32 = vadd.f32 %v1749_v60, %v1492_v55  ;;  %v1751_v48 = vpop.f32.mrb[61].mxu0  ;;  %5222 = vxpose.xlu0.b32.cont [14/16] %v5221_v14, 128  ;;  %2201 = vmatprep.mubr.f32.mxu1 %v5684_v39  ;;  %v5688_v55 = vld [vmem:[%s6073_s5 + $0x2d8] sm:$0xff]  ;;  %v5689_v14 = vld [vmem:[%s6073_s5 + $0x2d0] sm:$0xff] }
 0x1f5   : > { %2397 = vst [vmem:[%s7398_s24 + $0x1d8] sm:$0xff] %v2333_v58  ;;  %v1752_v59 = vadd.f32 %v1751_v48, %v1494_v61  ;;  %5334 = vxpose.xlu1.b32.cont [14/16] %v5333_v0, 128  ;;  %v5691_v58 = vld [vmem:[%s6073_s5 + $0x2f0] sm:$0xff]  ;;  %v5692_v60 = vld [vmem:[%s6073_s5 + $0x318] sm:$0xff] }
 0x1f6   : > { %v2334_v28 = vmul.f32 0.00390625, %v1750_v32  ;;  %v1498_v49 = vpop.f32.mrb[62].mxu1  ;;  %v5223_v4 = vpack.i.bf16 %v7558_v52, %v1750_v32  ;;  %v5695_v61 = vld [vmem:[%s6073_s5 + $0x330] sm:$0xff]  ;;  %v5696_v0 = vld [vmem:[%s6073_s5 + $0x358] sm:$0xff] }
 0x1f7   : > { %v2335_v12 = vmul.f32 0.00390625, %v1752_v59  ;;  %v1755_v29 = vpop.f32.mrb[62].mxu0  ;;  %2202 = vmatmul.mubr.f32.gmra.mrb[104].mxu1 %v5685_v34  ;;  %v1500_v2 = vpop.f32.mrb[63].mxu1  ;;  %v5335_v51 = vpack.i.bf16 %v7563_v16, %v1752_v59  ;;  %v5687_v16 = vld [vmem:[%s6073_s5 + $0x2b0] sm:$0xff]  ;;  %v5698_v48 = vld [vmem:[%s6073_s5 + $0x378] sm:$0xff] }
 0x1f8   : > { %2398 = vst [vmem:[%s7398_s24 + $0x1e0] sm:$0xff] %v2334_v28  ;;  %v1756_v13 = vadd.f32 %v1755_v29, %v1498_v49  ;;  %v1757_v21 = vpop.f32.mrb[63].mxu0  ;;  %5224 = vxpose.xlu0.b32.cont [15/16] %v5223_v4, 128  ;;  %2207 = vmatprep.mubr.f32.mxu1 %v5686_v36  ;;  %v5697_v32 = vld [vmem:[%s6073_s5 + $0x350] sm:$0xff]  ;;  %v5700_v59 = vld [vmem:[%s6073_s5 + $0x398] sm:$0xff] }
 0x1f9   : > { %2399 = vst [vmem:[%s7398_s24 + $0x1e8] sm:$0xff] %v2335_v12  ;;  %v1758_v52 = vadd.f32 %v1757_v21, %v1500_v2  ;;  %5336 = vxpose.xlu1.b32.cont [15/16] %v5335_v51, 128  ;;  %v5699_v39 = vld [vmem:[%s6073_s5 + $0x370] sm:$0xff]  ;;  %v5702_v49 = vld [vmem:[%s6073_s5 + $0x3b8] sm:$0xff] }
 0x1fa   : > { %v2336_v41 = vmul.f32 0.00390625, %v1756_v13  ;;  %v5225_v47 = vpack.i.bf16 %v7580_v6, %v1756_v13  ;;  %v5690_v6 = vld [vmem:[%s6073_s5 + $0x2f8] sm:$0xff]  ;;  %v5701_v28 = vld [vmem:[%s6073_s5 + $0x390] sm:$0xff] }
 0x1fb   : > { %v2337_v9 = vmul.f32 0.00390625, %v1758_v52  ;;  %2208 = vmatmul.mubr.f32.gmra.mrb[106].mxu1 %v5687_v16  ;;  %v5337_v35 = vpack.i.bf16 %v7585_v22, %v1758_v52  ;;  %v5693_v22 = vld [vmem:[%s6073_s5 + $0x310] sm:$0xff]  ;;  %v5704_v12 = vld [vmem:[%s6073_s5 + $0x3d8] sm:$0xff] }
 0x1fc   : > { %2400 = vst [vmem:[%s7398_s24 + $0x1f0] sm:$0xff] %v2336_v41  ;;  %5226 = vxpose.xlu0.b32.end [16/16] %v5225_v47, 128  ;;  %2213 = vmatprep.mubr.f32.mxu1 %v5688_v55  ;;  %v5703_v4 = vld [vmem:[%s6073_s5 + $0x3b0] sm:$0xff]  ;;  %v5706_v34 = vld [vmem:[%s6073_s5 + $0x3f8] sm:$0xff] }
 0x1fd   : > { %2401 = vst [vmem:[%s7398_s24 + $0x1f8] sm:$0xff] %v2337_v9  ;;  %5338 = vxpose.xlu1.b32.end [16/16] %v5337_v35, 128  ;;  %v5705_v29 = vld [vmem:[%s6073_s5 + $0x3d0] sm:$0xff] }
 0x1fe   : > { %v5707_v2 = vld [vmem:[%s6073_s5 + $0x3f0] sm:$0xff] }
 0x1ff   : > { %2214 = vmatmul.mubr.f32.gmra.mrb[108].mxu1 %v5689_v14 }
 0x200   : > { %2219 = vmatprep.mubr.f32.mxu1 %v5690_v6 }
 0x203   : > { %2220 = vmatmul.mubr.f32.gmra.mrb[110].mxu1 %v5691_v58 }
 0x204   : > { %2225 = vmatprep.mubr.f32.mxu1 %v5692_v60 }
 0x207   : > { %2226 = vmatmul.mubr.f32.gmra.mrb[112].mxu1 %v5693_v22 }
 0x208   : > { %2231 = vmatprep.mubr.f32.mxu1 %v5694_v19 }
 0x20b   : > { %2232 = vmatmul.mubr.f32.gmra.mrb[114].mxu1 %v5695_v61 }
 0x20c   : > { %2237 = vmatprep.mubr.f32.mxu1 %v5696_v0 }
 0x20f   : > { %2238 = vmatmul.mubr.f32.gmra.mrb[116].mxu1 %v5697_v32 }
 0x210   : > { %2243 = vmatprep.mubr.f32.mxu1 %v5698_v48 }
 0x213   : > { %2244 = vmatmul.mubr.f32.gmra.mrb[118].mxu1 %v5699_v39 }
 0x214   : > { %2249 = vmatprep.mubr.f32.mxu1 %v5700_v59 }
 0x217   : > { %2250 = vmatmul.mubr.f32.gmra.mrb[120].mxu1 %v5701_v28 }
 0x218   : > { %2255 = vmatprep.mubr.f32.mxu1 %v5702_v49 }
 0x21b   : > { %2256 = vmatmul.mubr.f32.gmra.mrb[122].mxu1 %v5703_v4 }
 0x21c   : > { %2261 = vmatprep.mubr.f32.mxu1 %v5704_v12 }
 0x21f   : > { %2262 = vmatmul.mubr.f32.gmra.mrb[124].mxu1 %v5705_v29 }
 0x220   : > { %2267 = vmatprep.mubr.f32.mxu1 %v5706_v34 }
 0x223   : > { %2268 = vmatmul.mubr.f32.gmra.mrb[126].mxu1 %v5707_v2 }
 0x240   : > { %v5227_v51 = vpop.trf.xlu0 }
 0x241   : > { %v5231_v13 = vunpack.i.h.bf16 %v5227_v51  ;;  %v5228_v21 = vunpack.i.l.bf16 %v5227_v51  ;;  %v7926_v36 = vpop.trf.xlu1 }
 0x243   : > { %3246 = vmatprep.mubr.f32.mxu0 %v5228_v21 }
 0x244   : > { %v5232_v52 = vpop.trf.xlu0  ;;  %3247 = vmatmul.mubr.f32.vlgmr.msra.gmra.mrb[64].mxu0 %v5231_v13 }
 0x245   : > { %v5233_v41 = vunpack.i.l.bf16 %v5232_v52  ;;  %v5236_v47 = vunpack.i.h.bf16 %v5232_v52  ;;  %v7928_v9 = vpop.trf.xlu1 }
 0x247   : > { %3251 = vmatprep.mubr.f32.mxu0 %v5233_v41 }
 0x248   : > { %v5237_v16 = vpop.trf.xlu0  ;;  %3252 = vmatmul.mubr.f32.gmra.mrb[66].mxu0 %v5236_v47 }
 0x249   : > { %v5238_v35 = vunpack.i.l.bf16 %v5237_v16  ;;  %v5241_v55 = vunpack.i.h.bf16 %v5237_v16  ;;  %v7930_v14 = vpop.trf.xlu1 }
 0x24b   : > { %3256 = vmatprep.mubr.f32.mxu0 %v5238_v35 }
 0x24c   : > { %v5242_v6 = vpop.trf.xlu0  ;;  %3257 = vmatmul.mubr.f32.gmra.mrb[68].mxu0 %v5241_v55 }
 0x24d   : > { %v5243_v58 = vunpack.i.l.bf16 %v5242_v6  ;;  %v5246_v60 = vunpack.i.h.bf16 %v5242_v6  ;;  %v7932_v22 = vpop.trf.xlu1 }
 0x24f   : > { %3261 = vmatprep.mubr.f32.mxu0 %v5243_v58 }
 0x250   : > { %v5247_v19 = vpop.trf.xlu0  ;;  %3262 = vmatmul.mubr.f32.gmra.mrb[70].mxu0 %v5246_v60 }
 0x251   : > { %v5248_v61 = vunpack.i.l.bf16 %v5247_v19  ;;  %v5251_v0 = vunpack.i.h.bf16 %v5247_v19  ;;  %v7934_v32 = vpop.trf.xlu1 }
 0x253   : > { %3266 = vmatprep.mubr.f32.mxu0 %v5248_v61 }
 0x254   : > { %v5252_v48 = vpop.trf.xlu0  ;;  %3267 = vmatmul.mubr.f32.gmra.mrb[72].mxu0 %v5251_v0 }
 0x255   : > { %v5253_v39 = vunpack.i.l.bf16 %v5252_v48  ;;  %v5256_v59 = vunpack.i.h.bf16 %v5252_v48  ;;  %v7936_v28 = vpop.trf.xlu1 }
 0x257   : > { %3271 = vmatprep.mubr.f32.mxu0 %v5253_v39 }
 0x258   : > { %v5257_v49 = vpop.trf.xlu0  ;;  %3272 = vmatmul.mubr.f32.gmra.mrb[74].mxu0 %v5256_v59 }
 0x259   : > { %v5258_v4 = vunpack.i.l.bf16 %v5257_v49  ;;  %v5261_v12 = vunpack.i.h.bf16 %v5257_v49  ;;  %v7938_v29 = vpop.trf.xlu1 }
 0x25b   : > { %3276 = vmatprep.mubr.f32.mxu0 %v5258_v4 }
 0x25c   : > { %v5262_v34 = vpop.trf.xlu0  ;;  %3277 = vmatmul.mubr.f32.gmra.mrb[76].mxu0 %v5261_v12 }
 0x25d   : > { %v5263_v2 = vunpack.i.l.bf16 %v5262_v34  ;;  %v5266_v51 = vunpack.i.h.bf16 %v5262_v34  ;;  %v7940_v13 = vpop.trf.xlu1 }
 0x25f   : > { %3281 = vmatprep.mubr.f32.mxu0 %v5263_v2 }
 0x260   : > { %v5267_v21 = vpop.trf.xlu0  ;;  %3282 = vmatmul.mubr.f32.gmra.mrb[78].mxu0 %v5266_v51 }
 0x261   : > { %v5268_v52 = vunpack.i.l.bf16 %v5267_v21  ;;  %v5271_v41 = vunpack.i.h.bf16 %v5267_v21  ;;  %v7942_v47 = vpop.trf.xlu1 }
 0x263   : > { %3286 = vmatprep.mubr.f32.mxu0 %v5268_v52 }
 0x264   : > { %v5272_v16 = vpop.trf.xlu0  ;;  %3287 = vmatmul.mubr.f32.gmra.mrb[80].mxu0 %v5271_v41 }
 0x265   : > { %v5273_v35 = vunpack.i.l.bf16 %v5272_v16  ;;  %v5276_v55 = vunpack.i.h.bf16 %v5272_v16  ;;  %v7944_v6 = vpop.trf.xlu1 }
 0x267   : > { %3291 = vmatprep.mubr.f32.mxu0 %v5273_v35 }
 0x268   : > { %v5277_v58 = vpop.trf.xlu0  ;;  %3292 = vmatmul.mubr.f32.gmra.mrb[82].mxu0 %v5276_v55 }
 0x269   : > { %v5278_v60 = vunpack.i.l.bf16 %v5277_v58  ;;  %v5281_v19 = vunpack.i.h.bf16 %v5277_v58  ;;  %v7946_v61 = vpop.trf.xlu1 }
 0x26b   : > { %3296 = vmatprep.mubr.f32.mxu0 %v5278_v60 }
 0x26c   : > { %v5282_v0 = vpop.trf.xlu0  ;;  %3297 = vmatmul.mubr.f32.gmra.mrb[84].mxu0 %v5281_v19 }
 0x26d   : > { %v5283_v48 = vunpack.i.l.bf16 %v5282_v0  ;;  %v5286_v39 = vunpack.i.h.bf16 %v5282_v0  ;;  %v7948_v59 = vpop.trf.xlu1 }
 0x26f   : > { %3301 = vmatprep.mubr.f32.mxu0 %v5283_v48 }
 0x270   : > { %v5287_v49 = vpop.trf.xlu0  ;;  %3302 = vmatmul.mubr.f32.gmra.mrb[86].mxu0 %v5286_v39  ;;  %v5340_v39 = vunpack.i.l.bf16 %v7926_v36 }
 0x271   : > { %v5288_v4 = vunpack.i.l.bf16 %v5287_v49  ;;  %v5291_v12 = vunpack.i.h.bf16 %v5287_v49  ;;  %v7950_v34 = vpop.trf.xlu1 }
 0x273   : > { %3306 = vmatprep.mubr.f32.mxu0 %v5288_v4 }
 0x274   : > { %v5292_v2 = vpop.trf.xlu0  ;;  %3307 = vmatmul.mubr.f32.gmra.mrb[88].mxu0 %v5291_v12 }
 0x275   : > { %v5293_v51 = vunpack.i.l.bf16 %v5292_v2  ;;  %v5296_v21 = vunpack.i.h.bf16 %v5292_v2  ;;  %v7952_v52 = vpop.trf.xlu1 }
 0x277   : > { %3311 = vmatprep.mubr.f32.mxu0 %v5293_v51 }
 0x278   : > { %v5297_v41 = vpop.trf.xlu0  ;;  %3312 = vmatmul.mubr.f32.gmra.mrb[90].mxu0 %v5296_v21 }
 0x279   : > { %v5298_v16 = vunpack.i.l.bf16 %v5297_v41  ;;  %v5301_v35 = vunpack.i.h.bf16 %v5297_v41  ;;  %v7954_v55 = vpop.trf.xlu1 }
 0x27a   : > { %v7956_v58 = vpop.f32.mrb[64].mxu1  ;;  %v5413_v62 = vunpack.i.h.bf16 %v7954_v55 }
 0x27b   : > { %v2402_v60 = vmul.f32 0.00390625, %v7956_v58  ;;  %v7959_v19 = vpop.f32.mrb[65].mxu1  ;;  %3316 = vmatprep.mubr.f32.mxu0 %v5298_v16  ;;  %v5343_v16 = vunpack.i.h.bf16 %v7926_v36  ;;  %v5350_v36 = vunpack.i.l.bf16 %v7930_v14 }
 0x27c   : > { %v2403_v0 = vmul.f32 0.00390625, %v7959_v19  ;;  %v5302_v48 = vpop.trf.xlu0  ;;  %3317 = vmatmul.mubr.f32.gmra.mrb[92].mxu0 %v5301_v35  ;;  %v5345_v35 = vunpack.i.l.bf16 %v7928_v9 }
 0x27d   : > { %4509 = vst [vmem:[%s7398_s24 + $0x200] sm:$0xff] %v2402_v60  ;;  %v5303_v49 = vunpack.i.l.bf16 %v5302_v48  ;;  %v5306_v4 = vunpack.i.h.bf16 %v5302_v48  ;;  %v7964_v12 = vpop.trf.xlu1 }
 0x27e   : > { %4510 = vst [vmem:[%s7398_s24 + $0x208] sm:$0xff] %v2403_v0  ;;  %v7967_v2 = vpop.f32.mrb[66].mxu1 }
 0x27f   : > { %v2404_v51 = vmul.f32 0.00390625, %v7967_v2  ;;  %v7970_v21 = vpop.f32.mrb[67].mxu1  ;;  %3321 = vmatprep.mubr.f32.mxu0 %v5303_v49 }
 0x280   : > { %v2405_v41 = vmul.f32 0.00390625, %v7970_v21  ;;  %3322 = vmatmul.mubr.f32.gmra.mrb[94].mxu0 %v5306_v4  ;;  %v5348_v4 = vunpack.i.h.bf16 %v7928_v9  ;;  %v5355_v9 = vunpack.i.l.bf16 %v7932_v22 }
 0x281   : > { %4511 = vst [vmem:[%s7398_s24 + $0x210] sm:$0xff] %v2404_v51  ;;  %3326 = vmatprep.mubr.f32.mxu0 %v5340_v39 }
 0x282   : > { %4512 = vst [vmem:[%s7398_s24 + $0x218] sm:$0xff] %v2405_v41  ;;  %v7977_v60 = vpop.f32.mrb[68].mxu1 }
 0x283   : > { %v2406_v0 = vmul.f32 0.00390625, %v7977_v60  ;;  %v7980_v48 = vpop.f32.mrb[69].mxu1 }
 0x284   : > { %v2407_v49 = vmul.f32 0.00390625, %v7980_v48  ;;  %3327 = vmatmul.mubr.f32.gmra.mrb[96].mxu0 %v5343_v16  ;;  %v5353_v16 = vunpack.i.h.bf16 %v7930_v14  ;;  %v5360_v14 = vunpack.i.l.bf16 %v7934_v32 }
 0x285   : > { %4513 = vst [vmem:[%s7398_s24 + $0x220] sm:$0xff] %v2406_v0  ;;  %3331 = vmatprep.mubr.f32.mxu0 %v5345_v35 }
 0x286   : > { %4514 = vst [vmem:[%s7398_s24 + $0x228] sm:$0xff] %v2407_v49  ;;  %v7987_v39 = vpop.f32.mrb[70].mxu1 }
 0x287   : > { %v2408_v51 = vmul.f32 0.00390625, %v7987_v39  ;;  %v7990_v41 = vpop.f32.mrb[71].mxu1 }
 0x288   : > { %v2409_v3 = vmul.f32 0.00390625, %v7990_v41  ;;  %3332 = vmatmul.mubr.f32.gmra.mrb[98].mxu0 %v5348_v4  ;;  %v5358_v4 = vunpack.i.h.bf16 %v7932_v22  ;;  %v5365_v22 = vunpack.i.l.bf16 %v7936_v28 }
 0x289   : > { %4515 = vst [vmem:[%s7398_s24 + $0x230] sm:$0xff] %v2408_v51  ;;  %3336 = vmatprep.mubr.f32.mxu0 %v5350_v36 }
 0x28a   : > { %4516 = vst [vmem:[%s7398_s24 + $0x238] sm:$0xff] %v2409_v3  ;;  %v7997_v35 = vpop.f32.mrb[72].mxu1 }
 0x28b   : > { %v2410_v0 = vmul.f32 0.00390625, %v7997_v35  ;;  %v8000_v49 = vpop.f32.mrb[73].mxu1 }
 0x28c   : > { %v2411_v20 = vmul.f32 0.00390625, %v8000_v49  ;;  %3337 = vmatmul.mubr.f32.gmra.mrb[100].mxu0 %v5353_v16  ;;  %v5363_v16 = vunpack.i.h.bf16 %v7934_v32  ;;  %v5370_v32 = vunpack.i.l.bf16 %v7938_v29 }
 0x28d   : > { %4517 = vst [vmem:[%s7398_s24 + $0x240] sm:$0xff] %v2410_v0  ;;  %3341 = vmatprep.mubr.f32.mxu0 %v5355_v9 }
 0x28e   : > { %4518 = vst [vmem:[%s7398_s24 + $0x248] sm:$0xff] %v2411_v20  ;;  %v8007_v36 = vpop.f32.mrb[74].mxu1 }
 0x28f   : > { %v2412_v3 = vmul.f32 0.00390625, %v8007_v36  ;;  %v8010_v51 = vpop.f32.mrb[75].mxu1 }
 0x290   : > { %v2413_v8 = vmul.f32 0.00390625, %v8010_v51  ;;  %3342 = vmatmul.mubr.f32.gmra.mrb[102].mxu0 %v5358_v4  ;;  %v5368_v4 = vunpack.i.h.bf16 %v7936_v28  ;;  %v5375_v28 = vunpack.i.l.bf16 %v7940_v13 }
 0x291   : > { %4519 = vst [vmem:[%s7398_s24 + $0x250] sm:$0xff] %v2412_v3  ;;  %3346 = vmatprep.mubr.f32.mxu0 %v5360_v14 }
 0x292   : > { %4520 = vst [vmem:[%s7398_s24 + $0x258] sm:$0xff] %v2413_v8  ;;  %v8017_v9 = vpop.f32.mrb[76].mxu1 }
 0x293   : > { %v2414_v20 = vmul.f32 0.00390625, %v8017_v9  ;;  %v8020_v0 = vpop.f32.mrb[77].mxu1 }
 0x294   : > { %v2415_v46 = vmul.f32 0.00390625, %v8020_v0  ;;  %3347 = vmatmul.mubr.f32.gmra.mrb[104].mxu0 %v5363_v16  ;;  %v5373_v16 = vunpack.i.h.bf16 %v7938_v29  ;;  %v5380_v29 = vunpack.i.l.bf16 %v7942_v47 }
 0x295   : > { %4521 = vst [vmem:[%s7398_s24 + $0x260] sm:$0xff] %v2414_v20  ;;  %3351 = vmatprep.mubr.f32.mxu0 %v5365_v22 }
 0x296   : > { %4522 = vst [vmem:[%s7398_s24 + $0x268] sm:$0xff] %v2415_v46  ;;  %v8027_v14 = vpop.f32.mrb[78].mxu1 }
 0x297   : > { %v2416_v8 = vmul.f32 0.00390625, %v8027_v14  ;;  %v8030_v3 = vpop.f32.mrb[79].mxu1 }
 0x298   : > { %v2417_v54 = vmul.f32 0.00390625, %v8030_v3  ;;  %3352 = vmatmul.mubr.f32.gmra.mrb[106].mxu0 %v5368_v4  ;;  %v5378_v4 = vunpack.i.h.bf16 %v7940_v13  ;;  %v5385_v13 = vunpack.i.l.bf16 %v7944_v6 }
 0x299   : > { %4523 = vst [vmem:[%s7398_s24 + $0x270] sm:$0xff] %v2416_v8  ;;  %3356 = vmatprep.mubr.f32.mxu0 %v5370_v32 }
 0x29a   : > { %4524 = vst [vmem:[%s7398_s24 + $0x278] sm:$0xff] %v2417_v54  ;;  %v8037_v22 = vpop.f32.mrb[80].mxu1 }
 0x29b   : > { %v2418_v46 = vmul.f32 0.00390625, %v8037_v22  ;;  %v8040_v20 = vpop.f32.mrb[81].mxu1 }
 0x29c   : > { %v2419_v45 = vmul.f32 0.00390625, %v8040_v20  ;;  %3357 = vmatmul.mubr.f32.gmra.mrb[108].mxu0 %v5373_v16  ;;  %v5383_v16 = vunpack.i.h.bf16 %v7942_v47  ;;  %v5390_v47 = vunpack.i.l.bf16 %v7946_v61 }
 0x29d   : > { %4525 = vst [vmem:[%s7398_s24 + $0x280] sm:$0xff] %v2418_v46  ;;  %3361 = vmatprep.mubr.f32.mxu0 %v5375_v28 }
 0x29e   : > { %4526 = vst [vmem:[%s7398_s24 + $0x288] sm:$0xff] %v2419_v45  ;;  %v8047_v32 = vpop.f32.mrb[82].mxu1 }
 0x29f   : > { %v2420_v54 = vmul.f32 0.00390625, %v8047_v32  ;;  %v8050_v8 = vpop.f32.mrb[83].mxu1 }
 0x2a0   : > { %v2421_v38 = vmul.f32 0.00390625, %v8050_v8  ;;  %3362 = vmatmul.mubr.f32.gmra.mrb[110].mxu0 %v5378_v4  ;;  %v5388_v4 = vunpack.i.h.bf16 %v7944_v6  ;;  %v5395_v6 = vunpack.i.l.bf16 %v7948_v59 }
 0x2a1   : > { %4527 = vst [vmem:[%s7398_s24 + $0x290] sm:$0xff] %v2420_v54  ;;  %3366 = vmatprep.mubr.f32.mxu0 %v5380_v29 }
 0x2a2   : > { %4528 = vst [vmem:[%s7398_s24 + $0x298] sm:$0xff] %v2421_v38  ;;  %v8057_v28 = vpop.f32.mrb[84].mxu1 }
 0x2a3   : > { %v2422_v45 = vmul.f32 0.00390625, %v8057_v28  ;;  %v8060_v46 = vpop.f32.mrb[85].mxu1 }
 0x2a4   : > { %v2423_v5 = vmul.f32 0.00390625, %v8060_v46  ;;  %3367 = vmatmul.mubr.f32.gmra.mrb[112].mxu0 %v5383_v16  ;;  %v5393_v16 = vunpack.i.h.bf16 %v7946_v61  ;;  %v5400_v61 = vunpack.i.l.bf16 %v7950_v34 }
 0x2a5   : > { %4529 = vst [vmem:[%s7398_s24 + $0x2a0] sm:$0xff] %v2422_v45  ;;  %3371 = vmatprep.mubr.f32.mxu0 %v5385_v13 }
 0x2a6   : > { %4530 = vst [vmem:[%s7398_s24 + $0x2a8] sm:$0xff] %v2423_v5  ;;  %v8067_v29 = vpop.f32.mrb[86].mxu1 }
 0x2a7   : > { %v2424_v38 = vmul.f32 0.00390625, %v8067_v29  ;;  %v8070_v54 = vpop.f32.mrb[87].mxu1 }
 0x2a8   : > { %v2425_v25 = vmul.f32 0.00390625, %v8070_v54  ;;  %3372 = vmatmul.mubr.f32.gmra.mrb[114].mxu0 %v5388_v4  ;;  %v5398_v4 = vunpack.i.h.bf16 %v7948_v59  ;;  %v5405_v59 = vunpack.i.l.bf16 %v7952_v52 }
 0x2a9   : > { %4531 = vst [vmem:[%s7398_s24 + $0x2b0] sm:$0xff] %v2424_v38  ;;  %3376 = vmatprep.mubr.f32.mxu0 %v5390_v47 }
 0x2aa   : > { %4532 = vst [vmem:[%s7398_s24 + $0x2b8] sm:$0xff] %v2425_v25  ;;  %v8077_v13 = vpop.f32.mrb[88].mxu1 }
 0x2ab   : > { %v2426_v5 = vmul.f32 0.00390625, %v8077_v13  ;;  %v8080_v45 = vpop.f32.mrb[89].mxu1 }
 0x2ac   : > { %v2427_v43 = vmul.f32 0.00390625, %v8080_v45  ;;  %3377 = vmatmul.mubr.f32.gmra.mrb[116].mxu0 %v5393_v16  ;;  %v5403_v16 = vunpack.i.h.bf16 %v7950_v34  ;;  %v5410_v34 = vunpack.i.l.bf16 %v7954_v55 }
 0x2ad   : > { %4533 = vst [vmem:[%s7398_s24 + $0x2c0] sm:$0xff] %v2426_v5  ;;  %3381 = vmatprep.mubr.f32.mxu0 %v5395_v6 }
 0x2ae   : > { %4534 = vst [vmem:[%s7398_s24 + $0x2c8] sm:$0xff] %v2427_v43  ;;  %v8087_v47 = vpop.f32.mrb[90].mxu1 }
 0x2af   : > { %v2428_v25 = vmul.f32 0.00390625, %v8087_v47  ;;  %v8090_v38 = vpop.f32.mrb[91].mxu1 }
 0x2b0   : > { %v2429_v1 = vmul.f32 0.00390625, %v8090_v38  ;;  %3382 = vmatmul.mubr.f32.gmra.mrb[118].mxu0 %v5398_v4  ;;  %v5408_v4 = vunpack.i.h.bf16 %v7952_v52  ;;  %v5415_v52 = vunpack.i.l.bf16 %v7964_v12 }
 0x2b1   : > { %4535 = vst [vmem:[%s7398_s24 + $0x2d0] sm:$0xff] %v2428_v25  ;;  %3386 = vmatprep.mubr.f32.mxu0 %v5400_v61 }
 0x2b2   : > { %4536 = vst [vmem:[%s7398_s24 + $0x2d8] sm:$0xff] %v2429_v1  ;;  %v8097_v6 = vpop.f32.mrb[92].mxu1 }
 0x2b3   : > { %v2430_v43 = vmul.f32 0.00390625, %v8097_v6  ;;  %v8100_v5 = vpop.f32.mrb[93].mxu1 }
 0x2b4   : > { %v2431_v24 = vmul.f32 0.00390625, %v8100_v5  ;;  %3387 = vmatmul.mubr.f32.gmra.mrb[120].mxu0 %v5403_v16 }
 0x2b5   : > { %4537 = vst [vmem:[%s7398_s24 + $0x2e0] sm:$0xff] %v2430_v43  ;;  %3391 = vmatprep.mubr.f32.mxu0 %v5405_v59 }
 0x2b6   : > { %4538 = vst [vmem:[%s7398_s24 + $0x2e8] sm:$0xff] %v2431_v24  ;;  %v8107_v61 = vpop.f32.mrb[94].mxu1 }
 0x2b7   : > { %v2432_v1 = vmul.f32 0.00390625, %v8107_v61  ;;  %v8110_v25 = vpop.f32.mrb[95].mxu1 }
 0x2b8   : > { %v2433_v31 = vmul.f32 0.00390625, %v8110_v25  ;;  %3392 = vmatmul.mubr.f32.gmra.mrb[122].mxu0 %v5408_v4  ;;  %v5418_v4 = vunpack.i.h.bf16 %v7964_v12 }
 0x2b9   : > { %4539 = vst [vmem:[%s7398_s24 + $0x2f0] sm:$0xff] %v2432_v1  ;;  %3396 = vmatprep.mubr.f32.mxu0 %v5410_v34 }
 0x2ba   : > { %4540 = vst [vmem:[%s7398_s24 + $0x2f8] sm:$0xff] %v2433_v31  ;;  %v2179_v16 = vpop.f32.mrb[96].mxu1 }
 0x2bb   : > { %v2434_v24 = vmul.f32 0.00390625, %v2179_v16  ;;  %v2181_v59 = vpop.f32.mrb[97].mxu1  ;;  %v5419_v43 = vpack.i.bf16 %v7956_v58, %v2179_v16 }
 0x2bc   : > { %v2435_v15 = vmul.f32 0.00390625, %v2181_v59  ;;  %v5531_v53 = vpack.i.bf16 %v7959_v19, %v2181_v59  ;;  %3397 = vmatmul.mubr.f32.gmra.mrb[124].mxu0 %v5413_v62 }
 0x2bd   : > { %4541 = vst [vmem:[%s7398_s24 + $0x300] sm:$0xff] %v2434_v24  ;;  %5420 = vxpose.xlu0.b32.start [1/16] %v5419_v43, 128  ;;  %3401 = vmatprep.mubr.f32.mxu0 %v5415_v52 }
 0x2be   : > { %4542 = vst [vmem:[%s7398_s24 + $0x308] sm:$0xff] %v2435_v15  ;;  %v2185_v55 = vpop.f32.mrb[98].mxu1  ;;  %5532 = vxpose.xlu1.b32.start [1/16] %v5531_v53, 128 }
 0x2bf   : > { %v5421_v31 = vpack.i.bf16 %v7967_v2, %v2185_v55  ;;  %v2436_v34 = vmul.f32 0.00390625, %v2185_v55  ;;  %v2187_v1 = vpop.f32.mrb[99].mxu1 }
 0x2c0   : > { %v5533_v58 = vpack.i.bf16 %v7970_v21, %v2187_v1  ;;  %v2437_v16 = vmul.f32 0.00390625, %v2187_v1  ;;  %3402 = vmatmul.mubr.f32.gmra.mrb[126].mxu0 %v5418_v4 }
 0x2c1   : > { %4543 = vst [vmem:[%s7398_s24 + $0x310] sm:$0xff] %v2436_v34  ;;  %5422 = vxpose.xlu0.b32.cont [2/16] %v5421_v31, 128 }
 0x2c2   : > { %4544 = vst [vmem:[%s7398_s24 + $0x318] sm:$0xff] %v2437_v16  ;;  %v2191_v62 = vpop.f32.mrb[100].mxu1  ;;  %5534 = vxpose.xlu1.b32.cont [2/16] %v5533_v58, 128 }
 0x2c3   : > { %v5423_v15 = vpack.i.bf16 %v7977_v60, %v2191_v62  ;;  %v2438_v19 = vmul.f32 0.00390625, %v2191_v62  ;;  %v2193_v53 = vpop.f32.mrb[101].mxu1 }
 0x2c4   : > { %v5535_v12 = vpack.i.bf16 %v7980_v48, %v2193_v53  ;;  %v2439_v2 = vmul.f32 0.00390625, %v2193_v53 }
 0x2c5   : > { %4545 = vst [vmem:[%s7398_s24 + $0x320] sm:$0xff] %v2438_v19  ;;  %5424 = vxpose.xlu0.b32.cont [3/16] %v5423_v15, 128 }
 0x2c6   : > { %4546 = vst [vmem:[%s7398_s24 + $0x328] sm:$0xff] %v2439_v2  ;;  %v2197_v21 = vpop.f32.mrb[102].mxu1  ;;  %5536 = vxpose.xlu1.b32.cont [3/16] %v5535_v12, 128 }
 0x2c7   : > { %v5425_v52 = vpack.i.bf16 %v7987_v39, %v2197_v21  ;;  %v2440_v24 = vmul.f32 0.00390625, %v2197_v21  ;;  %v2199_v59 = vpop.f32.mrb[103].mxu1 }
 0x2c8   : > { %v5537_v43 = vpack.i.bf16 %v7990_v41, %v2199_v59  ;;  %v2441_v60 = vmul.f32 0.00390625, %v2199_v59 }
 0x2c9   : > { %4547 = vst [vmem:[%s7398_s24 + $0x330] sm:$0xff] %v2440_v24  ;;  %5426 = vxpose.xlu0.b32.cont [4/16] %v5425_v52, 128 }
 0x2ca   : > { %4548 = vst [vmem:[%s7398_s24 + $0x338] sm:$0xff] %v2441_v60  ;;  %v2203_v4 = vpop.f32.mrb[104].mxu1  ;;  %5538 = vxpose.xlu1.b32.cont [4/16] %v5537_v43, 128 }
 0x2cb   : > { %v5427_v48 = vpack.i.bf16 %v7997_v35, %v2203_v4  ;;  %v2442_v55 = vmul.f32 0.00390625, %v2203_v4  ;;  %v2205_v31 = vpop.f32.mrb[105].mxu1 }
 0x2cc   : > { %v5539_v34 = vpack.i.bf16 %v8000_v49, %v2205_v31  ;;  %v2443_v39 = vmul.f32 0.00390625, %v2205_v31 }
 0x2cd   : > { %4549 = vst [vmem:[%s7398_s24 + $0x340] sm:$0xff] %v2442_v55  ;;  %5428 = vxpose.xlu0.b32.cont [5/16] %v5427_v48, 128 }
 0x2ce   : > { %4550 = vst [vmem:[%s7398_s24 + $0x348] sm:$0xff] %v2443_v39  ;;  %v2209_v1 = vpop.f32.mrb[106].mxu1  ;;  %5540 = vxpose.xlu1.b32.cont [5/16] %v5539_v34, 128 }
 0x2cf   : > { %v5429_v41 = vpack.i.bf16 %v8007_v36, %v2209_v1  ;;  %v2444_v58 = vmul.f32 0.00390625, %v2209_v1  ;;  %v2211_v16 = vpop.f32.mrb[107].mxu1 }
 0x2d0   : > { %v5541_v62 = vpack.i.bf16 %v8010_v51, %v2211_v16  ;;  %v2445_v35 = vmul.f32 0.00390625, %v2211_v16 }
 0x2d1   : > { %4551 = vst [vmem:[%s7398_s24 + $0x350] sm:$0xff] %v2444_v58  ;;  %5430 = vxpose.xlu0.b32.cont [6/16] %v5429_v41, 128 }
 0x2d2   : > { %4552 = vst [vmem:[%s7398_s24 + $0x358] sm:$0xff] %v2445_v35  ;;  %v2215_v15 = vpop.f32.mrb[108].mxu1  ;;  %5542 = vxpose.xlu1.b32.cont [6/16] %v5541_v62, 128 }
 0x2d3   : > { %v5431_v49 = vpack.i.bf16 %v8017_v9, %v2215_v15  ;;  %v2446_v19 = vmul.f32 0.00390625, %v2215_v15  ;;  %v2217_v53 = vpop.f32.mrb[109].mxu1 }
 0x2d4   : > { %v5543_v12 = vpack.i.bf16 %v8020_v0, %v2217_v53  ;;  %v2447_v36 = vmul.f32 0.00390625, %v2217_v53 }
 0x2d5   : > { %4553 = vst [vmem:[%s7398_s24 + $0x360] sm:$0xff] %v2446_v19  ;;  %5432 = vxpose.xlu0.b32.cont [7/16] %v5431_v49, 128 }
 0x2d6   : > { %4554 = vst [vmem:[%s7398_s24 + $0x368] sm:$0xff] %v2447_v36  ;;  %v2221_v2 = vpop.f32.mrb[110].mxu1  ;;  %5544 = vxpose.xlu1.b32.cont [7/16] %v5543_v12, 128 }
 0x2d7   : > { %v5433_v51 = vpack.i.bf16 %v8027_v14, %v2221_v2  ;;  %v2448_v21 = vmul.f32 0.00390625, %v2221_v2  ;;  %v2223_v52 = vpop.f32.mrb[111].mxu1 }
 0x2d8   : > { %v5545_v24 = vpack.i.bf16 %v8030_v3, %v2223_v52  ;;  %v2449_v9 = vmul.f32 0.00390625, %v2223_v52 }
 0x2d9   : > { %4555 = vst [vmem:[%s7398_s24 + $0x370] sm:$0xff] %v2448_v21  ;;  %5434 = vxpose.xlu0.b32.cont [8/16] %v5433_v51, 128 }
 0x2da   : > { %4556 = vst [vmem:[%s7398_s24 + $0x378] sm:$0xff] %v2449_v9  ;;  %v2227_v59 = vpop.f32.mrb[112].mxu1  ;;  %5546 = vxpose.xlu1.b32.cont [8/16] %v5545_v24, 128 }
 0x2db   : > { %v5435_v0 = vpack.i.bf16 %v8037_v22, %v2227_v59  ;;  %v2450_v43 = vmul.f32 0.00390625, %v2227_v59  ;;  %v2229_v60 = vpop.f32.mrb[113].mxu1 }
 0x2dc   : > { %v5547_v4 = vpack.i.bf16 %v8040_v20, %v2229_v60  ;;  %v2451_v14 = vmul.f32 0.00390625, %v2229_v60 }
 0x2dd   : > { %4557 = vst [vmem:[%s7398_s24 + $0x380] sm:$0xff] %v2450_v43  ;;  %5436 = vxpose.xlu0.b32.cont [9/16] %v5435_v0, 128 }
 0x2de   : > { %4558 = vst [vmem:[%s7398_s24 + $0x388] sm:$0xff] %v2451_v14  ;;  %v2233_v48 = vpop.f32.mrb[114].mxu1  ;;  %5548 = vxpose.xlu1.b32.cont [9/16] %v5547_v4, 128 }
 0x2df   : > { %v5437_v3 = vpack.i.bf16 %v8047_v32, %v2233_v48  ;;  %v2452_v55 = vmul.f32 0.00390625, %v2233_v48  ;;  %v2235_v31 = vpop.f32.mrb[115].mxu1 }
 0x2e0   : > { %v5549_v34 = vpack.i.bf16 %v8050_v8, %v2235_v31  ;;  %v2453_v22 = vmul.f32 0.00390625, %v2235_v31 }
 0x2e1   : > { %4559 = vst [vmem:[%s7398_s24 + $0x390] sm:$0xff] %v2452_v55  ;;  %5438 = vxpose.xlu0.b32.cont [10/16] %v5437_v3, 128  ;;  %v5894_v3 = vmov 0.0  }
 0x2e2   : > { %4560 = vst [vmem:[%s7398_s24 + $0x398] sm:$0xff] %v2453_v22  ;;  %v2239_v39 = vpop.f32.mrb[116].mxu1  ;;  %5550 = vxpose.xlu1.b32.cont [10/16] %v5549_v34, 128 }
 0x2e3   : > { %v5439_v20 = vpack.i.bf16 %v8057_v28, %v2239_v39  ;;  %v2454_v1 = vmul.f32 0.00390625, %v2239_v39  ;;  %v2241_v41 = vpop.f32.mrb[117].mxu1 }
 0x2e4   : > { %v5551_v58 = vpack.i.bf16 %v8060_v46, %v2241_v41  ;;  %v2455_v32 = vmul.f32 0.00390625, %v2241_v41 }
 0x2e5   : > { %4561 = vst [vmem:[%s7398_s24 + $0x3a0] sm:$0xff] %v2454_v1  ;;  %5440 = vxpose.xlu0.b32.cont [11/16] %v5439_v20, 128 }
 0x2e6   : > { %4562 = vst [vmem:[%s7398_s24 + $0x3a8] sm:$0xff] %v2455_v32  ;;  %v2245_v16 = vpop.f32.mrb[118].mxu1  ;;  %5552 = vxpose.xlu1.b32.cont [11/16] %v5551_v58, 128 }
 0x2e7   : > { %v5441_v8 = vpack.i.bf16 %v8067_v29, %v2245_v16  ;;  %v2456_v62 = vmul.f32 0.00390625, %v2245_v16  ;;  %v2247_v35 = vpop.f32.mrb[119].mxu1 }
 0x2e8   : > { %v5553_v15 = vpack.i.bf16 %v8070_v54, %v2247_v35  ;;  %v2457_v28 = vmul.f32 0.00390625, %v2247_v35 }
 0x2e9   : > { %4563 = vst [vmem:[%s7398_s24 + $0x3b0] sm:$0xff] %v2456_v62  ;;  %5442 = vxpose.xlu0.b32.cont [12/16] %v5441_v8, 128 }
 0x2ea   : > { %4564 = vst [vmem:[%s7398_s24 + $0x3b8] sm:$0xff] %v2457_v28  ;;  %v2251_v49 = vpop.f32.mrb[120].mxu1  ;;  %5554 = vxpose.xlu1.b32.cont [12/16] %v5553_v15, 128 }
 0x2eb   : > { %v5443_v46 = vpack.i.bf16 %v8077_v13, %v2251_v49  ;;  %v2458_v19 = vmul.f32 0.00390625, %v2251_v49  ;;  %v2253_v53 = vpop.f32.mrb[121].mxu1 }
 0x2ec   : > { %v5555_v12 = vpack.i.bf16 %v8080_v45, %v2253_v53  ;;  %v2459_v29 = vmul.f32 0.00390625, %v2253_v53 }
 0x2ed   : > { %4565 = vst [vmem:[%s7398_s24 + $0x3c0] sm:$0xff] %v2458_v19  ;;  %5444 = vxpose.xlu0.b32.cont [13/16] %v5443_v46, 128 }
 0x2ee   : > { %4566 = vst [vmem:[%s7398_s24 + $0x3c8] sm:$0xff] %v2459_v29  ;;  %v2257_v36 = vpop.f32.mrb[122].mxu1  ;;  %5556 = vxpose.xlu1.b32.cont [13/16] %v5555_v12, 128 }
 0x2ef   : > { %v5445_v54 = vpack.i.bf16 %v8087_v47, %v2257_v36  ;;  %v2460_v2 = vmul.f32 0.00390625, %v2257_v36  ;;  %v2259_v51 = vpop.f32.mrb[123].mxu1 }
 0x2f0   : > { %v5557_v21 = vpack.i.bf16 %v8090_v38, %v2259_v51  ;;  %v2461_v13 = vmul.f32 0.00390625, %v2259_v51 }
 0x2f1   : > { %4567 = vst [vmem:[%s7398_s24 + $0x3d0] sm:$0xff] %v2460_v2  ;;  %5446 = vxpose.xlu0.b32.cont [14/16] %v5445_v54, 128 }
 0x2f2   : > { %4568 = vst [vmem:[%s7398_s24 + $0x3d8] sm:$0xff] %v2461_v13  ;;  %v2263_v52 = vpop.f32.mrb[124].mxu1  ;;  %5558 = vxpose.xlu1.b32.cont [14/16] %v5557_v21, 128 }
 0x2f3   : > { %v5447_v45 = vpack.i.bf16 %v8097_v6, %v2263_v52  ;;  %v2462_v24 = vmul.f32 0.00390625, %v2263_v52  ;;  %v2265_v9 = vpop.f32.mrb[125].mxu1  ;;  %v3569_v6 = vsub.s32 1, %v8826_v57 }
 0x2f4   : > { %v5559_v59 = vpack.i.bf16 %v8100_v5, %v2265_v9  ;;  %v2463_v47 = vmul.f32 0.00390625, %v2265_v9  ;;  %v8882_v5 = vcvt.f32.s32 %v7506_v56 }
 0x2f5   : > { %4569 = vst [vmem:[%s7398_s24 + $0x3e0] sm:$0xff] %v2462_v24  ;;  %5448 = vxpose.xlu0.b32.cont [15/16] %v5447_v45, 128 }
 0x2f6   : > { %4570 = vst [vmem:[%s7398_s24 + $0x3e8] sm:$0xff] %v2463_v47  ;;  %v2269_v0 = vpop.f32.mrb[126].mxu1  ;;  %5560 = vxpose.xlu1.b32.cont [15/16] %v5559_v59, 128  ;;  %v8185_v48 = vrot.slane %v8882_v5, %v3569_v6 }
 0x2f7   : > { %v5449_v38 = vpack.i.bf16 %v8107_v61, %v2269_v0  ;;  %v2464_v43 = vmul.f32 0.00390625, %v2269_v0  ;;  %v2271_v60 = vpop.f32.mrb[127].mxu1 }
 0x2f8   : > { %v5561_v4 = vpack.i.bf16 %v8110_v25, %v2271_v60  ;;  %v2465_v14 = vmul.f32 0.00390625, %v2271_v60  ;;  %vm3571_vm0 = vcmp.eq.s32.totalorder %v8826_v57, %v8185_v48  ;;  %vm3572_vm1 = vcmp.eq.s32.totalorder %v8827_v7, %v8185_v48 }
 0x2f9   : > { %4571 = vst [vmem:[%s7398_s24 + $0x3f0] sm:$0xff] %v2464_v43  ;;  %5450 = vxpose.xlu0.b32.end [16/16] %v5449_v38, 128  ;;  %v8192_v25 = vsel %vm3571_vm0, 1.0, %v5894_v3  ;;  %v8195_v31 = vsel %vm3572_vm1, 1.0, %v5894_v3  ;;  %vm3573_vm2 = vcmp.eq.s32.totalorder %v8828_v10, %v8185_v48  ;;  %vm3574_vm4 = vcmp.eq.s32.totalorder %v8829_v26, %v8185_v48 }
 0x2fa   : > { %4572 = vst [vmem:[%s7398_s24 + $0x3f8] sm:$0xff] %v2465_v14  ;;  %5562 = vxpose.xlu1.b32.end [16/16] %v5561_v4, 128  ;;  %v8202_v7 = vsel %vm3573_vm2, 1.0, %v5894_v3  ;;  %v8208_v58 = vsel %vm3574_vm4, 1.0, %v5894_v3  ;;  %vm3575_vm5 = vcmp.eq.s32.totalorder %v8830_v37, %v8185_v48  ;;  %vm3576_vm3 = vcmp.eq.s32.totalorder %v8831_v40, %v8185_v48 }
 0x2fb   : > { %v8214_v62 = vsel %vm3575_vm5, 1.0, %v5894_v3  ;;  %v8220_v49 = vsel %vm3576_vm3, 1.0, %v5894_v3  ;;  %vm3577_vm6 = vcmp.eq.s32.totalorder %v8832_v17, %v8185_v48  ;;  %vm3578_vm7 = vcmp.eq.s32.totalorder %v8833_v23, %v8185_v48 }
 0x2fc   : > { %v8226_v12 = vsel %vm3577_vm6, 1.0, %v5894_v3  ;;  %v8232_v2 = vsel %vm3578_vm7, 1.0, %v5894_v3  ;;  %vm3579_vm8 = vcmp.eq.s32.totalorder %v8834_v42, %v8185_v48  ;;  %vm3580_vm9 = vcmp.eq.s32.totalorder %v8835_v44, %v8185_v48 }
 0x2fd   : > { %v8238_v52 = vsel %vm3579_vm8, 1.0, %v5894_v3  ;;  %v8244_v59 = vsel %vm3580_vm9, 1.0, %v5894_v3  ;;  %vm3581_vm10 = vcmp.eq.s32.totalorder %v8838_v30, %v8185_v48  ;;  %vm3582_vm11 = vcmp.eq.s32.totalorder %v8839_v33, %v8185_v48 }
 0x2fe   : > { %v8250_v60 = vsel %vm3581_vm10, 1.0, %v5894_v3  ;;  %vm3583_vm12 = vcmp.eq.s32.totalorder %v8842_v63, %v8185_v48  ;;  %vm3584_vm13 = vcmp.eq.s32.totalorder %v8843_v18, %v8185_v48  ;;  %vm3585_vm14 = vcmp.eq.s32.totalorder %v8846_v11, %v8185_v48 }
 0x2ff   : > { %vm3586_vm15 = vcmp.eq.s32.totalorder %v8847_v27, %v8185_v48  ;;  %vm3587_vm0 = vcmp.eq.s32.totalorder %v8850_v50, %v8185_v48 }
 0x317   : > { %v3248_v61 = vpop.f32.mrb[64].mxu0 }
 0x318   : > { %v3250_v55 = vpop.f32.mrb[65].mxu0  ;;  %v3667_v34 = vmul.f32 %v8192_v25, %v3248_v61 }
 0x31b   : > { %v3253_v56 = vpop.f32.mrb[66].mxu0 }
 0x31c   : > { %v3668_v57 = vmul.f32 %v8195_v31, %v3253_v56  ;;  %v3255_v22 = vpop.f32.mrb[67].mxu0 }
 0x31e   : > { %v3699_v39 = vadd.f32 %v3668_v57, %v3667_v34  ;;  %v8258_v34 = vsel %vm3582_vm11, 1.0, %v5894_v3 }
 0x31f   : > { %v3258_v20 = vpop.f32.mrb[68].mxu0 }
 0x320   : > { %v3669_v1 = vmul.f32 %v8202_v7, %v3258_v20  ;;  %v3260_v41 = vpop.f32.mrb[69].mxu0 }
 0x322   : > { %v3700_v32 = vadd.f32 %v3699_v39, %v3669_v1 }
 0x323   : > { %v3263_v10 = vpop.f32.mrb[70].mxu0 }
 0x324   : > { %v3670_v16 = vmul.f32 %v8208_v58, %v3263_v10  ;;  %v3265_v8 = vpop.f32.mrb[71].mxu0 }
 0x326   : > { %v3701_v35 = vadd.f32 %v3700_v32, %v3670_v16  ;;  %v8266_v32 = vsel %vm3583_vm12, 1.0, %v5894_v3 }
 0x327   : > { %v3268_v26 = vpop.f32.mrb[72].mxu0 }
 0x328   : > { %v3671_v15 = vmul.f32 %v8214_v62, %v3268_v26  ;;  %v3270_v28 = vpop.f32.mrb[73].mxu0 }
 0x32a   : > { %v3702_v46 = vadd.f32 %v3701_v35, %v3671_v15 }
 0x32b   : > { %v3273_v37 = vpop.f32.mrb[74].mxu0 }
 0x32c   : > { %v3672_v19 = vmul.f32 %v8220_v49, %v3273_v37  ;;  %v3275_v53 = vpop.f32.mrb[75].mxu0 }
 0x32e   : > { %v3703_v29 = vadd.f32 %v3702_v46, %v3672_v19  ;;  %v8274_v46 = vsel %vm3584_vm13, 1.0, %v5894_v3 }
 0x32f   : > { %v3278_v40 = vpop.f32.mrb[76].mxu0 }
 0x330   : > { %v3673_v36 = vmul.f32 %v8226_v12, %v3278_v40  ;;  %v3280_v54 = vpop.f32.mrb[77].mxu0 }
 0x332   : > { %v3704_v51 = vadd.f32 %v3703_v29, %v3673_v36 }
 0x333   : > { %v3283_v17 = vpop.f32.mrb[78].mxu0 }
 0x334   : > { %v3674_v21 = vmul.f32 %v8232_v2, %v3283_v17  ;;  %v3285_v13 = vpop.f32.mrb[79].mxu0 }
 0x336   : > { %v3705_v45 = vadd.f32 %v3704_v51, %v3674_v21  ;;  %v8282_v51 = vsel %vm3585_vm14, 1.0, %v5894_v3 }
 0x337   : > { %v3288_v23 = vpop.f32.mrb[80].mxu0 }
 0x338   : > { %v3675_v24 = vmul.f32 %v8238_v52, %v3288_v23  ;;  %v3290_v9 = vpop.f32.mrb[81].mxu0 }
 0x33a   : > { %v3706_v47 = vadd.f32 %v3705_v45, %v3675_v24 }
 0x33b   : > { %v3293_v42 = vpop.f32.mrb[82].mxu0 }
 0x33c   : > { %v3676_v0 = vmul.f32 %v8244_v59, %v3293_v42  ;;  %v3295_v38 = vpop.f32.mrb[83].mxu0 }
 0x33d   : > { %v5451_v43 = vpop.trf.xlu0 }
 0x33e   : > { %v5452_v44 = vunpack.i.l.bf16 %v5451_v43  ;;  %v5455_v4 = vunpack.i.h.bf16 %v5451_v43  ;;  %v8254_v14 = vpop.trf.xlu1  ;;  %v3707_v5 = vadd.f32 %v3706_v47, %v3676_v0  ;;  %v8290_v47 = vsel %vm3586_vm15, 1.0, %v5894_v3 }
 0x33f   : > { %v3298_v6 = vpop.f32.mrb[84].mxu0 }
 0x340   : > { %3406 = vmatprep.mubr.f32.mxu0 %v5452_v44  ;;  %v3677_v30 = vmul.f32 %v8250_v60, %v3298_v6  ;;  %v3300_v61 = vpop.f32.mrb[85].mxu0 }
 0x341   : > { %v5456_v55 = vpop.trf.xlu0  ;;  %3407 = vmatmul.mubr.f32.gmra.mrb[128].mxu0 %v5455_v4 }
 0x342   : > { %v5457_v56 = vunpack.i.l.bf16 %v5456_v55  ;;  %v5460_v33 = vunpack.i.h.bf16 %v5456_v55  ;;  %v8262_v57 = vpop.trf.xlu1  ;;  %v3708_v39 = vadd.f32 %v3707_v5, %v3677_v30  ;;  %v8298_v5 = vsel %vm3587_vm0, 1.0, %v5894_v3  ;;  %v8883_v30 = vld [vmem:[#allocation32_spill] sm:$0xff] }
 0x343   : > { %v3303_v22 = vpop.f32.mrb[86].mxu0  ;;  %vm3588_vm1 = vcmp.eq.s32.totalorder %v8883_v30, %v8185_v48 }
 0x344   : > { %3411 = vmatprep.mubr.f32.mxu0 %v5457_v56  ;;  %v3678_v20 = vmul.f32 %v8258_v34, %v3303_v22  ;;  %v3305_v1 = vpop.f32.mrb[87].mxu0 }
 0x345   : > { %v5461_v41 = vpop.trf.xlu0  ;;  %3412 = vmatmul.mubr.f32.gmra.mrb[130].mxu0 %v5460_v33  ;;  %v8306_v1 = vsel %vm3588_vm1, 1.0, %v5894_v3 }
 0x346   : > { %v5462_v10 = vunpack.i.l.bf16 %v5461_v41  ;;  %v5465_v63 = vunpack.i.h.bf16 %v5461_v41  ;;  %v8270_v16 = vpop.trf.xlu1  ;;  %v3709_v35 = vadd.f32 %v3708_v39, %v3678_v20  ;;  %v8884_v41 = vld [vmem:[#allocation33_spill] sm:$0xff] }
 0x347   : > { %v3308_v8 = vpop.f32.mrb[88].mxu0  ;;  %vm3589_vm2 = vcmp.eq.s32.totalorder %v8884_v41, %v8185_v48 }
 0x348   : > { %3416 = vmatprep.mubr.f32.mxu0 %v5462_v10  ;;  %v3679_v26 = vmul.f32 %v8266_v32, %v3308_v8  ;;  %v3310_v15 = vpop.f32.mrb[89].mxu0 }
 0x349   : > { %v5466_v28 = vpop.trf.xlu0  ;;  %3417 = vmatmul.mubr.f32.gmra.mrb[132].mxu0 %v5465_v63 }
 0x34a   : > { %v5467_v37 = vunpack.i.l.bf16 %v5466_v28  ;;  %v5470_v18 = vunpack.i.h.bf16 %v5466_v28  ;;  %v8278_v19 = vpop.trf.xlu1  ;;  %v3710_v29 = vadd.f32 %v3709_v35, %v3679_v26 }
 0x34b   : > { %v3313_v53 = vpop.f32.mrb[90].mxu0 }
 0x34c   : > { %3421 = vmatprep.mubr.f32.mxu0 %v5467_v37  ;;  %v3680_v40 = vmul.f32 %v8274_v46, %v3313_v53  ;;  %v3315_v36 = vpop.f32.mrb[91].mxu0  ;;  %v8885_v53 = vld [vmem:[#allocation34_spill] sm:$0xff] }
 0x34d   : > { %v5471_v54 = vpop.trf.xlu0  ;;  %3422 = vmatmul.mubr.f32.gmra.mrb[134].mxu0 %v5470_v18  ;;  %v8314_v18 = vsel %vm3589_vm2, 1.0, %v5894_v3  ;;  %vm3590_vm4 = vcmp.eq.s32.totalorder %v8885_v53, %v8185_v48 }
 0x34e   : > { %v5472_v17 = vunpack.i.l.bf16 %v5471_v54  ;;  %v5475_v11 = vunpack.i.h.bf16 %v5471_v54  ;;  %v8286_v21 = vpop.trf.xlu1  ;;  %v3711_v45 = vadd.f32 %v3710_v29, %v3680_v40 }
 0x34f   : > { %v3318_v13 = vpop.f32.mrb[92].mxu0 }
 0x350   : > { %3426 = vmatprep.mubr.f32.mxu0 %v5472_v17  ;;  %v3681_v23 = vmul.f32 %v8282_v51, %v3318_v13  ;;  %v3320_v24 = vpop.f32.mrb[93].mxu0 }
 0x351   : > { %v5476_v9 = vpop.trf.xlu0  ;;  %3427 = vmatmul.mubr.f32.gmra.mrb[136].mxu0 %v5475_v11  ;;  %v8886_v24 = vld [vmem:[#allocation35_spill] sm:$0xff] }
 0x352   : > { %v5477_v42 = vunpack.i.l.bf16 %v5476_v9  ;;  %v5480_v27 = vunpack.i.h.bf16 %v5476_v9  ;;  %v8294_v0 = vpop.trf.xlu1  ;;  %v3712_v43 = vadd.f32 %v3711_v45, %v3681_v23  ;;  %v8322_v23 = vsel %vm3590_vm4, 1.0, %v5894_v3 }
 0x353   : > { %v3323_v38 = vpop.f32.mrb[94].mxu0  ;;  %vm3591_vm5 = vcmp.eq.s32.totalorder %v8886_v24, %v8185_v48 }
 0x354   : > { %3431 = vmatprep.mubr.f32.mxu0 %v5477_v42  ;;  %v3682_v44 = vmul.f32 %v8290_v47, %v3323_v38  ;;  %v3325_v4 = vpop.f32.mrb[95].mxu0  ;;  %v8330_v30 = vsel %vm3591_vm5, 1.0, %v5894_v3 }
 0x355   : > { %v5481_v6 = vpop.trf.xlu0  ;;  %3432 = vmatmul.mubr.f32.gmra.mrb[138].mxu0 %v5480_v27 }
 0x356   : > { %v5482_v61 = vunpack.i.l.bf16 %v5481_v6  ;;  %v5485_v50 = vunpack.i.h.bf16 %v5481_v6  ;;  %v8302_v55 = vpop.trf.xlu1  ;;  %v3713_v33 = vadd.f32 %v3712_v43, %v3682_v44 }
 0x357   : > { %v3328_v56 = vpop.f32.mrb[96].mxu0 }
 0x358   : > { %3436 = vmatprep.mubr.f32.mxu0 %v5482_v61  ;;  %v3683_v22 = vmul.f32 %v8298_v5, %v3328_v56  ;;  %v3330_v39 = vpop.f32.mrb[97].mxu0  ;;  %v8887_v61 = vld [vmem:[#allocation36_spill] sm:$0xff] }
 0x359   : > { %v5486_v20 = vpop.trf.xlu0  ;;  %3437 = vmatmul.mubr.f32.gmra.mrb[140].mxu0 %v5485_v50  ;;  %vm3592_vm3 = vcmp.eq.s32.totalorder %v8887_v61, %v8185_v48 }
 0x35a   : > { %v5487_v10 = vunpack.i.l.bf16 %v5486_v20  ;;  %v5490_v63 = vunpack.i.h.bf16 %v5486_v20  ;;  %v8310_v8 = vpop.trf.xlu1  ;;  %v3714_v26 = vadd.f32 %v3713_v33, %v3683_v22 }
 0x35b   : > { %v3333_v35 = vpop.f32.mrb[98].mxu0 }
 0x35c   : > { %3441 = vmatprep.mubr.f32.mxu0 %v5487_v10  ;;  %v3684_v15 = vmul.f32 %v8306_v1, %v3333_v35  ;;  %v3335_v28 = vpop.f32.mrb[99].mxu0  ;;  %v8888_v35 = vld [vmem:[#allocation38_spill] sm:$0xff] }
 0x35d   : > { %v5491_v37 = vpop.trf.xlu0  ;;  %3442 = vmatmul.mubr.f32.gmra.mrb[142].mxu0 %v5490_v63  ;;  %v8338_v63 = vsel %vm3592_vm3, 1.0, %v5894_v3  ;;  %vm3593_vm6 = vcmp.eq.s32.totalorder %v8888_v35, %v8185_v48 }
 0x35e   : > { %v5492_v29 = vunpack.i.l.bf16 %v5491_v37  ;;  %v5495_v40 = vunpack.i.h.bf16 %v5491_v37  ;;  %v8318_v36 = vpop.trf.xlu1  ;;  %v3715_v17 = vadd.f32 %v3714_v26, %v3684_v15 }
 0x35f   : > { %v3338_v54 = vpop.f32.mrb[100].mxu0 }
 0x360   : > { %3446 = vmatprep.mubr.f32.mxu0 %v5492_v29  ;;  %v3685_v11 = vmul.f32 %v8314_v18, %v3338_v54  ;;  %v3340_v13 = vpop.f32.mrb[101].mxu0 }
 0x361   : > { %v5496_v45 = vpop.trf.xlu0  ;;  %3447 = vmatmul.mubr.f32.gmra.mrb[144].mxu0 %v5495_v40 }
 0x362   : > { %v5497_v9 = vunpack.i.l.bf16 %v5496_v45  ;;  %v5500_v42 = vunpack.i.h.bf16 %v5496_v45  ;;  %v8326_v27 = vpop.trf.xlu1  ;;  %v3716_v43 = vadd.f32 %v3715_v17, %v3685_v11  ;;  %v8346_v17 = vsel %vm3593_vm6, 1.0, %v5894_v3  ;;  %v8889_v11 = vld [vmem:[#allocation39_spill] sm:$0xff] }
 0x363   : > { %v3343_v38 = vpop.f32.mrb[102].mxu0  ;;  %vm3594_vm7 = vcmp.eq.s32.totalorder %v8889_v11, %v8185_v48 }
 0x364   : > { %3451 = vmatprep.mubr.f32.mxu0 %v5497_v9  ;;  %v3686_v44 = vmul.f32 %v8322_v23, %v3343_v38  ;;  %v3345_v4 = vpop.f32.mrb[103].mxu0 }
 0x365   : > { %v5501_v6 = vpop.trf.xlu0  ;;  %3452 = vmatmul.mubr.f32.gmra.mrb[146].mxu0 %v5500_v42  ;;  %v8354_v4 = vsel %vm3594_vm7, 1.0, %v5894_v3 }
 0x366   : > { %v5502_v50 = vunpack.i.l.bf16 %v5501_v6  ;;  %v5505_v56 = vunpack.i.h.bf16 %v5501_v6  ;;  %v8334_v33 = vpop.trf.xlu1  ;;  %v3717_v39 = vadd.f32 %v3716_v43, %v3686_v44  ;;  %v8890_v6 = vld [vmem:[#allocation42_spill] sm:$0xff] }
 0x367   : > { %v3348_v22 = vpop.f32.mrb[104].mxu0  ;;  %vm3595_vm8 = vcmp.eq.s32.totalorder %v8890_v6, %v8185_v48 }
 0x368   : > { %3456 = vmatprep.mubr.f32.mxu0 %v5502_v50  ;;  %v3687_v20 = vmul.f32 %v8330_v30, %v3348_v22  ;;  %v3350_v41 = vpop.f32.mrb[105].mxu0  ;;  %v8362_v35 = vsel %vm3595_vm8, 1.0, %v5894_v3 }
 0x369   : > { %v5506_v10 = vpop.trf.xlu0  ;;  %3457 = vmatmul.mubr.f32.gmra.mrb[148].mxu0 %v5505_v56 }
 0x36a   : > { %v5507_v26 = vunpack.i.l.bf16 %v5506_v10  ;;  %v5510_v15 = vunpack.i.h.bf16 %v5506_v10  ;;  %v8342_v28 = vpop.trf.xlu1  ;;  %v3718_v53 = vadd.f32 %v3717_v39, %v3687_v20 }
 0x36b   : > { %v3353_v37 = vpop.f32.mrb[106].mxu0 }
 0x36c   : > { %3461 = vmatprep.mubr.f32.mxu0 %v5507_v26  ;;  %v3688_v29 = vmul.f32 %v8338_v63, %v3353_v37  ;;  %v3355_v40 = vpop.f32.mrb[107].mxu0  ;;  %v8891_v26 = vld [vmem:[#allocation43_spill] sm:$0xff] }
 0x36d   : > { %v5511_v54 = vpop.trf.xlu0  ;;  %3462 = vmatmul.mubr.f32.gmra.mrb[150].mxu0 %v5510_v15  ;;  %vm3596_vm9 = vcmp.eq.s32.totalorder %v8891_v26, %v8185_v48  ;;  %v8893_v26 = vld [vmem:[#allocation47_spill] sm:$0xff] }
 0x36e   : > { %v5512_v13 = vunpack.i.l.bf16 %v5511_v54  ;;  %v5515_v45 = vunpack.i.h.bf16 %v5511_v54  ;;  %v8350_v24 = vpop.trf.xlu1  ;;  %v3719_v42 = vadd.f32 %v3718_v53, %v3688_v29  ;;  %vm3598_vm11 = vcmp.eq.s32.totalorder %v8893_v26, %v8185_v48 }
 0x36f   : > { %v3358_v9 = vpop.f32.mrb[108].mxu0 }
 0x370   : > { %3466 = vmatprep.mubr.f32.mxu0 %v5512_v13  ;;  %v3689_v38 = vmul.f32 %v8346_v17, %v3358_v9  ;;  %v3360_v43 = vpop.f32.mrb[109].mxu0  ;;  %v8371_v9 = vsel %vm3596_vm9, 1.0, %v5894_v3 }
 0x371   : > { %v5516_v44 = vpop.trf.xlu0  ;;  %3467 = vmatmul.mubr.f32.gmra.mrb[152].mxu0 %v5515_v45  ;;  %v5564_v45 = vunpack.i.l.bf16 %v8254_v14 }
 0x372   : > { %v5517_v61 = vunpack.i.l.bf16 %v5516_v44  ;;  %v5520_v50 = vunpack.i.h.bf16 %v5516_v44  ;;  %v8358_v56 = vpop.trf.xlu1  ;;  %v3720_v39 = vadd.f32 %v3719_v42, %v3689_v38  ;;  %v8892_v42 = vld [vmem:[#allocation46_spill] sm:$0xff] }
 0x373   : > { %v3363_v22 = vpop.f32.mrb[110].mxu0  ;;  %vm3597_vm10 = vcmp.eq.s32.totalorder %v8892_v42, %v8185_v48 }
 0x374   : > { %3471 = vmatprep.mubr.f32.mxu0 %v5517_v61  ;;  %v3690_v20 = vmul.f32 %v8354_v4, %v3363_v22  ;;  %v3365_v41 = vpop.f32.mrb[111].mxu0 }
 0x375   : > { %v5521_v10 = vpop.trf.xlu0  ;;  %3472 = vmatmul.mubr.f32.gmra.mrb[154].mxu0 %v5520_v50  ;;  %v5569_v41 = vunpack.i.l.bf16 %v8262_v57 }
 0x376   : > { %v5522_v15 = vunpack.i.l.bf16 %v5521_v10  ;;  %v5525_v37 = vunpack.i.h.bf16 %v5521_v10  ;;  %v8366_v53 = vpop.trf.xlu1  ;;  %v3721_v40 = vadd.f32 %v3720_v39, %v3690_v20  ;;  %v5567_v39 = vunpack.i.h.bf16 %v8254_v14 }
 0x377   : > { %v3368_v29 = vpop.f32.mrb[112].mxu0  ;;  %v8380_v20 = vsel %vm3597_vm10, 1.0, %v5894_v3  ;;  %v5574_v14 = vunpack.i.l.bf16 %v8270_v16 }
 0x378   : > { %3476 = vmatprep.mubr.f32.mxu0 %v5522_v15  ;;  %v3691_v54 = vmul.f32 %v8362_v35, %v3368_v29  ;;  %v3370_v11 = vpop.f32.mrb[113].mxu0 }
 0x379   : > { %v5526_v13 = vpop.trf.xlu0  ;;  %3477 = vmatmul.mubr.f32.gmra.mrb[156].mxu0 %v5525_v37 }
 0x37a   : > { %v5530_v38 = vunpack.i.h.bf16 %v5526_v13  ;;  %v5527_v43 = vunpack.i.l.bf16 %v5526_v13  ;;  %v8375_v44 = vpop.trf.xlu1  ;;  %v3722_v61 = vadd.f32 %v3721_v40, %v3691_v54  ;;  %v5572_v40 = vunpack.i.h.bf16 %v8262_v57  ;;  %v8894_v13 = vld [vmem:[#allocation48_spill] sm:$0xff] }
 0x37b   : > { %v3373_v6 = vpop.f32.mrb[114].mxu0  ;;  %v8388_v54 = vsel %vm3598_vm11, 1.0, %v5894_v3  ;;  %vm3599_vm12 = vcmp.eq.s32.totalorder %v8894_v13, %v8185_v48  ;;  %v5579_v57 = vunpack.i.l.bf16 %v8278_v19 }
 0x37c   : > { %3481 = vmatprep.mubr.f32.mxu0 %v5527_v43  ;;  %v3692_v50 = vmul.f32 %v8371_v9, %v3373_v6  ;;  %v3375_v22 = vpop.f32.mrb[115].mxu0  ;;  %v5577_v43 = vunpack.i.h.bf16 %v8270_v16  ;;  %v8396_v6 = vsel %vm3599_vm12, 1.0, %v5894_v3  ;;  %v5584_v16 = vunpack.i.l.bf16 %v8286_v21 }
 0x37d   : > { %3482 = vmatmul.mubr.f32.gmra.mrb[158].mxu0 %v5530_v38 }
 0x37e   : > { %3486 = vmatprep.mubr.f32.mxu0 %v5564_v45  ;;  %v3723_v10 = vadd.f32 %v3722_v61, %v3692_v50  ;;  %v8895_v50 = vld [vmem:[#allocation49_spill] sm:$0xff] }
 0x37f   : > { %v3378_v15 = vpop.f32.mrb[116].mxu0  ;;  %vm3600_vm13 = vcmp.eq.s32.totalorder %v8895_v50, %v8185_v48 }
 0x380   : > { %v3693_v37 = vmul.f32 %v8380_v20, %v3378_v15  ;;  %v3380_v29 = vpop.f32.mrb[117].mxu0  ;;  %v8404_v26 = vsel %vm3600_vm13, 1.0, %v5894_v3 }
 0x381   : > { %3487 = vmatmul.mubr.f32.gmra.mrb[160].mxu0 %v5567_v39 }
 0x382   : > { %3491 = vmatprep.mubr.f32.mxu0 %v5569_v41  ;;  %v3724_v11 = vadd.f32 %v3723_v10, %v3693_v37  ;;  %v5582_v10 = vunpack.i.h.bf16 %v8278_v19  ;;  %v8896_v37 = vld [vmem:[#allocation51_spill] sm:$0xff]  ;;  %v5589_v19 = vunpack.i.l.bf16 %v8294_v0 }
 0x383   : > { %v3383_v45 = vpop.f32.mrb[118].mxu0  ;;  %vm3601_vm14 = vcmp.eq.s32.totalorder %v8896_v37, %v8185_v48  ;;  %v5607_v37 = vunpack.i.h.bf16 %v8318_v36 }
 0x384   : > { %v3694_v42 = vmul.f32 %v8388_v54, %v3383_v45  ;;  %v3385_v38 = vpop.f32.mrb[119].mxu0  ;;  %v8412_v13 = vsel %vm3601_vm14, 1.0, %v5894_v3 }
 0x385   : > { %3492 = vmatmul.mubr.f32.gmra.mrb[162].mxu0 %v5572_v40 }
 0x386   : > { %3496 = vmatprep.mubr.f32.mxu0 %v5574_v14  ;;  %v3725_v61 = vadd.f32 %v3724_v11, %v3694_v42  ;;  %v5587_v11 = vunpack.i.h.bf16 %v8286_v21  ;;  %v8897_v42 = vld [vmem:[#allocation52_spill] sm:$0xff]  ;;  %v5594_v21 = vunpack.i.l.bf16 %v8302_v55 }
 0x387   : > { %v3388_v22 = vpop.f32.mrb[120].mxu0  ;;  %vm3602_vm15 = vcmp.eq.s32.totalorder %v8897_v42, %v8185_v48  ;;  %v5597_v48 = vunpack.i.h.bf16 %v8302_v55  ;;  %v5612_v55 = vunpack.i.h.bf16 %v8326_v27  ;;  %v5637_v42 = vunpack.i.h.bf16 %v8366_v53 }
 0x388   : > { %v3695_v39 = vmul.f32 %v8396_v6, %v3388_v22  ;;  %v3390_v41 = vpop.f32.mrb[121].mxu0  ;;  %v8420_v50 = vsel %vm3602_vm15, 1.0, %v5894_v3  ;;  %v5602_v3 = vunpack.i.h.bf16 %v8310_v8 }
 0x389   : > { %3497 = vmatmul.mubr.f32.gmra.mrb[164].mxu0 %v5577_v43 }
 0x38a   : > { %3501 = vmatprep.mubr.f32.mxu0 %v5579_v57  ;;  %v3726_v15 = vadd.f32 %v3725_v61, %v3695_v39  ;;  %v5592_v61 = vunpack.i.h.bf16 %v8294_v0  ;;  %v5604_v0 = vunpack.i.l.bf16 %v8318_v36  ;;  %v5624_v36 = vunpack.i.l.bf16 %v8350_v24 }
 0x38b   : > { %v3393_v29 = vpop.f32.mrb[122].mxu0 }
 0x38c   : > { %v3696_v40 = vmul.f32 %v8404_v26, %v3393_v29  ;;  %v3395_v14 = vpop.f32.mrb[123].mxu0  ;;  %v5609_v29 = vunpack.i.l.bf16 %v8326_v27  ;;  %v5629_v27 = vunpack.i.l.bf16 %v8358_v56 }
 0x38d   : > { %3502 = vmatmul.mubr.f32.gmra.mrb[166].mxu0 %v5582_v10  ;;  %v5617_v14 = vunpack.i.h.bf16 %v8334_v33 }
 0x38e   : > { %3506 = vmatprep.mubr.f32.mxu0 %v5584_v16  ;;  %v3727_v45 = vadd.f32 %v3726_v15, %v3696_v40  ;;  %v5599_v16 = vunpack.i.l.bf16 %v8310_v8  ;;  %v5614_v40 = vunpack.i.l.bf16 %v8334_v33  ;;  %v5619_v8 = vunpack.i.l.bf16 %v8342_v28 }
 0x38f   : > { %v3398_v38 = vpop.f32.mrb[124].mxu0  ;;  %v5634_v33 = vunpack.i.l.bf16 %v8366_v53 }
 0x390   : > { %v3697_v43 = vmul.f32 %v8412_v13, %v3398_v38  ;;  %v3400_v57 = vpop.f32.mrb[125].mxu0  ;;  %v5642_v38 = vunpack.i.h.bf16 %v8375_v44 }
 0x391   : > { %3507 = vmatmul.mubr.f32.gmra.mrb[168].mxu0 %v5587_v11  ;;  %v5622_v11 = vunpack.i.h.bf16 %v8342_v28  ;;  %v5639_v28 = vunpack.i.l.bf16 %v8375_v44 }
 0x392   : > { %3511 = vmatprep.mubr.f32.mxu0 %v5589_v19  ;;  %v3728_v22 = vadd.f32 %v3727_v45, %v3697_v43  ;;  %v5627_v19 = vunpack.i.h.bf16 %v8350_v24  ;;  %v5632_v45 = vunpack.i.h.bf16 %v8358_v56 }
 0x393   : > { %v3403_v39 = vpop.f32.mrb[126].mxu0 }
 0x394   : > { %v3698_v41 = vmul.f32 %v8420_v50, %v3403_v39  ;;  %v3405_v10 = vpop.f32.mrb[127].mxu0 }
 0x395   : > { %3512 = vmatmul.mubr.f32.gmra.mrb[170].mxu0 %v5592_v61 }
 0x396   : > { %3516 = vmatprep.mubr.f32.mxu0 %v5594_v21  ;;  %v8426_v15 = vadd.f32 %v3728_v22, %v3698_v41 }
 0x399   : > { %3517 = vmatmul.mubr.f32.gmra.mrb[172].mxu0 %v5597_v48 }
 0x39a   : > { %3521 = vmatprep.mubr.f32.mxu0 %v5599_v16 }
 0x39d   : > { %3522 = vmatmul.mubr.f32.gmra.mrb[174].mxu0 %v5602_v3 }
 0x39e   : > { %3526 = vmatprep.mubr.f32.mxu0 %v5604_v0 }
 0x3a1   : > { %3527 = vmatmul.mubr.f32.gmra.mrb[176].mxu0 %v5607_v37 }
 0x3a2   : > { %3531 = vmatprep.mubr.f32.mxu0 %v5609_v29 }
 0x3a5   : > { %3532 = vmatmul.mubr.f32.gmra.mrb[178].mxu0 %v5612_v55 }
 0x3a6   : > { %3536 = vmatprep.mubr.f32.mxu0 %v5614_v40 }
 0x3a9   : > { %3537 = vmatmul.mubr.f32.gmra.mrb[180].mxu0 %v5617_v14 }
 0x3aa   : > { %3541 = vmatprep.mubr.f32.mxu0 %v5619_v8 }
 0x3ad   : > { %3542 = vmatmul.mubr.f32.gmra.mrb[182].mxu0 %v5622_v11 }
 0x3ae   : > { %3546 = vmatprep.mubr.f32.mxu0 %v5624_v36 }
 0x3b1   : > { %3547 = vmatmul.mubr.f32.gmra.mrb[184].mxu0 %v5627_v19 }
 0x3b2   : > { %3551 = vmatprep.mubr.f32.mxu0 %v5629_v27 }
 0x3b5   : > { %3552 = vmatmul.mubr.f32.gmra.mrb[186].mxu0 %v5632_v45 }
 0x3b6   : > { %3556 = vmatprep.mubr.f32.mxu0 %v5634_v33 }
 0x3b9   : > { %3557 = vmatmul.mubr.f32.gmra.mrb[188].mxu0 %v5637_v42 }
 0x3ba   : > { %3561 = vmatprep.mubr.f32.mxu0 %v5639_v28 }
 0x3bd   : > { %3562 = vmatmul.mubr.f32.gmra.mrb[190].mxu0 %v5642_v38 }
 0x414   : > { %v3408_v24 = vpop.f32.mrb[128].mxu0 }
 0x415   : > { %v3410_v43 = vpop.f32.mrb[129].mxu0  ;;  %v3736_v61 = vmul.f32 %v8192_v25, %v3408_v24 }
 0x418   : > { %v3413_v57 = vpop.f32.mrb[130].mxu0 }
 0x419   : > { %v3737_v56 = vmul.f32 %v8195_v31, %v3413_v57  ;;  %v3415_v21 = vpop.f32.mrb[131].mxu0 }
 0x41b   : > { %v3768_v22 = vadd.f32 %v3737_v56, %v3736_v61 }
 0x41c   : > { %v3418_v53 = vpop.f32.mrb[132].mxu0 }
 0x41d   : > { %v3738_v39 = vmul.f32 %v8202_v7, %v3418_v53  ;;  %v3420_v41 = vpop.f32.mrb[133].mxu0 }
 0x41f   : > { %v3769_v10 = vadd.f32 %v3768_v22, %v3738_v39 }
 0x420   : > { %v3423_v44 = vpop.f32.mrb[134].mxu0 }
 0x421   : > { %v3739_v48 = vmul.f32 %v8208_v58, %v3423_v44  ;;  %v3425_v16 = vpop.f32.mrb[135].mxu0 }
 0x423   : > { %v3770_v3 = vadd.f32 %v3769_v10, %v3739_v48 }
 0x424   : > { %v3428_v0 = vpop.f32.mrb[136].mxu0 }
 0x425   : > { %v3740_v25 = vmul.f32 %v8214_v62, %v3428_v0  ;;  %v3430_v37 = vpop.f32.mrb[137].mxu0 }
 0x427   : > { %v3771_v31 = vadd.f32 %v3770_v3, %v3740_v25 }
 0x428   : > { %v3433_v29 = vpop.f32.mrb[138].mxu0 }
 0x429   : > { %v3741_v7 = vmul.f32 %v8220_v49, %v3433_v29  ;;  %v3435_v58 = vpop.f32.mrb[139].mxu0 }
 0x42a   : > { %5781 = shalt.err (!%p5778_p9)
}
 0x42b   : > { %s5782_s10 = scalar_lea.hbm %s8455_s19, 16384  ;;  %s5786_s29 = scalar_lea.hbm %s8570_s3, 32768 }
 0x42c   : > { %p5783_p1 = scmp.ne.s32.totalorder %s8455_s19, %s5782_s10  ;;  %p5787_p5 = scmp.lt.u32.totalorder %s8455_s19, %s8570_s3 }
 0x42d   : > { %p5788_p13 = scmp.lt.u32.totalorder %s5786_s29, %s5782_s10  ;;  %p5790_p0 = scmp.lt.u32.totalorder %s5782_s10, %s8455_s19 }
 0x42e   : > { %p5784_p6 = pnand %p5783_p1, %p8898_p3 }
 0x42f   : > { %p5789_p8 = por %p5788_p13, %p5787_p5 }
 0x430   : > { %p5785_p2 = pneg %p5784_p6 }
 0x431   : > { %p5791_p11 = por %p5790_p0, %p5789_p8 }
 0x433   : > { %p5792_p4 = pnand %p5791_p11, %p5785_p2 }
 0x435   : > { %5795 = shalt.err (!%p5792_p4)
}
 0x436   : > { %s5896_s7 = smov 256   ;;  %s5897_s11 = smov 16   ;;  %v3772_v62 = vadd.f32 %v3771_v31, %v3741_v7  ;;  %v3438_v49 = vpop.f32.mrb[140].mxu0  ;;  %vm3805_vm0 = vcmask 1040384  }
 0x437   : > { %5121 = dma.vmem_to_hbm [thread:$0]  (%p8898_p3), %s8457_s6, 16384, %s8455_s19, %s3815_s28, %s5896_s7, %s5896_s7, %s5897_s11   ;;  %v3742_v55 = vmul.f32 %v8226_v12, %v3438_v49  ;;  %v3440_v40 = vpop.f32.mrb[141].mxu0 }
 0x438   : > { %v3443_v8 = vpop.f32.mrb[142].mxu0  ;;  %s4674_s6 = sshll.u32 %s5878_s15, 5  ;;  %s246_s19 = scalar_lea.vmem [#allocation8], %s3991_s9 }
 0x439   : > { %v3773_v14 = vadd.f32 %v3772_v62, %v3742_v55  ;;  %v3743_v11 = vmul.f32 %v8232_v2, %v3443_v8  ;;  %v3445_v36 = vpop.f32.mrb[143].mxu0  ;;  %s3829_s28 = sshll.u32 %s246_s19, 4  ;;  %s8518_s23 = scalar_lea.hbm %s8569_s2, %s4674_s6  ;;  %s8520_s28 = int_to_ptr.vmem [resolvable:$true] %s3829_s28 }
 0x43a   : > { %v3448_v27 = vpop.f32.mrb[144].mxu0  ;;  %s3810_s8 = scalar_lea.sflag [#allocation5], %s6067_s30  ;;  %s5796_s10 = scalar_lea.vmem %s8520_s28, 32 }
 0x43b   : > { %v3774_v19 = vadd.f32 %v3773_v14, %v3743_v11  ;;  %v3744_v45 = vmul.f32 %v8238_v52, %v3448_v27  ;;  %v3450_v33 = vpop.f32.mrb[145].mxu0  ;;  %p5797_p7 = scmp.ne.s32.totalorder %s8520_s28, %s5796_s10  ;;  %s5898_s15 = smov [#allocation8]  }
 0x43c   : > { %v3453_v28 = vpop.f32.mrb[146].mxu0  ;;  %s5800_s9 = sshll.u32 %s5898_s15, 4  ;;  %s5801_s9 = int_to_ptr.vmem [resolvable:$false] %s5800_s9 }
 0x43d   : > { %v3775_v42 = vadd.f32 %v3774_v19, %v3744_v45  ;;  %v3745_v38 = vmul.f32 %v8244_v59, %v3453_v28  ;;  %v3455_v24 = vpop.f32.mrb[147].mxu0  ;;  %p5798_p10 = pnand %p5797_p7, %p8898_p3  ;;  %s5802_s5 = scalar_lea.vmem %s5801_s9, 64 }
 0x43e   : > { %v3458_v57 = vpop.f32.mrb[148].mxu0  ;;  %p5803_p9 = scmp.lt.s32.totalorder %s8520_s28, %s5801_s9  ;;  %p5804_p1 = scmp.lt.s32.totalorder %s5802_s5, %s5796_s10 }
 0x43f   : > { %v3776_v43 = vadd.f32 %v3775_v42, %v3745_v38  ;;  %v3746_v12 = vmul.f32 %v8250_v60, %v3458_v57  ;;  %v3460_v61 = vpop.f32.mrb[149].mxu0  ;;  %p5799_p12 = pneg %p5798_p10 }
 0x440   : > { %v3463_v21 = vpop.f32.mrb[150].mxu0  ;;  %p5805_p6 = por %p5804_p1, %p5803_p9 }
 0x441   : > { %v3777_v56 = vadd.f32 %v3776_v43, %v3746_v12  ;;  %v3747_v2 = vmul.f32 %v8258_v34, %v3463_v21  ;;  %v3465_v22 = vpop.f32.mrb[151].mxu0 }
 0x442   : > { %p5806_p2 = pnand %p5805_p6, %p5799_p12 }
 0x443   : > { %v3778_v53 = vadd.f32 %v3777_v56, %v3747_v2 }
 0x444   : > { %v3468_v39 = vpop.f32.mrb[152].mxu0 }
 0x445   : > { %v3748_v52 = vmul.f32 %v8266_v32, %v3468_v39  ;;  %v3470_v41 = vpop.f32.mrb[153].mxu0 }
 0x447   : > { %v3779_v10 = vadd.f32 %v3778_v53, %v3748_v52 }
 0x448   : > { %v3473_v44 = vpop.f32.mrb[154].mxu0 }
 0x449   : > { %v3749_v59 = vmul.f32 %v8274_v46, %v3473_v44  ;;  %v3475_v48 = vpop.f32.mrb[155].mxu0 }
 0x44b   : > { %v3780_v16 = vadd.f32 %v3779_v10, %v3749_v59 }
 0x44c   : > { %v3478_v3 = vpop.f32.mrb[156].mxu0 }
 0x44d   : > { %v3750_v60 = vmul.f32 %v8282_v51, %v3478_v3  ;;  %v3480_v0 = vpop.f32.mrb[157].mxu0 }
 0x44f   : > { %v3781_v25 = vadd.f32 %v3780_v16, %v3750_v60 }
 0x450   : > { %v3483_v37 = vpop.f32.mrb[158].mxu0 }
 0x451   : > { %v3751_v34 = vmul.f32 %v8290_v47, %v3483_v37  ;;  %v3485_v31 = vpop.f32.mrb[159].mxu0 }
 0x452   : > { %v3730_v31 = vrot.slane %v8426_v15, 4 }
 0x453   : > { %v3782_v29 = vadd.f32 %v3781_v25, %v3751_v34 }
 0x454   : > { %v3488_v7 = vpop.f32.mrb[160].mxu0 }
 0x455   : > { %v3752_v32 = vmul.f32 %v8298_v5, %v3488_v7  ;;  %v3490_v58 = vpop.f32.mrb[161].mxu0 }
 0x457   : > { %v3783_v62 = vadd.f32 %v3782_v29, %v3752_v32 }
 0x458   : > { %v3493_v49 = vpop.f32.mrb[162].mxu0 }
 0x459   : > { %v3753_v46 = vmul.f32 %v8306_v1, %v3493_v49  ;;  %v3495_v55 = vpop.f32.mrb[163].mxu0 }
 0x45b   : > { %v3784_v40 = vadd.f32 %v3783_v62, %v3753_v46 }
 0x45c   : > { %v3498_v14 = vpop.f32.mrb[164].mxu0 }
 0x45d   : > { %v3754_v51 = vmul.f32 %v8314_v18, %v3498_v14  ;;  %v3500_v8 = vpop.f32.mrb[165].mxu0 }
 0x45f   : > { %v3785_v11 = vadd.f32 %v3784_v40, %v3754_v51 }
 0x460   : > { %v3503_v36 = vpop.f32.mrb[166].mxu0 }
 0x461   : > { %v3755_v47 = vmul.f32 %v8322_v23, %v3503_v36  ;;  %v3505_v19 = vpop.f32.mrb[167].mxu0 }
 0x463   : > { %v3786_v27 = vadd.f32 %v3785_v11, %v3755_v47 }
 0x464   : > { %v3508_v45 = vpop.f32.mrb[168].mxu0 }
 0x465   : > { %v3756_v5 = vmul.f32 %v8330_v30, %v3508_v45  ;;  %v3510_v33 = vpop.f32.mrb[169].mxu0 }
 0x467   : > { %v3787_v42 = vadd.f32 %v3786_v27, %v3756_v5 }
 0x468   : > { %v3513_v28 = vpop.f32.mrb[170].mxu0 }
 0x469   : > { %v3757_v1 = vmul.f32 %v8338_v63, %v3513_v28  ;;  %v3515_v38 = vpop.f32.mrb[171].mxu0 }
 0x46b   : > { %v3788_v24 = vadd.f32 %v3787_v42, %v3757_v1 }
 0x46c   : > { %v3518_v43 = vpop.f32.mrb[172].mxu0 }
 0x46d   : > { %v3758_v18 = vmul.f32 %v8346_v17, %v3518_v43  ;;  %v3520_v57 = vpop.f32.mrb[173].mxu0 }
 0x46f   : > { %v3789_v12 = vadd.f32 %v3788_v24, %v3758_v18 }
 0x470   : > { %v3523_v61 = vpop.f32.mrb[174].mxu0 }
 0x471   : > { %v3759_v23 = vmul.f32 %v8354_v4, %v3523_v61  ;;  %v3525_v56 = vpop.f32.mrb[175].mxu0 }
 0x473   : > { %v3790_v21 = vadd.f32 %v3789_v12, %v3759_v23 }
 0x474   : > { %v3528_v2 = vpop.f32.mrb[176].mxu0 }
 0x475   : > { %v3760_v30 = vmul.f32 %v8362_v35, %v3528_v2  ;;  %v3530_v22 = vpop.f32.mrb[177].mxu0 }
 0x477   : > { %v3791_v53 = vadd.f32 %v3790_v21, %v3760_v30 }
 0x478   : > { %v3533_v39 = vpop.f32.mrb[178].mxu0 }
 0x479   : > { %v3761_v63 = vmul.f32 %v8371_v9, %v3533_v39  ;;  %v3535_v52 = vpop.f32.mrb[179].mxu0 }
 0x47b   : > { %v3792_v41 = vadd.f32 %v3791_v53, %v3761_v63 }
 0x47c   : > { %v3538_v10 = vpop.f32.mrb[180].mxu0 }
 0x47d   : > { %v3762_v17 = vmul.f32 %v8380_v20, %v3538_v10  ;;  %v3540_v44 = vpop.f32.mrb[181].mxu0 }
 0x47f   : > { %v3793_v59 = vadd.f32 %v3792_v41, %v3762_v17 }
 0x480   : > { %v3543_v48 = vpop.f32.mrb[182].mxu0 }
 0x481   : > { %v3763_v4 = vmul.f32 %v8388_v54, %v3543_v48  ;;  %v3545_v16 = vpop.f32.mrb[183].mxu0  ;;  %v3731_v54 = vadd.f32 %v3730_v31, %v8426_v15 }
 0x483   : > { %v3794_v3 = vadd.f32 %v3793_v59, %v3763_v4  ;;  %v3732_v46 = vrot.slane %v3731_v54, 2 }
 0x484   : > { %v3548_v60 = vpop.f32.mrb[184].mxu0 }
 0x485   : > { %v3764_v35 = vmul.f32 %v8396_v6, %v3548_v60  ;;  %v3550_v0 = vpop.f32.mrb[185].mxu0  ;;  %v3733_v40 = vadd.f32 %v3732_v46, %v3731_v54 }
 0x487   : > { %v3795_v25 = vadd.f32 %v3794_v3, %v3764_v35  ;;  %v3734_v8 = vrot.slane %v3733_v40, 1 }
 0x488   : > { %v3553_v37 = vpop.f32.mrb[186].mxu0 }
 0x489   : > { %v3765_v9 = vmul.f32 %v8404_v26, %v3553_v37  ;;  %v3555_v34 = vpop.f32.mrb[187].mxu0  ;;  %v3735_v15 = vadd.f32 %v3734_v8, %v3733_v40 }
 0x48b   : > { %v3796_v29 = vadd.f32 %v3795_v25, %v3765_v9 }
 0x48c   : > { %v3558_v20 = vpop.f32.mrb[188].mxu0 }
 0x48d   : > { %v3766_v7 = vmul.f32 %v8412_v13, %v3558_v20  ;;  %v3560_v32 = vpop.f32.mrb[189].mxu0 }
 0x48f   : > { %v3797_v58 = vadd.f32 %v3796_v29, %v3766_v7 }
 0x490   : > { %v3563_v62 = vpop.f32.mrb[190].mxu0 }
 0x491   : > { %v3767_v6 = vmul.f32 %v8420_v50, %v3563_v62  ;;  %v3565_v49 = vpop.f32.mrb[191].mxu0 }
 0x493   : > { %v3798_v55 = vadd.f32 %v3797_v58, %v3767_v6 }
 0x495   : > { %v3799_v26 = vrot.slane %v3798_v55, 4 }
 0x497   : > { %v3800_v14 = vadd.f32 %v3799_v26, %v3798_v55 }
 0x499   : > { %v3801_v51 = vrot.slane %v3800_v14, 2 }
 0x49b   : > { %v3802_v11 = vadd.f32 %v3801_v51, %v3800_v14 }
 0x49d   : > { %v3803_v13 = vrot.slane %v3802_v11, 1 }
 0x49f   : > { %v3804_v36 = vadd.f32 %v3803_v13, %v3802_v11 }
 0x4a1   : > { %v3806_v50 = vsel %vm3805_vm0, %v3735_v15, %v3804_v36 }
 0x4a2   : > { %v3807_v47 = vmul.f32 0.00390625, %v3806_v50 }
 0x4a4   : > { %3808 = vst [vmem:[%s246_s19] sm:$0x3] %v3807_v47 }
 0x4a5   : > { %5809 = shalt.err (!%p5806_p2)
}
 0x4a6   : > { %s5810_s30 = scalar_lea.hbm %s8518_s23, 32  ;;  %s5814_s24 = scalar_lea.hbm %s8569_s2, 64 }
 0x4a7   : > { %p5811_p5 = scmp.ne.s32.totalorder %s8518_s23, %s5810_s30  ;;  %p5815_p0 = scmp.lt.u32.totalorder %s8518_s23, %s8569_s2 }
 0x4a8   : > { %p5816_p11 = scmp.lt.u32.totalorder %s5814_s24, %s5810_s30  ;;  %p5818_p7 = scmp.lt.u32.totalorder %s5810_s30, %s8518_s23 }
 0x4a9   : > { %p5812_p13 = pnand %p5811_p5, %p8898_p3 }
 0x4aa   : > { %p5817_p4 = por %p5816_p11, %p5815_p0 }
 0x4ab   : > { %p5813_p8 = pneg %p5812_p13 }
 0x4ac   : > { %p5819_p10 = por %p5818_p7, %p5817_p4 }
 0x4ae   : > { %p5820_p12 = pnand %p5819_p10, %p5813_p8 }
 0x4b0   : > { %5823 = shalt.err (!%p5820_p12)
}
 0x4b1   : > { %5120 = dma.vmem_to_hbm [thread:$0]  (%p8898_p3), %s8520_s28, 32, %s8518_s23, %s3810_s8  }
 0x4b2 PF: > { %s3857_s11 = sand.u32 1, %s5866_s12   ;;  %p8899_p9 = scmp.ne.s32.totalorder %s8705_s27, 0 }
 0x4b3   : > { %p8900_p1 = scmp.ge.s32.totalorder %s5886_s17, 2  ;;  %s3858_s6 = scalar_lea.sflag [#allocation5], %s3857_s11 }
 0x4b5   : > { %p5132_p6 = pnand %p8900_p1, %p8899_p9 }
 0x4b7   : > { %5857 = dma.done.wait (!%p5132_p6), %s3858_s6, 32  }
 0x4b8   : > { %5859 = vsyncadd (!%p5132_p6), %s3858_s6, 4294967264  ;;  %s3867_s19 = scalar_lea.sflag [#allocation10], %s3857_s11 }
 0x4b9   : > { %5861 = dma.done.wait (!%p5132_p6), %s3867_s19, 16384  }
 0x4ba   : > { %5863 = vsyncadd (!%p5132_p6), %s3867_s19, 4294950912  ;;  %s26_s17 = sadd.s32 1, %s5886_s17   ;;  %s8901_s12 = smov %s5870_s13 }
 0x4bb   : > { %p23_p2 = scmp.ge.s32.totalorder %s26_s17, 4   ;;  %s8902_s13 = smov %s5874_s14 }
 0x4bc   : > { %s8903_s14 = smov %s5975_s26  ;;  %s8904_s15 = smov %s5882_s16 }
 0x4bd   : > { %s8905_s16 = smov %s8907_s20  ;;  %25 = sbr.rel (!%p23_p2) target bundleno = 10 (0xa), region = 108 }
 0x4c4   :  { %3872 = vsyncpa [#allocation4], 1 }
 0x4c5   :  { %3874 = vsyncpa [#allocation4 + $0x1], 1 }
 0x4c6   :  { %3875 = vsyncpa [#allocation7], 1 }
 0x4c7   :  { %3877 = vsyncpa [#allocation7 + $0x1], 1 }
 0x4c8   :  { %3878 = vsyncpa [#allocation5], 1 }
 0x4c9   :  { %3880 = vsyncpa [#allocation5 + $0x1], 1 }
 0x4ca   :  { %3881 = vsyncpa [#allocation10], 1 }
 0x4cb   :  { %3883 = vsyncpa [#allocation10 + $0x1], 1 }

</bundles_post_ra>
